<compile_context>
chip_gen: v5e
topology: v5e:2x2
jax: 0.10.0
libtpu: 0.0.40
codegen_flags: <defaults>
</compile_context>

<pallas_src>
import functools

import jax
import jax.numpy as jnp
from jax import lax
from jax.experimental import pallas as pl
from jax.experimental.pallas import tpu as pltpu


def _elu(x):
    return jnp.where(x > 0, x, jnp.exp(jnp.minimum(x, 0.0)) - 1.0)


# ---------------------------------------------------------------------------
# Pallas kernel: one SpGraphAttentionLayer, all H heads fused.
# grid = (node_tiles, edge_tiles); edge axis is the reduction ("arbitrary").
# ---------------------------------------------------------------------------
def spgat_layer_kernel(src_ref, dst_ref, x_ref, w1_ref, w2_ref, amat_ref,
                       emat_ref, tail_ref, dmat_ref, o_ref,
                       xw1_ref, xw2_ref, *, alpha, node_tile, single_tile):
    """Refs:
      src_ref/dst_ref : (TE, 1) int32   edge endpoints (padded edges use N)
      x_ref           : (N, F_in) f32   node features (grid-invariant)
      w1_ref/w2_ref   : (F_in, HFp) f32 per-head W halves, transposed, padded
      amat_ref        : (HFp, 128) bf16 block-diag attention vectors (col=head)
      emat_ref        : (128, HFp) bf16 head -> feature block + rowsum column
      tail_ref        : (1, HFp)  f32   1.0 at rowsum columns [HF, HF+H)
      dmat_ref        : (HFp, HFp) f32  rowsum column -> head feature block
      o_ref           : (TN, HFp) f32   lane-dense accumulator / output block
      xw1_ref/xw2_ref : (N, HFp) bf16   hoisted X @ W halves (scratch)
    """
    n_idx = pl.program_id(0)
    e_idx = pl.program_id(1)
    te = src_ref.shape[0]
    n_full = x_ref.shape[0]

    # --- per-node-tile prologue (e == 0): hoisted transform + accumulator ---
    # Recomputed per node tile (not only at the very first grid step) so it is
    # correct when the "parallel" node axis is sharded across TensorCores.
    @pl.when(e_idx == 0)
    def _prologue():
        xw1_ref[...] = jnp.dot(
            x_ref[...], w1_ref[...],
            preferred_element_type=jnp.float32).astype(jnp.bfloat16)
        xw2_ref[...] = jnp.dot(
            x_ref[...], w2_ref[...],
            preferred_element_type=jnp.float32).astype(jnp.bfloat16)
        o_ref[...] = jnp.zeros_like(o_ref)

    src = src_ref[...]                                             # (TE, 1)
    dst = dst_ref[...]

    # One-hot gather matrices over the full node set (exact in bf16).
    # Padded edges (index == N) produce all-zero rows.
    iota_n = lax.broadcasted_iota(jnp.int32, (te, n_full), 1)
    gs = (src == iota_n).astype(jnp.bfloat16)                      # (TE, N)
    gd = (dst == iota_n).astype(jnp.bfloat16)                      # (TE, N)

    # Gather pre-transformed features -> all-head edge messages (bf16 MXU).
    edge_m = (jnp.dot(gs, xw1_ref[...], preferred_element_type=jnp.float32)
              + jnp.dot(gd, xw2_ref[...], preferred_element_type=jnp.float32))

    # Per-head raw scores s = a_h . edge_m_h (columns >= H are zero/ignored).
    s = jnp.dot(edge_m.astype(jnp.bfloat16), amat_ref[...],
                preferred_element_type=jnp.float32)                # (TE, 128)
    s = jnp.where(s > 0, s, alpha * s)                             # LeakyReLU
    score = jnp.exp(-s)
    # NOTE: dropout on edge_e is identity in eval mode.

    # Expand per-head score over its feature block AND its rowsum tail column;
    # multiply by (edge_m + tail) so the tail column carries the raw score.
    score_exp = jnp.dot(score.astype(jnp.bfloat16), emat_ref[...],
                        preferred_element_type=jnp.float32)        # (TE, HFp)
    scat = (score_exp * (edge_m + tail_ref[...])).astype(jnp.bfloat16)

    # Scatter one-hot restricted to this node tile.
    if single_tile:
        gs_sc = gs
    else:
        iota_t = lax.broadcasted_iota(jnp.int32, (te, node_tile), 1)
        gs_sc = (src == (iota_t + n_idx * node_tile)).astype(jnp.bfloat16)

    # Fused segment scatter-add: one Gs^T @ [edge_w | rowsum] MXU push.
    dims = (((0,), (0,)), ((), ()))
    o_ref[...] += lax.dot_general(gs_sc, scat, dims,
                                  preferred_element_type=jnp.float32)

    # --- per-node-tile epilogue (e == last): normalize + ELU -----------------
    @pl.when(e_idx == pl.num_programs(1) - 1)
    def _finalize():
        acc = o_ref[...]
        # Expand rowsum columns back over each head's feature block.
        denom = jnp.dot(acc, dmat_ref[...], preferred_element_type=jnp.float32)
        denom = jnp.where(denom == 0.0, 1e-12, denom)
        h = acc * pl.reciprocal(denom, approx=True)
        # ELU (layer concat=True applies it; for the out_att layer SpGAT
        # applies F.elu right after -> always apply here). Padded columns are
        # garbage but are sliced off on the host.
        o_ref[...] = jnp.where(h > 0, h, jnp.exp(jnp.minimum(h, 0.0)) - 1.0)


# ---------------------------------------------------------------------------
# Wrappers
# ---------------------------------------------------------------------------
def _vmem_limit_bytes(n, f_in, hfp, te, tn):
    f32b, bf16b = 4, 2
    invariants = f32b * (n * f_in + 2 * f_in * hfp + hfp * 128
                         + 128 * hfp + hfp + hfp * hfp)
    scratch = 2 * bf16b * n * hfp                    # xw1/xw2 (bf16)
    out_blk = 2 * f32b * tn * hfp                    # double-buffered output
    edge_blk = 2 * 2 * te * 4                        # src/dst blocks
    temps = bf16b * te * (2 * n + tn) + 6 * f32b * te * hfp
    need = 2 * invariants + scratch + out_blk + edge_blk + 2 * temps
    return int(min(max(need, 16 * 1024 * 1024), 48 * 1024 * 1024))


def spgat_layer_pallas(x, src_pad, dst_pad, w_heads, a_heads, *, alpha,
                       edge_tile=512, node_tile=None):
    """Fused SpGraphAttentionLayer over all H heads, ELU applied.

    x        : (N, F_in) f32
    src_pad  : (E_pad, 1) int32   padded source indices (pad value == N)
    dst_pad  : (E_pad, 1) int32   padded destination indices
    w_heads  : (H, F_out, 2*F_in) per-head W (torch layout)
    a_heads  : (H, F_out)         per-head attention vector
    returns  : (N, H*F_out) f32
    """
    f32, bf16 = jnp.float32, jnp.bfloat16
    n, f_in = x.shape
    h, f_out, two_f_in = w_heads.shape
    assert two_f_in == 2 * f_in and h <= 128
    hf = h * f_out
    hfp = ((hf + h + 127) // 128) * 128          # lane-dense padded width
    e_pad = src_pad.shape[0]
    assert e_pad % edge_tile == 0
    if node_tile is None:
        node_tile = n
    assert n % node_tile == 0
    assert node_tile == n or node_tile % 8 == 0
    n_tiles = n // node_tile
    single_tile = (n_tiles == 1)

    # ---- host-side constant folding into lane-dense, zero-padded operands --
    w1 = jnp.concatenate([w_heads[i, :, :f_in].T for i in range(h)], axis=1)
    w2 = jnp.concatenate([w_heads[i, :, f_in:].T for i in range(h)], axis=1)
    w1p = jnp.zeros((f_in, hfp), f32).at[:, :hf].set(w1)
    w2p = jnp.zeros((f_in, hfp), f32).at[:, :hf].set(w2)

    eye_h = jnp.eye(h, dtype=f32)
    amat = jnp.zeros((hfp, 128), f32).at[:hf, :h].set(
        (a_heads[:, :, None] * eye_h[:, None, :]).reshape(hf, h)).astype(bf16)

    emat = jnp.zeros((128, hfp), f32)
    emat = emat.at[:h, :hf].set(jnp.repeat(eye_h, f_out, axis=1))
    emat = emat.at[jnp.arange(h), hf + jnp.arange(h)].set(1.0).astype(bf16)

    tail = jnp.zeros((1, hfp), f32).at[0, hf:hf + h].set(1.0)

    dmat = jnp.zeros((hfp, hfp), f32)
    dmat = dmat.at[hf + jnp.arange(h)[:, None],
                   f_out * jnp.arange(h)[:, None]
                   + jnp.arange(f_out)[None, :]].set(1.0)

    kernel = functools.partial(spgat_layer_kernel, alpha=alpha,
                               node_tile=node_tile, single_tile=single_tile)

    out = pl.pallas_call(
        kernel,
        out_shape=jax.ShapeDtypeStruct((n, hfp), f32),
        grid_spec=pltpu.PrefetchScalarGridSpec(
            num_scalar_prefetch=0,
            grid=(n_tiles, e_pad // edge_tile),
            in_specs=[
                pl.BlockSpec((edge_tile, 1), lambda ni, ei: (ei, 0)),   # src
                pl.BlockSpec((edge_tile, 1), lambda ni, ei: (ei, 0)),   # dst
                pl.BlockSpec((n, f_in), lambda ni, ei: (0, 0)),         # x
                pl.BlockSpec((f_in, hfp), lambda ni, ei: (0, 0)),       # w1p
                pl.BlockSpec((f_in, hfp), lambda ni, ei: (0, 0)),       # w2p
                pl.BlockSpec((hfp, 128), lambda ni, ei: (0, 0)),        # amat
                pl.BlockSpec((128, hfp), lambda ni, ei: (0, 0)),        # emat
                pl.BlockSpec((1, hfp), lambda ni, ei: (0, 0)),          # tail
                pl.BlockSpec((hfp, hfp), lambda ni, ei: (0, 0)),        # dmat
            ],
            out_specs=pl.BlockSpec((node_tile, hfp), lambda ni, ei: (ni, 0)),
            scratch_shapes=[pltpu.VMEM((n, hfp), bf16),                 # xw1
                            pltpu.VMEM((n, hfp), bf16)],                # xw2
        ),
        compiler_params=pltpu.CompilerParams(
            dimension_semantics=("parallel", "arbitrary"),
            vmem_limit_bytes=_vmem_limit_bytes(n, f_in, hfp, edge_tile,
                                               node_tile)),
    )(src_pad, dst_pad, x, w1p, w2p, amat, emat, tail, dmat)
    return out[:, :hf]


def spgat_forward(entity_emb, relation_emb, edge_list, params, *, alpha,
                  edge_tile=512, node_tile=None):
    n = entity_emb.shape[0]
    src = edge_list[0].astype(jnp.int32)
    dst = edge_list[1].astype(jnp.int32)
    e = src.shape[0]
    e_pad = edge_tile * (-(-e // edge_tile))
    pad = jnp.full((e_pad - e,), n, dtype=jnp.int32)             # out-of-range
    src_pad = jnp.concatenate([src, pad]).reshape(e_pad, 1)
    dst_pad = jnp.concatenate([dst, pad]).reshape(e_pad, 1)

    # Multi-head attention layer (concat=True -> ELU, heads concatenated along
    # the feature axis inside the fused kernel).
    x = spgat_layer_pallas(entity_emb, src_pad, dst_pad,
                           params['att_W'], params['att_a'],
                           alpha=alpha, edge_tile=edge_tile,
                           node_tile=node_tile)
    # self.dropout_layer: identity in eval mode.

    # x_rel: an (R, F) @ (F, HF) matmul is far below one MXU tile; a plain XLA
    # dot is cheaper than a pallas_call launch (per perf review).
    x_rel = jnp.dot(relation_emb, params['W'],
                    precision=jax.lax.Precision.HIGHEST)

    # out_att layer (concat=False) followed by F.elu in SpGAT.forward.
    x = spgat_layer_pallas(x, src_pad, dst_pad,
                           params['out_W'][None], params['out_a'][None],
                           alpha=alpha, edge_tile=edge_tile,
                           node_tile=node_tile)
    return x, x_rel


# ---------------------------------------------------------------------------
# Pure-JAX reference (eval-mode semantics of the PyTorch module)
# ---------------------------------------------------------------------------
def spgat_reference(entity_emb, relation_emb, edge_list, params, *, alpha):
    n = entity_emb.shape[0]
    src, dst = edge_list[0], edge_list[1]
    hi = jax.lax.Precision.HIGHEST

    def layer(x, w, a, apply_elu):
        edge_h = jnp.concatenate([x[src], x[dst]], axis=1)
        edge_m = jnp.matmul(edge_h, w.T, precision=hi)
        s = jnp.matmul(edge_m, a, precision=hi)
        s = jnp.where(s > 0, s, alpha * s)
        edge_e = jnp.exp(-s)
        e_rowsum = jax.ops.segment_sum(edge_e, src, num_segments=n)
        e_rowsum = jnp.where(e_rowsum == 0.0, 1e-12, e_rowsum)
        edge_w = edge_e[:, None] * edge_m
        h_prime = jax.ops.segment_sum(edge_w, src, num_segments=n)
        h_prime = h_prime / e_rowsum[:, None]
        return _elu(h_prime) if apply_elu else h_prime

    heads = [layer(entity_emb, params['att_W'][i], params['att_a'][i], True)
             for i in range(params['att_W'].shape[0])]
    x = jnp.concatenate(heads, axis=1)
    x_rel = jnp.matmul(relation_emb, params['W'], precision=hi)
    x = _elu(layer(x, params['out_W'], params['out_a'], False))
    return x, x_rel


if __name__ == "__main__":
    num_nodes, nfeat, nhid, nheads = 32, 32, 32, 2
    num_rel, num_edges, alpha = 8, 600, 0.2
    nh_hid = nheads * nhid

    key = jax.random.PRNGKey(0)
    k = jax.random.split(key, 9)
    entity_emb = jax.random.normal(k[0], (num_nodes, nfeat), jnp.float32)
    relation_emb = jax.random.normal(k[1], (num_rel, nfeat), jnp.float32)
    src = jax.random.randint(k[2], (num_edges,), 0, num_nodes, jnp.int32)
    dst = jax.random.randint(k[3], (num_edges,), 0, num_nodes, jnp.int32)
    edge_list = jnp.stack([src, dst], axis=0)                       # (2, E)

    params = {
        'att_W': 0.1 * jax.random.normal(k[4], (nheads, nhid, 2 * nfeat),
                                         jnp.float32),
        'att_a': 0.1 * jax.random.normal(k[5], (nheads, nhid), jnp.float32),
        'out_W': 0.1 * jax.random.normal(k[6], (nh_hid, 2 * nh_hid),
                                         jnp.float32),
        'out_a': 0.1 * jax.random.normal(k[7], (nh_hid,), jnp.float32),
        'W': 0.1 * jax.random.normal(k[8], (nfeat, nh_hid), jnp.float32),
    }

    x_gold, x_rel_gold = spgat_reference(entity_emb, relation_emb, edge_list,
                                         params, alpha=alpha)

    # Run once with the whole graph as a single node tile and once node-tiled
    # (exercises the parallel node axis / local scatter path).
    for node_tile in (None, 16):
        run = functools.partial(spgat_forward, alpha=alpha, edge_tile=512,
                                node_tile=node_tile)
        x_out, x_rel = jax.block_until_ready(
            run(entity_emb, relation_emb, edge_list, params))
        assert x_out.shape == (num_nodes, nh_hid)
        assert x_rel.shape == (num_rel, nh_hid)
        err_x = float(jnp.max(jnp.abs(x_out - x_gold)))
        err_r = float(jnp.max(jnp.abs(x_rel - x_rel_gold)))
        # bf16 MXU operands (per perf review) vs the f32 reference -> ~1e-2
        # level absolute error on O(1) values; tolerance set accordingly.
        assert jnp.allclose(x_out, x_gold, rtol=5e-2, atol=5e-2), (
            f"x err={err_x} node_tile={node_tile}")
        assert jnp.allclose(x_rel, x_rel_gold, rtol=1e-3, atol=1e-3), (
            f"rel err={err_r}")
    print("KERNEL_OK")
</pallas_src>

<mosaic_0001>
module attributes {stable_mosaic.version = 11 : i64} {
  func.func @spgat_layer_kernel(%arg0: i32, %arg1: i32, %arg2: memref<512x1xi32, #tpu.memory_space<vmem>>, %arg3: memref<512x1xi32, #tpu.memory_space<vmem>>, %arg4: memref<32x32xf32, #tpu.memory_space<vmem>>, %arg5: memref<32x128xf32, #tpu.memory_space<vmem>>, %arg6: memref<32x128xf32, #tpu.memory_space<vmem>>, %arg7: memref<128x128xbf16, #tpu.memory_space<vmem>>, %arg8: memref<128x128xbf16, #tpu.memory_space<vmem>>, %arg9: memref<1x128xf32, #tpu.memory_space<vmem>>, %arg10: memref<128x128xf32, #tpu.memory_space<vmem>>, %arg11: memref<32x128xf32, #tpu.memory_space<vmem>>, %arg12: memref<32x128xbf16, #tpu.memory_space<vmem>>, %arg13: memref<32x128xbf16, #tpu.memory_space<vmem>>) attributes {dimension_semantics = [#tpu.dimension_semantics<parallel>, #tpu.dimension_semantics<arbitrary>], iteration_bounds = array<i64: 1, 2>, scalar_prefetch = 0 : i64, scratch_operands = 2 : i64, tpu.core_type = #tpu.core_type<tc>, window_params = [{transform_indices = @transform_0, window_bounds = array<i64: 512, 1>}, {transform_indices = @transform_1, window_bounds = array<i64: 512, 1>}, {pipeline_mode = #tpu.pipeline_mode<synchronous>, transform_indices = @transform_2, window_bounds = array<i64: 32, 32>}, {pipeline_mode = #tpu.pipeline_mode<synchronous>, transform_indices = @transform_3, window_bounds = array<i64: 32, 128>}, {pipeline_mode = #tpu.pipeline_mode<synchronous>, transform_indices = @transform_4, window_bounds = array<i64: 32, 128>}, {pipeline_mode = #tpu.pipeline_mode<synchronous>, transform_indices = @transform_5, window_bounds = array<i64: 128, 128>}, {pipeline_mode = #tpu.pipeline_mode<synchronous>, transform_indices = @transform_6, window_bounds = array<i64: 128, 128>}, {pipeline_mode = #tpu.pipeline_mode<synchronous>, transform_indices = @transform_7, window_bounds = array<i64: 1, 128>}, {pipeline_mode = #tpu.pipeline_mode<synchronous>, transform_indices = @transform_8, window_bounds = array<i64: 128, 128>}, {transform_indices = @transform_9, window_bounds = array<i64: 32, 128>}]} {
    %c0_i32 = arith.constant 0 : i32
    %0 = arith.cmpi eq, %arg1, %c0_i32 : i32
    %1 = arith.extui %0 : i1 to i32
    %c0_i32_0 = arith.constant 0 : i32
    %2 = arith.cmpi ne, %1, %c0_i32_0 : i32
    scf.if %2 {
      %c0_26 = arith.constant 0 : index
      %c0_27 = arith.constant 0 : index
      %47 = vector.load %arg4[%c0_26, %c0_27] : memref<32x32xf32, #tpu.memory_space<vmem>>, vector<32x32xf32>
      %c0_28 = arith.constant 0 : index
      %c0_29 = arith.constant 0 : index
      %48 = vector.load %arg5[%c0_28, %c0_29] : memref<32x128xf32, #tpu.memory_space<vmem>>, vector<32x128xf32>
      %cst_30 = arith.constant dense<0.000000e+00> : vector<32x128xf32>
      %49 = tpu.matmul %47, %48, %cst_30 {dimension_numbers = #tpu.dot_dimension_numbers<[1], [0], [0], [1], [0, 0, 1, 1], [], []>} : vector<32x32xf32>, vector<32x128xf32>, vector<32x128xf32> -> vector<32x128xf32>
      %50 = arith.truncf %49 : vector<32x128xf32> to vector<32x128xbf16>
      %c0_31 = arith.constant 0 : index
      %c0_32 = arith.constant 0 : index
      %51 = vector.load %arg12[%c0_31, %c0_32] : memref<32x128xbf16, #tpu.memory_space<vmem>>, vector<32x128xbf16>
      tpu.vector_store %arg12[%c0_31, %c0_32], %50 {strides = array<i32>} : memref<32x128xbf16, #tpu.memory_space<vmem>>, vector<32x128xbf16>,
      %c0_33 = arith.constant 0 : index
      %c0_34 = arith.constant 0 : index
      %52 = vector.load %arg4[%c0_33, %c0_34] : memref<32x32xf32, #tpu.memory_space<vmem>>, vector<32x32xf32>
      %c0_35 = arith.constant 0 : index
      %c0_36 = arith.constant 0 : index
      %53 = vector.load %arg6[%c0_35, %c0_36] : memref<32x128xf32, #tpu.memory_space<vmem>>, vector<32x128xf32>
      %cst_37 = arith.constant dense<0.000000e+00> : vector<32x128xf32>
      %54 = tpu.matmul %52, %53, %cst_37 {dimension_numbers = #tpu.dot_dimension_numbers<[1], [0], [0], [1], [0, 0, 1, 1], [], []>} : vector<32x32xf32>, vector<32x128xf32>, vector<32x128xf32> -> vector<32x128xf32>
      %55 = arith.truncf %54 : vector<32x128xf32> to vector<32x128xbf16>
      %c0_38 = arith.constant 0 : index
      %c0_39 = arith.constant 0 : index
      %56 = vector.load %arg13[%c0_38, %c0_39] : memref<32x128xbf16, #tpu.memory_space<vmem>>, vector<32x128xbf16>
      tpu.vector_store %arg13[%c0_38, %c0_39], %55 {strides = array<i32>} : memref<32x128xbf16, #tpu.memory_space<vmem>>, vector<32x128xbf16>,
      %cst_40 = arith.constant 0.000000e+00 : f32
      %57 = vector.broadcast %cst_40 : f32 to vector<32x128xf32>
      %c0_41 = arith.constant 0 : index
      %c0_42 = arith.constant 0 : index
      %58 = vector.load %arg11[%c0_41, %c0_42] : memref<32x128xf32, #tpu.memory_space<vmem>>, vector<32x128xf32>
      tpu.vector_store %arg11[%c0_41, %c0_42], %57 {strides = array<i32>} : memref<32x128xf32, #tpu.memory_space<vmem>>, vector<32x128xf32>,
    } else {
    }
    %c0 = arith.constant 0 : index
    %c0_1 = arith.constant 0 : index
    %3 = vector.load %arg2[%c0, %c0_1] : memref<512x1xi32, #tpu.memory_space<vmem>>, vector<512x1xi32>
    %c0_2 = arith.constant 0 : index
    %c0_3 = arith.constant 0 : index
    %4 = vector.load %arg3[%c0_2, %c0_3] : memref<512x1xi32, #tpu.memory_space<vmem>>, vector<512x1xi32>
    %5 = tpu.iota {dimensions = array<i32: 1>} : vector<512x32xi32>
    %6 = vector.broadcast %3 : vector<512x1xi32> to vector<512x32xi32>
    %7 = arith.cmpi eq, %6, %5 : vector<512x32xi32>
    %8 = arith.extui %7 : vector<512x32xi1> to vector<512x32xi32>
    %9 = arith.sitofp %8 : vector<512x32xi32> to vector<512x32xf32>
    %10 = arith.truncf %9 : vector<512x32xf32> to vector<512x32xbf16>
    %11 = vector.broadcast %4 : vector<512x1xi32> to vector<512x32xi32>
    %12 = arith.cmpi eq, %11, %5 : vector<512x32xi32>
    %13 = arith.extui %12 : vector<512x32xi1> to vector<512x32xi32>
    %14 = arith.sitofp %13 : vector<512x32xi32> to vector<512x32xf32>
    %15 = arith.truncf %14 : vector<512x32xf32> to vector<512x32xbf16>
    %c0_4 = arith.constant 0 : index
    %c0_5 = arith.constant 0 : index
    %16 = vector.load %arg12[%c0_4, %c0_5] : memref<32x128xbf16, #tpu.memory_space<vmem>>, vector<32x128xbf16>
    %cst = arith.constant dense<0.000000e+00> : vector<512x128xf32>
    %17 = tpu.matmul %10, %16, %cst {dimension_numbers = #tpu.dot_dimension_numbers<[1], [0], [0], [1], [0, 0, 1, 1], [], []>} : vector<512x32xbf16>, vector<32x128xbf16>, vector<512x128xf32> -> vector<512x128xf32>
    %c0_6 = arith.constant 0 : index
    %c0_7 = arith.constant 0 : index
    %18 = vector.load %arg13[%c0_6, %c0_7] : memref<32x128xbf16, #tpu.memory_space<vmem>>, vector<32x128xbf16>
    %cst_8 = arith.constant dense<0.000000e+00> : vector<512x128xf32>
    %19 = tpu.matmul %15, %18, %cst_8 {dimension_numbers = #tpu.dot_dimension_numbers<[1], [0], [0], [1], [0, 0, 1, 1], [], []>} : vector<512x32xbf16>, vector<32x128xbf16>, vector<512x128xf32> -> vector<512x128xf32>
    %20 = arith.addf %17, %19 : vector<512x128xf32>
    %21 = arith.truncf %20 : vector<512x128xf32> to vector<512x128xbf16>
    %c0_9 = arith.constant 0 : index
    %c0_10 = arith.constant 0 : index
    %22 = vector.load %arg7[%c0_9, %c0_10] : memref<128x128xbf16, #tpu.memory_space<vmem>>, vector<128x128xbf16>
    %cst_11 = arith.constant dense<0.000000e+00> : vector<512x128xf32>
    %23 = tpu.matmul %21, %22, %cst_11 {dimension_numbers = #tpu.dot_dimension_numbers<[1], [0], [0], [1], [0, 0, 1, 1], [], []>} : vector<512x128xbf16>, vector<128x128xbf16>, vector<512x128xf32> -> vector<512x128xf32>
    %cst_12 = arith.constant 0.000000e+00 : f32
    %24 = vector.broadcast %cst_12 : f32 to vector<512x128xf32>
    %25 = arith.cmpf ogt, %23, %24 : vector<512x128xf32>
    %cst_13 = arith.constant 2.000000e-01 : f32
    %26 = vector.broadcast %cst_13 : f32 to vector<512x128xf32>
    %27 = arith.mulf %26, %23 : vector<512x128xf32>
    %28 = arith.select %25, %23, %27 : vector<512x128xi1>, vector<512x128xf32>
    %cst_14 = arith.constant 0.000000e+00 : f32
    %29 = vector.broadcast %cst_14 : f32 to vector<512x128xf32>
    %30 = arith.subf %29, %28 : vector<512x128xf32>
    %31 = math.exp %30 : vector<512x128xf32>
    %32 = arith.truncf %31 : vector<512x128xf32> to vector<512x128xbf16>
    %c0_15 = arith.constant 0 : index
    %c0_16 = arith.constant 0 : index
    %33 = vector.load %arg8[%c0_15, %c0_16] : memref<128x128xbf16, #tpu.memory_space<vmem>>, vector<128x128xbf16>
    %cst_17 = arith.constant dense<0.000000e+00> : vector<512x128xf32>
    %34 = tpu.matmul %32, %33, %cst_17 {dimension_numbers = #tpu.dot_dimension_numbers<[1], [0], [0], [1], [0, 0, 1, 1], [], []>} : vector<512x128xbf16>, vector<128x128xbf16>, vector<512x128xf32> -> vector<512x128xf32>
    %c0_18 = arith.constant 0 : index
    %c0_19 = arith.constant 0 : index
    %35 = vector.load %arg9[%c0_18, %c0_19] : memref<1x128xf32, #tpu.memory_space<vmem>>, vector<1x128xf32>
    %36 = vector.broadcast %35 : vector<1x128xf32> to vector<512x128xf32>
    %37 = arith.addf %20, %36 : vector<512x128xf32>
    %38 = arith.mulf %34, %37 : vector<512x128xf32>
    %39 = arith.truncf %38 : vector<512x128xf32> to vector<512x128xbf16>
    %c0_20 = arith.constant 0 : index
    %c0_21 = arith.constant 0 : index
    %40 = vector.load %arg11[%c0_20, %c0_21] : memref<32x128xf32, #tpu.memory_space<vmem>>, vector<32x128xf32>
    %cst_22 = arith.constant dense<0.000000e+00> : vector<32x128xf32>
    %41 = tpu.matmul %10, %39, %cst_22 {dimension_numbers = #tpu.dot_dimension_numbers<[0], [0], [1], [1], [0, 1, 1, 1], [], []>} : vector<512x32xbf16>, vector<512x128xbf16>, vector<32x128xf32> -> vector<32x128xf32>
    %42 = arith.addf %40, %41 : vector<32x128xf32>
    %c0_23 = arith.constant 0 : index
    %c0_24 = arith.constant 0 : index
    %43 = vector.load %arg11[%c0_23, %c0_24] : memref<32x128xf32, #tpu.memory_space<vmem>>, vector<32x128xf32>
    tpu.vector_store %arg11[%c0_23, %c0_24], %42 {strides = array<i32>} : memref<32x128xf32, #tpu.memory_space<vmem>>, vector<32x128xf32>,
    %c1_i32 = arith.constant 1 : i32
    %44 = arith.cmpi eq, %arg1, %c1_i32 : i32
    %45 = arith.extui %44 : i1 to i32
    %c0_i32_25 = arith.constant 0 : i32
    %46 = arith.cmpi ne, %45, %c0_i32_25 : i32
    scf.if %46 {
      %c0_26 = arith.constant 0 : index
      %c0_27 = arith.constant 0 : index
      %47 = vector.load %arg11[%c0_26, %c0_27] : memref<32x128xf32, #tpu.memory_space<vmem>>, vector<32x128xf32>
      %c0_28 = arith.constant 0 : index
      %c0_29 = arith.constant 0 : index
      %48 = vector.load %arg10[%c0_28, %c0_29] : memref<128x128xf32, #tpu.memory_space<vmem>>, vector<128x128xf32>
      %cst_30 = arith.constant dense<0.000000e+00> : vector<32x128xf32>
      %49 = tpu.matmul %47, %48, %cst_30 {dimension_numbers = #tpu.dot_dimension_numbers<[1], [0], [0], [1], [0, 0, 1, 1], [], []>} : vector<32x128xf32>, vector<128x128xf32>, vector<32x128xf32> -> vector<32x128xf32>
      %cst_31 = arith.constant 0.000000e+00 : f32
      %50 = vector.broadcast %cst_31 : f32 to vector<32x128xf32>
      %51 = arith.cmpf oeq, %49, %50 : vector<32x128xf32>
      %cst_32 = arith.constant 9.99999996E-13 : f32
      %52 = vector.broadcast %cst_32 : f32 to vector<32x128xf32>
      %53 = arith.select %51, %52, %49 : vector<32x128xi1>, vector<32x128xf32>
      %54 = tpu.reciprocal %53 {approx = true} : vector<32x128xf32> -> vector<32x128xf32>
      %55 = arith.mulf %47, %54 : vector<32x128xf32>
      %cst_33 = arith.constant 0.000000e+00 : f32
      %56 = vector.broadcast %cst_33 : f32 to vector<32x128xf32>
      %57 = arith.cmpf ogt, %55, %56 : vector<32x128xf32>
      %cst_34 = arith.constant 0.000000e+00 : f32
      %58 = vector.broadcast %cst_34 : f32 to vector<32x128xf32>
      %59 = arith.minimumf %55, %58 : vector<32x128xf32>
      %60 = math.exp %59 : vector<32x128xf32>
      %cst_35 = arith.constant 1.000000e+00 : f32
      %61 = vector.broadcast %cst_35 : f32 to vector<32x128xf32>
      %62 = arith.subf %60, %61 : vector<32x128xf32>
      %63 = arith.select %57, %55, %62 : vector<32x128xi1>, vector<32x128xf32>
      %c0_36 = arith.constant 0 : index
      %c0_37 = arith.constant 0 : index
      %64 = vector.load %arg11[%c0_36, %c0_37] : memref<32x128xf32, #tpu.memory_space<vmem>>, vector<32x128xf32>
      tpu.vector_store %arg11[%c0_36, %c0_37], %63 {strides = array<i32>} : memref<32x128xf32, #tpu.memory_space<vmem>>, vector<32x128xf32>,
    } else {
    }
    return
  }
  func.func @transform_0(%arg0: i32, %arg1: i32) -> (i32, i32) {
    %c0_i32 = arith.constant 0 : i32
    %c0_i32_0 = arith.constant 0 : i32
    return %arg1, %c0_i32 : i32, i32
  }
  func.func @transform_1(%arg0: i32, %arg1: i32) -> (i32, i32) {
    %c0_i32 = arith.constant 0 : i32
    %c0_i32_0 = arith.constant 0 : i32
    return %arg1, %c0_i32 : i32, i32
  }
  func.func @transform_2(%arg0: i32, %arg1: i32) -> (i32, i32) {
    %c0_i32 = arith.constant 0 : i32
    %c0_i32_0 = arith.constant 0 : i32
    %c0_i32_1 = arith.constant 0 : i32
    return %c0_i32, %c0_i32_0 : i32, i32
  }
  func.func @transform_3(%arg0: i32, %arg1: i32) -> (i32, i32) {
    %c0_i32 = arith.constant 0 : i32
    %c0_i32_0 = arith.constant 0 : i32
    %c0_i32_1 = arith.constant 0 : i32
    return %c0_i32, %c0_i32_0 : i32, i32
  }
  func.func @transform_4(%arg0: i32, %arg1: i32) -> (i32, i32) {
    %c0_i32 = arith.constant 0 : i32
    %c0_i32_0 = arith.constant 0 : i32
    %c0_i32_1 = arith.constant 0 : i32
    return %c0_i32, %c0_i32_0 : i32, i32
  }
  func.func @transform_5(%arg0: i32, %arg1: i32) -> (i32, i32) {
    %c0_i32 = arith.constant 0 : i32
    %c0_i32_0 = arith.constant 0 : i32
    %c0_i32_1 = arith.constant 0 : i32
    return %c0_i32, %c0_i32_0 : i32, i32
  }
  func.func @transform_6(%arg0: i32, %arg1: i32) -> (i32, i32) {
    %c0_i32 = arith.constant 0 : i32
    %c0_i32_0 = arith.constant 0 : i32
    %c0_i32_1 = arith.constant 0 : i32
    return %c0_i32, %c0_i32_0 : i32, i32
  }
  func.func @transform_7(%arg0: i32, %arg1: i32) -> (i32, i32) {
    %c0_i32 = arith.constant 0 : i32
    %c0_i32_0 = arith.constant 0 : i32
    %c0_i32_1 = arith.constant 0 : i32
    return %c0_i32, %c0_i32_0 : i32, i32
  }
  func.func @transform_8(%arg0: i32, %arg1: i32) -> (i32, i32) {
    %c0_i32 = arith.constant 0 : i32
    %c0_i32_0 = arith.constant 0 : i32
    %c0_i32_1 = arith.constant 0 : i32
    return %c0_i32, %c0_i32_0 : i32, i32
  }
  func.func @transform_9(%arg0: i32, %arg1: i32) -> (i32, i32) {
    %c0_i32 = arith.constant 0 : i32
    %c0_i32_0 = arith.constant 0 : i32
    return %arg0, %c0_i32 : i32, i32
  }
}

</mosaic_0001>

<bundles_post_ra>
// kernel: tpu_custom_call.1
= control target key start
LH: loop header
LB: loop body
LE: loop exit
PB: predicated region body
PF: predicated region fallthrough
CT: control target
= control target key end

     0   :  { %14 = vsyncpa [#allocation5], 0  ;;  %s4202_s30 = smov 0   ;;  %s4204_s10 = smov 0   ;;  %s5921_s0 = inlined_call_operand.vmem [shape: s32[1024,1], index: 0, kind: input, shape index: {}]   ;;  %s5922_s1 = inlined_call_operand.vmem [shape: s32[1024,1], index: 1, kind: input, shape index: {}]   ;;  %s5923_s2 = inlined_call_operand.vmem [shape: f32[32,32], index: 2, kind: input, shape index: {}]   ;;  %s5924_s3 = inlined_call_operand.vmem [shape: f32[32,128], index: 3, kind: input, shape index: {}]   ;;  %s5925_s4 = inlined_call_operand.vmem [shape: f32[32,128], index: 4, kind: input, shape index: {}]   ;;  %s5926_s5 = inlined_call_operand.vmem [shape: bf16[128,128], index: 5, kind: input, shape index: {}]   ;;  %s5927_s6 = inlined_call_operand.vmem [shape: bf16[128,128], index: 6, kind: input, shape index: {}]   ;;  %s5928_s7 = inlined_call_operand.vmem [shape: f32[1,128], index: 7, kind: input, shape index: {}]   ;;  %s5929_s8 = inlined_call_operand.vmem [shape: f32[128,128], index: 8, kind: input, shape index: {}]   ;;  %s5930_s9 = inlined_call_operand.hbm [shape: f32[32,128], index: 9, kind: output, shape index: {}]  }
   0x1   :  { %s4206_s11 = smov 0  }
   0x2 LB: > { %s3413_s12 = sadd.s32 4294967295, %s4141_s11   ;;  %s29_s13 = sadd.s32 1, %s4137_s10  ;;  %s4141_s11 = sphi %s4206_s11, %s20_s11   ;;  %s4137_s10 = sphi %s4204_s10, %s6012_s10   ;;  %s4133_s30 = sphi %s4202_s30, %s6011_s30  }
   0x3   : > { %p30_p0 = scmp.ge.s32.totalorder %s29_s13, 2  ;;  %p3416_p1 = scmp.ge.s32.totalorder %s4141_s11, 1 }
   0x4   : > { %p312_p2 = scmp.lt.s32.totalorder %s4141_s11, 3 }
   0x5   : > { %s6014_s13 = smov (%p30_p0, %s29_s13), 0 }
   0x6   : > { %p313_p3 = pnand %p3416_p1, %p312_p2 }
   0x8   : > { %316 = sbr.rel (%p313_p3) target bundleno = 1612 (0x64c), region = 56 }
   0xd   : > { %s3417_s14 = sshll.u32 %s4133_s30, 6  ;;  %p3421_p5 = scmp.ne.s32.totalorder %s4133_s30, 0 }
   0xe   : > { %p349_p4 = scmp.lt.s32.totalorder %s3417_s14, 127 }
   0xf   : > { %365 = sbr.rel (%p3421_p5) target bundleno = 173 (0xad), region = 60 }
  0x10   : > { %s6016_s14 = smov (!%p349_p4, %s3417_s14), 127 }
  0x11   : > { %s3418_s15 = sshll.u32 %s6016_s14, 3 }
  0x12   : > { %s4227_s18 = scalar_lea.vmem %s5921_s0, %s3418_s15  ;;  %s4232_s21 = scalar_lea.vmem %s5922_s1, %s3418_s15 }
  0x14   : > { %v373_v0 = vld [vmem:[%s5924_s3 + $0x18] sm:$0xff]  ;;  %v372_v2 = vld [vmem:[%s5924_s3 + $0x10] sm:$0xff]  ;;  %v371_v4 = vld [vmem:[%s5924_s3 + $0x8] sm:$0xff]  ;;  %vm374_vm0 = vcmask 261120   ;;  %v4143_v12 = vmov 0.0  }
  0x15   : > { %v431_v1 = vld [vmem:[%s5925_s4 + $0x18] sm:$0xff]  ;;  %399 = vmatpush.msra.mxu0 %v373_v0  ;;  %3753 = vmatpush.msra.mxu2 %v373_v0  ;;  %v430_v3 = vld [vmem:[%s5925_s4 + $0x10] sm:$0xff]  ;;  %v429_v5 = vld [vmem:[%s5925_s4 + $0x8] sm:$0xff]  ;;  %481 = vst [vmem:[#allocation4] sm:$0xff] %v4143_v12 }
  0x16   : > { %456 = vmatpush.msra.mxu1 %v431_v1  ;;  %3757 = vmatpush.msra.mxu3 %v431_v1  ;;  %v370_v6 = vld [vmem:[%s5924_s3] sm:$0xff]  ;;  %v368_v9 = vld [vmem:[%s5923_s2 + $0x10] sm:$0xff]  ;;  %v367_v10 = vld [vmem:[%s5923_s2 + $0x8] sm:$0xff]  ;;  %482 = vst [vmem:[#allocation4 + $0x8] sm:$0xff] %v4143_v12 }
  0x17   : > { %400 = vmatpush.msra.mxu0 %v372_v2  ;;  %3754 = vmatpush.msra.mxu2 %v372_v2  ;;  %v428_v7 = vld [vmem:[%s5925_s4] sm:$0xff]  ;;  %v369_v11 = vld [vmem:[%s5923_s2 + $0x18] sm:$0xff]  ;;  %483 = vst [vmem:[#allocation4 + $0x10] sm:$0xff] %v4143_v12 }
  0x18   : > { %457 = vmatpush.msra.mxu1 %v430_v3  ;;  %3758 = vmatpush.msra.mxu3 %v430_v3  ;;  %v366_v8 = vld [vmem:[%s5923_s2] sm:$0xff]  ;;  %484 = vst [vmem:[#allocation4 + $0x18] sm:$0xff] %v4143_v12 }
  0x19   : > { %401 = vmatpush.msra.mxu0 %v371_v4  ;;  %3755 = vmatpush.msra.mxu2 %v371_v4 }
  0x1a   : > { %458 = vmatpush.msra.mxu1 %v429_v5  ;;  %3759 = vmatpush.msra.mxu3 %v429_v5 }
  0x1b   : > { %402 = vmatpush.msra.mxu0 %v370_v6  ;;  %3756 = vmatpush.msra.mxu2 %v370_v6 }
  0x1c   : > { %459 = vmatpush.msra.mxu1 %v428_v7  ;;  %3760 = vmatpush.msra.mxu3 %v428_v7 }
  0x1d   : > { %3422 = vmatmul.msk.f32.vlgmr.msra.gmra.mxu0 %vm374_vm0, %v366_v8  ;;  %3424 = vmatmul.msk.f32.vlgmr.msra.gmra.mxu2 %vm374_vm0, %v368_v9 }
  0x1e   : > { %3426 = vmatmul.msk.f32.vlgmr.msra.gmra.mxu1 %vm374_vm0, %v366_v8  ;;  %3428 = vmatmul.msk.f32.vlgmr.msra.gmra.mxu3 %vm374_vm0, %v368_v9 }
  0x25   : > { %3423 = vmatmul.msk.f32.gmra.mxu0 %vm374_vm0, %v367_v10  ;;  %3425 = vmatmul.msk.f32.gmra.mxu2 %vm374_vm0, %v369_v11 }
  0x26   : > { %3427 = vmatmul.msk.f32.gmra.mxu1 %vm374_vm0, %v367_v10  ;;  %3429 = vmatmul.msk.f32.gmra.mxu3 %vm374_vm0, %v369_v11 }
  0x9a   : > { %v404_v13 = vpop.f32.mrf.mxu0 }
  0x9b   : > { %v461_v14 = vpop.f32.mrf.mxu1 }
  0xa0   : > { %v410_v15 = vpop.f32.mrf.mxu2 }
  0xa1   : > { %v467_v16 = vpop.f32.mrf.mxu3 }
  0xa2   : > { %v407_v17 = vpop.f32.mrf.mxu0 }
  0xa3   : > { %v3734_v18 = vpack.c.bf16 %v407_v17, %v404_v13  ;;  %v464_v19 = vpop.f32.mrf.mxu1 }
  0xa4   : > { %v3744_v20 = vpack.c.bf16 %v464_v19, %v461_v14 }
  0xa5   : > { %3735 = vst [vmem:[#allocation2] sm:$0xff] %v3734_v18  }
  0xa6   : > { %3745 = vst [vmem:[#allocation3 + $0x8] sm:$0xff] %v3744_v20  }
  0xa8   : > { %v413_v21 = vpop.f32.mrf.mxu2 }
  0xa9   : > { %v3739_v22 = vpack.c.bf16 %v413_v21, %v410_v15  ;;  %v470_v23 = vpop.f32.mrf.mxu3 }
  0xaa   : > { %v3749_v24 = vpack.c.bf16 %v470_v23, %v467_v16 }
  0xab   : > { %3751 = vst [vmem:[#allocation2 + $0x8] sm:$0xff] %v3739_v22  }
  0xac   : > { %3752 = vst [vmem:[#allocation3] sm:$0xff] %v3749_v24  }
  0xad PF: > { %v549_v25 = vld [vmem:[%s4232_s21] sm:$0xff]  ;;  %v487_v26 = vld [vmem:[%s4227_s18 + $0x10] sm:$0xff]  ;;  %v4144_v28 = vmov 0   ;;  %v550_v29 = vld [vmem:[%s4232_s21 + $0x8] sm:$0xff]  ;;  %v613_v3 = vlaneseq  ;;  %vm1467_vm8 = vcmask 261120   ;;  %p3702_p6 = scmp.ne.s32.totalorder %s4133_s30, 1 }
  0xae   : > { %v485_v27 = vld [vmem:[%s4227_s18] sm:$0xff]  ;;  %3928 = vset.pattern.permute.xlu2 %v4144_v28  ;;  %3927 = vset.pattern.permute.xlu1 %v4144_v28  ;;  %v488_v30 = vld [vmem:[%s4227_s18 + $0x18] sm:$0xff]  ;;  %v486_v31 = vld [vmem:[%s4227_s18 + $0x8] sm:$0xff] }
  0xaf   : > { %3926 = vset.pattern.permute.xlu0 %v4144_v28  ;;  %1032 = vperm.xlu1 %3927, %v549_v25   ;;  %v552_v32 = vld [vmem:[%s4232_s21 + $0x18] sm:$0xff]  ;;  %v489_v33 = vld [vmem:[%s4227_s18 + $0x20] sm:$0xff]  ;;  %v551_v34 = vld [vmem:[%s4232_s21 + $0x10] sm:$0xff]  ;;  %v4312_v7 = vand.u32 127, %v613_v3 }
  0xb0   : > { %622 = vperm.xlu2 %3928, %v487_v26   ;;  %616 = vperm.xlu0 %3926, %v485_v27   ;;  %v553_v35 = vld [vmem:[%s4232_s21 + $0x20] sm:$0xff]  ;;  %v554_v36 = vld [vmem:[%s4232_s21 + $0x28] sm:$0xff]  ;;  %v492_v38 = vld [vmem:[%s4227_s18 + $0x38] sm:$0xff]  ;;  %v5937_v26 = vmov 0.0  }
  0xb1   : > { %v490_v37 = vld [vmem:[%s4227_s18 + $0x28] sm:$0xff]  ;;  %v555_v39 = vld [vmem:[%s4232_s21 + $0x30] sm:$0xff]  ;;  %v493_v41 = vld [vmem:[%s4227_s18 + $0x40] sm:$0xff] }
  0xb2   : > { %v491_v40 = vld [vmem:[%s4227_s18 + $0x30] sm:$0xff]  ;;  %v494_v42 = vld [vmem:[%s4227_s18 + $0x48] sm:$0xff]  ;;  %v556_v43 = vld [vmem:[%s4232_s21 + $0x38] sm:$0xff] }
  0xb3   : > { %v558_v44 = vld [vmem:[%s4232_s21 + $0x48] sm:$0xff]  ;;  %v495_v45 = vld [vmem:[%s4227_s18 + $0x50] sm:$0xff]  ;;  %v557_v46 = vld [vmem:[%s4232_s21 + $0x40] sm:$0xff] }
  0xb4   : > { %v559_v47 = vld [vmem:[%s4232_s21 + $0x50] sm:$0xff]  ;;  %v560_v48 = vld [vmem:[%s4232_s21 + $0x58] sm:$0xff]  ;;  %v498_v50 = vld [vmem:[%s4227_s18 + $0x68] sm:$0xff] }
  0xb5   : > { %v496_v49 = vld [vmem:[%s4227_s18 + $0x58] sm:$0xff]  ;;  %v561_v51 = vld [vmem:[%s4232_s21 + $0x60] sm:$0xff]  ;;  %v499_v53 = vld [vmem:[%s4227_s18 + $0x70] sm:$0xff] }
  0xb6   : > { %v497_v52 = vld [vmem:[%s4227_s18 + $0x60] sm:$0xff]  ;;  %v500_v54 = vld [vmem:[%s4227_s18 + $0x78] sm:$0xff]  ;;  %v562_v55 = vld [vmem:[%s4232_s21 + $0x68] sm:$0xff] }
  0xb7   : > { %1035 = vperm.xlu1 %3927, %v550_v29   ;;  %v564_v56 = vld [vmem:[%s4232_s21 + $0x78] sm:$0xff]  ;;  %v501_v57 = vld [vmem:[%s4227_s18 + $0x80] sm:$0xff]  ;;  %v563_v58 = vld [vmem:[%s4232_s21 + $0x70] sm:$0xff] }
  0xb8   : > { %625 = vperm.xlu2 %3928, %v488_v30   ;;  %619 = vperm.xlu0 %3926, %v486_v31   ;;  %v565_v59 = vld [vmem:[%s4232_s21 + $0x80] sm:$0xff]  ;;  %v3714_v60 = vld [vmem:[#allocation3] sm:$0xff]  ;;  %v3712_v61 = vld [vmem:[#allocation2 + $0x8] sm:$0xff] }
  0xb9   : > { %v566_v62 = vld [vmem:[%s4232_s21 + $0x88] sm:$0xff]  ;;  %1570 = vmatpush.bf16.msra.mxu0 %v3714_v60  ;;  %1847 = vmatpush.bf16.msra.mxu1 %v3712_v61  ;;  %v3713_v1 = vld [vmem:[#allocation3 + $0x8] sm:$0xff]  ;;  %v3711_v2 = vld [vmem:[#allocation2] sm:$0xff] }
  0xba   : > { %v502_v63 = vld [vmem:[%s4227_s18 + $0x88] sm:$0xff]  ;;  %v504_v4 = vld [vmem:[%s4227_s18 + $0x98] sm:$0xff]  ;;  %v567_v5 = vld [vmem:[%s4232_s21 + $0x90] sm:$0xff] }
  0xbb   : > { %v503_v6 = vld [vmem:[%s4227_s18 + $0x90] sm:$0xff]  ;;  %v505_v10 = vld [vmem:[%s4227_s18 + $0xa0] sm:$0xff]  ;;  %v506_v11 = vld [vmem:[%s4227_s18 + $0xa8] sm:$0xff] }
  0xbc   : > { %v568_v12 = vld [vmem:[%s4232_s21 + $0x98] sm:$0xff]  ;;  %v570_v14 = vld [vmem:[%s4232_s21 + $0xa8] sm:$0xff]  ;;  %v507_v15 = vld [vmem:[%s4227_s18 + $0xb0] sm:$0xff] }
  0xbd   : > { %1571 = vmatpush.bf16.msra.mxu0 %v3713_v1  ;;  %1848 = vmatpush.bf16.msra.mxu1 %v3711_v2  ;;  %v569_v16 = vld [vmem:[%s4232_s21 + $0xa0] sm:$0xff]  ;;  %v571_v20 = vld [vmem:[%s4232_s21 + $0xb0] sm:$0xff]  ;;  %v572_v21 = vld [vmem:[%s4232_s21 + $0xb8] sm:$0xff] }
  0xbe   : > { %v508_v22 = vld [vmem:[%s4227_s18 + $0xb8] sm:$0xff]  ;;  %v514_v60 = vld [vmem:[%s4227_s18 + $0xe8] sm:$0xff] }
  0xbf   : > { %1041 = vperm.xlu1 %3927, %v552_v32  }
  0xc0   : > { %628 = vperm.xlu2 %3928, %v489_v33   ;;  %1038 = vperm.xlu0 %3926, %v551_v34   ;;  %v510_v33 = vld [vmem:[%s4227_s18 + $0xc8] sm:$0xff] }
  0xc7   : > { %1044 = vperm.xlu1 %3927, %v553_v35   ;;  %v573_v35 = vld [vmem:[%s4232_s21 + $0xc0] sm:$0xff] }
  0xc8   : > { %1047 = vperm.xlu2 %3928, %v554_v36   ;;  %631 = vperm.xlu0 %3926, %v490_v37   ;;  %v509_v36 = vld [vmem:[%s4227_s18 + $0xc0] sm:$0xff] }
  0xcf   : > { %637 = vperm.xlu1 %3927, %v492_v38  }
  0xd0   : > { %1050 = vperm.xlu2 %3928, %v555_v39   ;;  %634 = vperm.xlu0 %3926, %v491_v40   ;;  %v511_v40 = vld [vmem:[%s4227_s18 + $0xd0] sm:$0xff] }
  0xd7   : > { %640 = vperm.xlu1 %3927, %v493_v41   ;;  %v512_v41 = vld [vmem:[%s4227_s18 + $0xd8] sm:$0xff] }
  0xd8   : > { %643 = vperm.xlu2 %3928, %v494_v42   ;;  %1053 = vperm.xlu0 %3926, %v556_v43   ;;  %v574_v42 = vld [vmem:[%s4232_s21 + $0xc8] sm:$0xff] }
  0xdf   : > { %1059 = vperm.xlu1 %3927, %v558_v44  }
  0xe0   : > { %646 = vperm.xlu2 %3928, %v495_v45   ;;  %1056 = vperm.xlu0 %3926, %v557_v46  }
  0xe7   : > { %1062 = vperm.xlu1 %3927, %v559_v47  }
  0xe8   : > { %1065 = vperm.xlu2 %3928, %v560_v48   ;;  %649 = vperm.xlu0 %3926, %v496_v49  }
  0xef   : > { %655 = vperm.xlu1 %3927, %v498_v50  }
  0xf0   : > { %1068 = vperm.xlu2 %3928, %v561_v51   ;;  %652 = vperm.xlu0 %3926, %v497_v52   ;;  %v576_v51 = vld [vmem:[%s4232_s21 + $0xd8] sm:$0xff] }
  0xf7   : > { %658 = vperm.xlu1 %3927, %v499_v53   ;;  %v513_v53 = vld [vmem:[%s4227_s18 + $0xe0] sm:$0xff] }
  0xf8   : > { %661 = vperm.xlu2 %3928, %v500_v54   ;;  %1071 = vperm.xlu0 %3926, %v562_v55   ;;  %v575_v54 = vld [vmem:[%s4232_s21 + $0xd0] sm:$0xff] }
  0xff   : > { %1077 = vperm.xlu1 %3927, %v564_v56  }
 0x100   : > { %664 = vperm.xlu2 %3928, %v501_v57   ;;  %1074 = vperm.xlu0 %3926, %v563_v58   ;;  %v577_v58 = vld [vmem:[%s4232_s21 + $0xe0] sm:$0xff] }
 0x107   : > { %1080 = vperm.xlu1 %3927, %v565_v59   ;;  %v578_v59 = vld [vmem:[%s4232_s21 + $0xe8] sm:$0xff] }
 0x108   : > { %1083 = vperm.xlu2 %3928, %v566_v62   ;;  %667 = vperm.xlu0 %3926, %v502_v63  }
 0x10a   : > { %v4307_v0 = vpop.permute.xlu2 %622 }
 0x10b   : > { %vm809_vm1 = vcmp.eq.s32.totalorder %v4307_v0, %v4312_v7 }
 0x10c   : > { %v3432_v46 = vsel %vm809_vm1, 1.0, %v5937_v26 }
 0x10f   : > { %673 = vperm.xlu1 %3927, %v504_v4  }
 0x110   : > { %1086 = vperm.xlu2 %3928, %v567_v5   ;;  %670 = vperm.xlu0 %3926, %v503_v6   ;;  %v516_v5 = vld [vmem:[%s4227_s18 + $0xf8] sm:$0xff] }
 0x112   : > { %v4316_v8 = vpop.permute.xlu2 %625 }
 0x113   : > { %vm810_vm2 = vcmp.eq.s32.totalorder %v4316_v8, %v4312_v7  ;;  %v579_v8 = vld [vmem:[%s4232_s21 + $0xf0] sm:$0xff] }
 0x114   : > { %vm4326_vm3 = vmpackc.low %vm810_vm2, %vm809_vm1  ;;  %v3433_v47 = vsel %vm810_vm2, 1.0, %v5937_v26 }
 0x115   : > { %v1000_v52 = vpack.c.bf16 %v3433_v47, %v3432_v46  ;;  %v4146_v47 = vmov 1.0|1.0  }
 0x117   : > { %676 = vperm.xlu1 %3927, %v505_v10   ;;  %v515_v10 = vld [vmem:[%s4227_s18 + $0xf0] sm:$0xff] }
 0x118   : > { %679 = vperm.xlu2 %3928, %v506_v11   ;;  %1089 = vperm.xlu0 %3926, %v568_v12  }
 0x11a   : > { %v4333_v13 = vpop.permute.xlu2 %628 }
 0x11b   : > { %vm811_vm15 = vcmp.eq.s32.totalorder %v4333_v13, %v4312_v7  ;;  %v589_v13 = vld [vmem:[%s4232_s21 + $0x140] sm:$0xff] }
 0x11c   : > { %v3434_v3 = vsel %vm811_vm15, 1.0, %v5937_v26 }
 0x11f   : > { %1095 = vperm.xlu1 %3927, %v570_v14  }
 0x120   : > { %682 = vperm.xlu2 %3928, %v507_v15   ;;  %1092 = vperm.xlu0 %3926, %v569_v16   ;;  %v517_v15 = vld [vmem:[%s4227_s18 + $0x100] sm:$0xff]  ;;  %v518_v16 = vld [vmem:[%s4227_s18 + $0x108] sm:$0xff] }
 0x121   : > { %v1033_v17 = vpop.permute.xlu1 %1032 }
 0x122   : > { %v4338_v18 = vpop.permute.xlu2 %1047  ;;  %v617_v19 = vpop.permute.xlu0 %616  ;;  %vm1223_vm4 = vcmp.eq.s32.totalorder %v1033_v17, %v4312_v7  ;;  %v580_v17 = vld [vmem:[%s4232_s21 + $0xf8] sm:$0xff] }
 0x123   : > { %vm807_vm5 = vcmp.eq.s32.totalorder %v617_v19, %v4312_v7  ;;  %v3494_v27 = vsel %vm1223_vm4, 1.0, %v5937_v26  ;;  %vm1228_vm14 = vcmp.eq.s32.totalorder %v4338_v18, %v4312_v7 }
 0x124   : > { %v3430_v29 = vsel %vm807_vm5, 1.0, %v5937_v26  ;;  %v3499_v2 = vsel %vm1228_vm14, 1.0, %v5937_v26 }
 0x127   : > { %1098 = vperm.xlu1 %3927, %v571_v20  }
 0x128   : > { %1101 = vperm.xlu2 %3928, %v572_v21   ;;  %685 = vperm.xlu0 %3926, %v508_v22  }
 0x129   : > { %v1036_v23 = vpop.permute.xlu1 %1035 }
 0x12a   : > { %vm1224_vm6 = vcmp.eq.s32.totalorder %v1036_v23, %v4312_v7  ;;  %v4346_v24 = vpop.permute.xlu2 %1050  ;;  %v620_v25 = vpop.permute.xlu0 %619 }
 0x12b   : > { %v3495_v28 = vsel %vm1224_vm6, 1.0, %v5937_v26  ;;  %vm808_vm7 = vcmp.eq.s32.totalorder %v620_v25, %v4312_v7  ;;  %vm1229_vm4 = vcmp.eq.s32.totalorder %v4346_v24, %v4312_v7 }
 0x12c   : > { %v1415_v30 = vpack.c.bf16 %v3495_v28, %v3494_v27  ;;  %v3431_v31 = vsel %vm808_vm7, 1.0, %v5937_v26  ;;  %vm4353_vm9 = vmpackc.low %vm808_vm7, %vm807_vm5  ;;  %v3500_v24 = vsel %vm1229_vm4, 1.0, %v5937_v26  ;;  %v582_v27 = vld [vmem:[%s4232_s21 + $0x108] sm:$0xff] }
 0x12d   : > { %v999_v34 = vpack.c.bf16 %v3431_v31, %v3430_v29  ;;  %v519_v29 = vld [vmem:[%s4227_s18 + $0x110] sm:$0xff] }
 0x12e   : > { %3566 = vmatmul.msk.bf16.vlgmr.msra.gmra.mxu0 %vm1467_vm8, %v1415_v30  ;;  %v581_v30 = vld [vmem:[%s4232_s21 + $0x100] sm:$0xff] }
 0x12f   : > { %3606 = vmatmul.msk.bf16.vlgmr.msra.gmra.mxu1 %vm1467_vm8, %v999_v34  ;;  %691 = vperm.xlu1 %3927, %v510_v33  }
 0x130   : > { %1104 = vperm.xlu2 %3928, %v573_v35   ;;  %688 = vperm.xlu0 %3926, %v509_v36   ;;  %v583_v35 = vld [vmem:[%s4232_s21 + $0x110] sm:$0xff]  ;;  %v584_v36 = vld [vmem:[%s4232_s21 + $0x118] sm:$0xff] }
 0x131   : > { %v1042_v37 = vpop.permute.xlu1 %1041 }
 0x132   : > { %v4362_v38 = vpop.permute.xlu2 %643  ;;  %v1039_v39 = vpop.permute.xlu0 %1038  ;;  %vm1226_vm10 = vcmp.eq.s32.totalorder %v1042_v37, %v4312_v7  ;;  %v520_v37 = vld [vmem:[%s4227_s18 + $0x118] sm:$0xff] }
 0x133   : > { %vm1225_vm11 = vcmp.eq.s32.totalorder %v1039_v39, %v4312_v7  ;;  %v3497_v43 = vsel %vm1226_vm10, 1.0, %v5937_v26  ;;  %vm816_vm10 = vcmp.eq.s32.totalorder %v4362_v38, %v4312_v7 }
 0x134   : > { %v3496_v44 = vsel %vm1225_vm11, 1.0, %v5937_v26 }
 0x135   : > { %v1416_v50 = vpack.c.bf16 %v3497_v43, %v3496_v44 }
 0x137   : > { %694 = vperm.xlu1 %3927, %v511_v40  }
 0x138   : > { %697 = vperm.xlu2 %3928, %v512_v41   ;;  %1107 = vperm.xlu0 %3926, %v574_v42  }
 0x139   : > { %v1045_v45 = vpop.permute.xlu1 %1044 }
 0x13a   : > { %v4379_v48 = vpop.permute.xlu2 %646  ;;  %v4381_v49 = vpop.permute.xlu0 %631  ;;  %vm1227_vm12 = vcmp.eq.s32.totalorder %v1045_v45, %v4312_v7  ;;  %v3439_v45 = vsel %vm816_vm10, 1.0, %v5937_v26 }
 0x13b   : > { %vm812_vm13 = vcmp.eq.s32.totalorder %v4381_v49, %v4312_v7  ;;  %v3498_v61 = vsel %vm1227_vm12, 1.0, %v5937_v26  ;;  %v3719_v49 = vld [vmem:[%s5926_s5 + $0x20] sm:$0xff] }
 0x13c   : > { %v3435_v63 = vsel %vm812_vm13, 1.0, %v5937_v26  ;;  %v1417_v4 = vpack.c.bf16 %v3499_v2, %v3498_v61  ;;  %v524_v61 = vld [vmem:[%s4227_s18 + $0x138] sm:$0xff] }
 0x13d   : > { %v1001_v6 = vpack.c.bf16 %v3435_v63, %v3434_v3  ;;  %v586_v63 = vld [vmem:[%s4232_s21 + $0x128] sm:$0xff] }
 0x13e   : > { %3567 = vmatmul.msk.bf16.gmra.mxu0 %vm1467_vm8, %v1416_v50  ;;  %v522_v50 = vld [vmem:[%s4227_s18 + $0x128] sm:$0xff] }
 0x13f   : > { %3607 = vmatmul.msk.bf16.gmra.mxu1 %vm1467_vm8, %v1000_v52  ;;  %1113 = vperm.xlu1 %3927, %v576_v51   ;;  %v585_v52 = vld [vmem:[%s4232_s21 + $0x120] sm:$0xff] }
 0x140   : > { %700 = vperm.xlu2 %3928, %v513_v53   ;;  %1110 = vperm.xlu0 %3926, %v575_v54   ;;  %v521_v53 = vld [vmem:[%s4227_s18 + $0x120] sm:$0xff] }
 0x141   : > { %v4388_v55 = vpop.permute.xlu1 %637 }
 0x142   : > { %v4390_v56 = vpop.permute.xlu2 %1065  ;;  %v4392_v57 = vpop.permute.xlu0 %634  ;;  %vm814_vm1 = vcmp.eq.s32.totalorder %v4388_v55, %v4312_v7  ;;  %v3720_v55 = vld [vmem:[%s5926_s5 + $0x28] sm:$0xff] }
 0x143   : > { %vm813_vm2 = vcmp.eq.s32.totalorder %v4392_v57, %v4312_v7  ;;  %v3437_v20 = vsel %vm814_vm1, 1.0, %v5937_v26 }
 0x144   : > { %v3436_v21 = vsel %vm813_vm2, 1.0, %v5937_v26 }
 0x145   : > { %v1002_v28 = vpack.c.bf16 %v3437_v20, %v3436_v21 }
 0x147   : > { %1116 = vperm.xlu1 %3927, %v577_v58  }
 0x148   : > { %1119 = vperm.xlu2 %3928, %v578_v59   ;;  %703 = vperm.xlu0 %3926, %v514_v60   ;;  %v523_v60 = vld [vmem:[%s4227_s18 + $0x130] sm:$0xff] }
 0x149   : > { %v4405_v62 = vpop.permute.xlu1 %640 }
 0x14a   : > { %v4411_v0 = vpop.permute.xlu2 %1068  ;;  %v1054_v1 = vpop.permute.xlu0 %1053  ;;  %vm815_vm7 = vcmp.eq.s32.totalorder %v4405_v62, %v4312_v7 }
 0x14b   : > { %vm1230_vm0 = vcmp.eq.s32.totalorder %v1054_v1, %v4312_v7  ;;  %v3438_v42 = vsel %vm815_vm7, 1.0, %v5937_v26  ;;  %v3722_v1 = vld [vmem:[%s5926_s5 + $0x38] sm:$0xff] }
 0x14c   : > { %v3501_v18 = vsel %vm1230_vm0, 1.0, %v5937_v26  ;;  %v1003_v51 = vpack.c.bf16 %v3439_v45, %v3438_v42  ;;  %2106 = vmatpush.bf16.msra.mxu2 %v3722_v1  ;;  %v530_v42 = vld [vmem:[%s4227_s18 + $0x168] sm:$0xff]  ;;  %v593_v1 = vld [vmem:[%s4232_s21 + $0x160] sm:$0xff] }
 0x14d   : > { %v1418_v25 = vpack.c.bf16 %v3501_v18, %v3500_v24  ;;  %v526_v18 = vld [vmem:[%s4227_s18 + $0x148] sm:$0xff] }
 0x14e   : > { %3568 = vmatmul.msk.bf16.gmra.mxu0 %vm1467_vm8, %v1417_v4 }
 0x14f   : > { %3608 = vmatmul.msk.bf16.gmra.mxu1 %vm1467_vm8, %v1001_v6  ;;  %709 = vperm.xlu1 %3927, %v516_v5  }
 0x150   : > { %1122 = vperm.xlu2 %3928, %v579_v8   ;;  %706 = vperm.xlu0 %3926, %v515_v10   ;;  %v588_v8 = vld [vmem:[%s4232_s21 + $0x138] sm:$0xff]  ;;  %v3721_v10 = vld [vmem:[%s5926_s5 + $0x30] sm:$0xff] }
 0x151   : > { %v1060_v11 = vpop.permute.xlu1 %1059  ;;  %2107 = vmatpush.bf16.msra.mxu2 %v3721_v10 }
 0x152   : > { %v4423_v12 = vpop.permute.xlu2 %661  ;;  %v1057_v14 = vpop.permute.xlu0 %1056  ;;  %vm1232_vm5 = vcmp.eq.s32.totalorder %v1060_v11, %v4312_v7 }
 0x153   : > { %vm1231_vm6 = vcmp.eq.s32.totalorder %v1057_v14, %v4312_v7  ;;  %v3503_v39 = vsel %vm1232_vm5, 1.0, %v5937_v26  ;;  %vm5931_vm11 = vcmp.eq.s32.totalorder %v4423_v12, %v4312_v7  ;;  %v525_v14 = vld [vmem:[%s4227_s18 + $0x140] sm:$0xff] }
 0x154   : > { %v3502_v40 = vsel %vm1231_vm6, 1.0, %v5937_v26 }
 0x155   : > { %v1419_v46 = vpack.c.bf16 %v3503_v39, %v3502_v40  ;;  %2108 = vmatpush.bf16.msra.mxu2 %v3720_v55  ;;  %v529_v39 = vld [vmem:[%s4227_s18 + $0x160] sm:$0xff] }
 0x156   : > { %v3715_v40 = vld [vmem:[%s5926_s5] sm:$0xff] }
 0x157   : > { %712 = vperm.xlu1 %3927, %v517_v15  }
 0x158   : > { %715 = vperm.xlu2 %3928, %v518_v16   ;;  %1125 = vperm.xlu0 %3926, %v580_v17   ;;  %v590_v17 = vld [vmem:[%s4232_s21 + $0x148] sm:$0xff] }
 0x159   : > { %v4436_v19 = vpop.permute.xlu1 %1062  ;;  %2109 = vmatpush.bf16.msra.mxu2 %v3719_v49  ;;  %v534_v49 = vld [vmem:[%s4227_s18 + $0x188] sm:$0xff] }
 0x15a   : > { %v4446_v22 = vpop.permute.xlu2 %664  ;;  %v4448_v23 = vpop.permute.xlu0 %649 }
 0x15b   : > { %vm818_vm6 = vcmp.eq.s32.totalorder %v4448_v23, %v4312_v7 }
 0x15c   : > { %v3441_v38 = vsel %vm818_vm6, 1.0, %v5937_v26 }
 0x15e   : > { %3569 = vmatmul.msk.bf16.gmra.mxu0 %vm1467_vm8, %v1418_v25 }
 0x15f   : > { %3609 = vmatmul.msk.bf16.gmra.mxu1 %vm1467_vm8, %v1002_v28  ;;  %1131 = vperm.xlu1 %3927, %v582_v27   ;;  %v528_v27 = vld [vmem:[%s4227_s18 + $0x158] sm:$0xff]  ;;  %v3717_v28 = vld [vmem:[%s5926_s5 + $0x10] sm:$0xff] }
 0x160   : > { %718 = vperm.xlu2 %3928, %v519_v29   ;;  %1128 = vperm.xlu0 %3926, %v581_v30   ;;  %v591_v30 = vld [vmem:[%s4232_s21 + $0x150] sm:$0xff] }
 0x161   : > { %v4456_v31 = vpop.permute.xlu1 %655 }
 0x162   : > { %v4458_v33 = vpop.permute.xlu2 %1083  ;;  %v4460_v34 = vpop.permute.xlu0 %652  ;;  %vm820_vm0 = vcmp.eq.s32.totalorder %v4456_v31, %v4312_v7  ;;  %v527_v31 = vld [vmem:[%s4227_s18 + $0x150] sm:$0xff] }
 0x163   : > { %vm5933_vm4 = vcmp.eq.s32.totalorder %v4460_v34, %v4312_v7 }
 0x164   : > { %vm3859_vm5 = vmpackc.low %vm820_vm0, %vm5933_vm4 }
 0x165   : > { %vm3863_vm4 = vmpackc.low %vm816_vm10, %vm815_vm7 }
 0x166   : > { %vm3865_vm7 = vmpackc.low %vm814_vm1, %vm813_vm2 }
 0x167   : > { %1134 = vperm.xlu1 %3927, %v583_v35   ;;  %vm3867_vm1 = vmpackc.low %vm812_vm13, %vm811_vm15  ;;  %vm1235_vm15 = vcmp.eq.s32.totalorder %v4411_v0, %v4312_v7  ;;  %v3443_v0 = vsel %vm820_vm0, 1.0, %v5937_v26 }
 0x168   : > { %1137 = vperm.xlu2 %3928, %v584_v36   ;;  %721 = vperm.xlu0 %3926, %v520_v37   ;;  %v3506_v32 = vsel %vm1235_vm15, 1.0, %v5937_v26 }
 0x169   : > { %v4473_v41 = vpop.permute.xlu1 %658 }
 0x16a   : > { %vm5932_vm12 = vcmp.eq.s32.totalorder %v4473_v41, %v4312_v7  ;;  %v4483_v43 = vpop.permute.xlu2 %1086  ;;  %v4485_v44 = vpop.permute.xlu0 %1071  ;;  %vm5956_vm10 = vcmp.eq.s32.totalorder %v4473_v41, %v4312_v7 }
 0x16b   : > { %vm3857_vm14 = vmpackc.low %vm5931_vm11, %vm5932_vm12  ;;  %vm1234_vm12 = vcmp.eq.s32.totalorder %v4390_v56, %v4312_v7  ;;  %vm1236_vm13 = vcmp.eq.s32.totalorder %v4485_v44, %v4312_v7  ;;  %v592_v44 = vld [vmem:[%s4232_s21 + $0x158] sm:$0xff]  ;;  %vm1241_vm15 = vcmp.eq.s32.totalorder %v4483_v43, %v4312_v7 }
 0x16c   : > { %3858 = vmatpush.lsf.msk.bf16.msk.msrb.mxu0 %vm3857_vm14, %v4146_v47  ;;  %vm817_vm14 = vcmp.eq.s32.totalorder %v4379_v48, %v4312_v7  ;;  %v3505_v4 = vsel %vm1234_vm12, 1.0, %v5937_v26  ;;  %v587_v48 = vld [vmem:[%s4232_s21 + $0x130] sm:$0xff]  ;;  %v3507_v9 = vsel %vm1236_vm13, 1.0, %v5937_v26 }
 0x16d   : > { %vm3861_vm11 = vmpackc.low %vm818_vm6, %vm817_vm14  ;;  %v3440_v5 = vsel %vm817_vm14, 1.0, %v5937_v26  ;;  %v1421_v25 = vpack.c.bf16 %v3507_v9, %v3506_v32  ;;  %vm823_vm6 = vcmp.eq.s32.totalorder %v4446_v22, %v4312_v7 }
 0x16e   : > { %3570 = vmatmul.msk.bf16.gmra.mxu0 %vm1467_vm8, %v1419_v46  ;;  %v1004_v11 = vpack.c.bf16 %v3441_v38, %v3440_v5  ;;  %v595_v38 = vld [vmem:[%s4232_s21 + $0x170] sm:$0xff]  ;;  %v532_v5 = vld [vmem:[%s4227_s18 + $0x178] sm:$0xff] }
 0x16f   : > { %3610 = vmatmul.msk.bf16.gmra.mxu1 %vm1467_vm8, %v1003_v51  ;;  %727 = vperm.xlu1 %3927, %v522_v50   ;;  %v3444_v51 = vsel %vm5956_vm10, 1.0, %v5937_v26 }
 0x170   : > { %1140 = vperm.xlu2 %3928, %v585_v52   ;;  %724 = vperm.xlu0 %3926, %v521_v53  }
 0x171   : > { %3860 = vmatpush.lsf.msk.bf16.msk.msrb.mxu0 %vm3859_vm5, %v4146_v47  ;;  %v4516_v54 = vpop.permute.xlu1 %1077  ;;  %vm1233_vm5 = vcmp.eq.s32.totalorder %v4436_v19, %v4312_v7  ;;  %v3718_v19 = vld [vmem:[%s5926_s5 + $0x18] sm:$0xff] }
 0x172   : > { %v4518_v58 = vpop.permute.xlu2 %679  ;;  %v4520_v59 = vpop.permute.xlu0 %1074  ;;  %v3504_v2 = vsel %vm1233_vm5, 1.0, %v5937_v26  ;;  %2110 = vmatpush.bf16.msra.mxu2 %v3718_v19  ;;  %v533_v19 = vld [vmem:[%s4227_s18 + $0x180] sm:$0xff] }
 0x173   : > { %v1420_v6 = vpack.c.bf16 %v3505_v4, %v3504_v2  ;;  %vm1237_vm2 = vcmp.eq.s32.totalorder %v4520_v59, %v4312_v7  ;;  %v596_v4 = vld [vmem:[%s4232_s21 + $0x178] sm:$0xff] }
 0x174   : > { %v3508_v46 = vsel %vm1237_vm2, 1.0, %v5937_v26 }
 0x175   : > { %3862 = vmatpush.lsf.msk.bf16.msk.msrb.mxu0 %vm3861_vm11, %v4146_v47  ;;  %vm5957_vm11 = vcmp.eq.s32.totalorder %v4423_v12, %v4312_v7 }
 0x176   : > { %2111 = vmatpush.bf16.msra.mxu2 %v3717_v28 }
 0x177   : > { %730 = vperm.xlu1 %3927, %v523_v60   ;;  %v594_v60 = vld [vmem:[%s4232_s21 + $0x168] sm:$0xff] }
 0x178   : > { %733 = vperm.xlu2 %3928, %v524_v61   ;;  %1143 = vperm.xlu0 %3926, %v586_v63   ;;  %v531_v63 = vld [vmem:[%s4227_s18 + $0x170] sm:$0xff] }
 0x179   : > { %3864 = vmatpush.lsf.msk.bf16.msk.msrb.mxu0 %vm3863_vm4, %v4146_v47  ;;  %v4549_v56 = vpop.permute.xlu1 %1080  ;;  %vm1240_vm4 = vcmp.eq.s32.totalorder %v4458_v33, %v4312_v7 }
 0x17a   : > { %v4555_v62 = vpop.permute.xlu2 %682  ;;  %v4557_v3 = vpop.permute.xlu0 %667  ;;  %vm1239_vm12 = vcmp.eq.s32.totalorder %v4549_v56, %v4312_v7  ;;  %v3511_v33 = vsel %vm1240_vm4, 1.0, %v5937_v26 }
 0x17b   : > { %vm824_vm0 = vcmp.eq.s32.totalorder %v4557_v3, %v4312_v7 }
 0x17c   : > { %v3447_v56 = vsel %vm824_vm0, 1.0, %v5937_v26 }
 0x17d   : > { %3866 = vmatpush.lsf.msk.bf16.msk.msrb.mxu0 %vm3865_vm7, %v4146_v47 }
 0x17e   : > { %3571 = vmatmul.msk.bf16.gmra.mxu0 %vm1467_vm8, %v1420_v6  ;;  %v3510_v6 = vsel %vm1239_vm12, 1.0, %v5937_v26 }
 0x17f   : > { %3611 = vmatmul.msk.bf16.gmra.mxu1 %vm1467_vm8, %v1004_v11  ;;  %1149 = vperm.xlu1 %3927, %v588_v8   ;;  %v1423_v55 = vpack.c.bf16 %v3511_v33, %v3510_v6  ;;  %v537_v33 = vld [vmem:[%s4227_s18 + $0x1a0] sm:$0xff] }
 0x180   : > { %736 = vperm.xlu2 %3928, %v525_v14   ;;  %1146 = vperm.xlu0 %3926, %v587_v48   ;;  %v3446_v48 = vsel %vm823_vm6, 1.0, %v5937_v26 }
 0x181   : > { %3868 = vmatpush.lsf.msk.bf16.msk.msrb.mxu0 %vm3867_vm1, %v4146_v47  ;;  %v4589_v57 = vpop.permute.xlu1 %673 }
 0x182   : > { %v4591_v15 = vpop.permute.xlu2 %1101  ;;  %v4593_v16 = vpop.permute.xlu0 %670  ;;  %vm826_vm1 = vcmp.eq.s32.totalorder %v4589_v57, %v4312_v7  ;;  %v543_v57 = vld [vmem:[%s4227_s18 + $0x1d0] sm:$0xff] }
 0x183   : > { %vm825_vm13 = vcmp.eq.s32.totalorder %v4593_v16, %v4312_v7  ;;  %v605_v16 = vld [vmem:[%s4232_s21 + $0x1c0] sm:$0xff] }
 0x184   : > { %v3448_v43 = vsel %vm825_vm13, 1.0, %v5937_v26 }
 0x185   : > { %3870 = vmatpush.lsf.msk.bf16.msk.msrb.mxu0 %vm4326_vm3, %v4146_v47  ;;  %vm5955_vm3 = vcmp.eq.s32.totalorder %v4460_v34, %v4312_v7  ;;  %v3716_v34 = vld [vmem:[%s5926_s5 + $0x8] sm:$0xff] }
 0x186   : > { %v3442_v21 = vsel %vm5955_vm3, 1.0, %v5937_v26  ;;  %2112 = vmatpush.bf16.msra.mxu2 %v3716_v34 }
 0x187   : > { %1152 = vperm.xlu1 %3927, %v589_v13   ;;  %v1005_v29 = vpack.c.bf16 %v3443_v0, %v3442_v21 }
 0x188   : > { %1155 = vperm.xlu2 %3928, %v590_v17   ;;  %739 = vperm.xlu0 %3926, %v526_v18   ;;  %v1007_v17 = vpack.c.bf16 %v3447_v56, %v3446_v48  ;;  %v597_v18 = vld [vmem:[%s4232_s21 + $0x180] sm:$0xff] }
 0x189   : > { %3872 = vmatpush.lsf.msk.bf16.msk.msrb.mxu0 %vm4353_vm9, %v4146_v47  ;;  %v4615_v20 = vpop.permute.xlu1 %676  ;;  %vm1238_vm9 = vcmp.eq.s32.totalorder %v4516_v54, %v4312_v7  ;;  %v3445_v54 = vsel %vm5957_vm11, 1.0, %v5937_v26 }
 0x18a   : > { %v4625_v23 = vpop.permute.xlu2 %1104  ;;  %v4627_v24 = vpop.permute.xlu0 %1089  ;;  %2113 = vmatpush.bf16.msra.mxu2 %v3715_v40  ;;  %v3509_v45 = vsel %vm1238_vm9, 1.0, %v5937_v26  ;;  %v1006_v61 = vpack.c.bf16 %v3445_v54, %v3444_v51  ;;  %v598_v40 = vld [vmem:[%s4232_s21 + $0x188] sm:$0xff]  ;;  %v3512_v54 = vsel %vm1241_vm15, 1.0, %v5937_v26  ;;  %vm827_vm15 = vcmp.eq.s32.totalorder %v4615_v20, %v4312_v7 }
 0x18b   : > { %v1422_v59 = vpack.c.bf16 %v3509_v45, %v3508_v46  ;;  %vm1242_vm7 = vcmp.eq.s32.totalorder %v4627_v24, %v4312_v7  ;;  %v3449_v45 = vsel %vm826_vm1, 1.0, %v5937_v26 }
 0x18c   : > { %v3513_v24 = vsel %vm1242_vm7, 1.0, %v5937_v26  ;;  %v1008_v6 = vpack.c.bf16 %v3449_v45, %v3448_v43  ;;  %vm828_vm7 = vcmp.eq.s32.totalorder %v4518_v58, %v4312_v7 }
 0x18d   : > { %3836 = vllmr.4.mxu0 }
 0x18e   : > { %3572 = vmatmul.msk.bf16.gmra.mxu0 %vm1467_vm8, %v1421_v25 }
 0x18f   : > { %3612 = vmatmul.msk.bf16.gmra.mxu1 %vm1467_vm8, %v1005_v29  ;;  %745 = vperm.xlu1 %3927, %v528_v27   ;;  %v535_v29 = vld [vmem:[%s4227_s18 + $0x190] sm:$0xff] }
 0x190   : > { %1158 = vperm.xlu2 %3928, %v591_v30   ;;  %742 = vperm.xlu0 %3926, %v527_v31  }
 0x191   : > { %v4641_v35 = vpop.permute.xlu1 %1095 }
 0x192   : > { %v4643_v36 = vpop.permute.xlu2 %697  ;;  %v4645_v37 = vpop.permute.xlu0 %1092 }
 0x197   : > { %748 = vperm.xlu1 %3927, %v529_v39   ;;  %v536_v39 = vld [vmem:[%s4227_s18 + $0x198] sm:$0xff] }
 0x198   : > { %751 = vperm.xlu2 %3928, %v530_v42   ;;  %1161 = vperm.xlu0 %3926, %v592_v44  }
 0x199   : > { %v4659_v50 = vpop.permute.xlu1 %1098 }
 0x19a   : > { %v4665_v52 = vpop.permute.xlu2 %700  ;;  %v4667_v53 = vpop.permute.xlu0 %685 }
 0x19b   : > { %vm835_vm9 = vcmp.eq.s32.totalorder %v4665_v52, %v4312_v7  ;;  %v3451_v52 = vsel %vm828_vm7, 1.0, %v5937_v26 }
 0x19e   : > { %3573 = vmatmul.msk.bf16.gmra.mxu0 %vm1467_vm8, %v1422_v59 }
 0x19f   : > { %3613 = vmatmul.msk.bf16.gmra.mxu1 %vm1467_vm8, %v1006_v61  ;;  %1167 = vperm.xlu1 %3927, %v594_v60  }
 0x1a0   : > { %754 = vperm.xlu2 %3928, %v531_v63   ;;  %1164 = vperm.xlu0 %3926, %v593_v1   ;;  %v1424_v63 = vpack.c.bf16 %v3513_v24, %v3512_v54  ;;  %v4773_v1 = vsel %vm835_vm9, 1.0, %v5937_v26  ;;  %v3450_v24 = vsel %vm827_vm15, 1.0, %v5937_v26 }
 0x1a1   : > { %v4678_v41 = vpop.permute.xlu1 %691 }
 0x1a2   : > { %v4680_v2 = vpop.permute.xlu2 %1119  ;;  %v4682_v12 = vpop.permute.xlu0 %688 }
 0x1a3   : > { %vm1252_vm3 = vcmp.eq.s32.totalorder %v4680_v2, %v4312_v7 }
 0x1a4   : > { %v4763_v59 = vsel %vm1252_vm3, 1.0, %v5937_v26 }
 0x1a7   : > { %1170 = vperm.xlu1 %3927, %v595_v38  }
 0x1a8   : > { %1173 = vperm.xlu2 %3928, %v596_v4   ;;  %757 = vperm.xlu0 %3926, %v532_v5   ;;  %v600_v5 = vld [vmem:[%s4232_s21 + $0x198] sm:$0xff] }
 0x1a9   : > { %v4696_v8 = vpop.permute.xlu1 %694 }
 0x1aa   : > { %v4702_v10 = vpop.permute.xlu2 %1122  ;;  %v4704_v11 = vpop.permute.xlu0 %1107 }
 0x1ab   : > { %v1573_v14 = vpop.f32.mrf.mxu0 }
 0x1ac   : > { %v1850_v13 = vpop.f32.mrf.mxu1 }
 0x1ad   : > { %v4727_v30 = vadd.f32 %v1850_v13, %v1573_v14  ;;  %v599_v14 = vld [vmem:[%s4232_s21 + $0x190] sm:$0xff] }
 0x1ae   : > { %3574 = vmatmul.msk.bf16.gmra.mxu0 %vm1467_vm8, %v1423_v55 }
 0x1af   : > { %3614 = vmatmul.msk.bf16.gmra.mxu1 %vm1467_vm8, %v1007_v17  ;;  %763 = vperm.xlu1 %3927, %v534_v49  }
 0x1b0   : > { %1176 = vperm.xlu2 %3928, %v597_v18   ;;  %760 = vperm.xlu0 %3926, %v533_v19  }
 0x1b1   : > { %v1114_v9 = vpop.permute.xlu1 %1113 }
 0x1b2   : > { %vm1250_vm14 = vcmp.eq.s32.totalorder %v1114_v9, %v4312_v7  ;;  %v4717_v0 = vpop.permute.xlu2 %715  ;;  %v1111_v21 = vpop.permute.xlu0 %1110  ;;  %v601_v9 = vld [vmem:[%s4232_s21 + $0x1a0] sm:$0xff] }
 0x1b3   : > { %v4720_v32 = vsel %vm1250_vm14, 1.0, %v5937_v26  ;;  %vm1249_vm5 = vcmp.eq.s32.totalorder %v1111_v21, %v4312_v7  ;;  %v1575_v25 = vpop.f32.mrf.mxu0  ;;  %vm1244_vm14 = vcmp.eq.s32.totalorder %v4641_v35, %v4312_v7  ;;  %vm840_vm3 = vcmp.eq.s32.totalorder %v4717_v0, %v4312_v7 }
 0x1b4   : > { %v4724_v27 = vsel %vm1249_vm5, 1.0, %v5937_v26  ;;  %v1852_v28 = vpop.f32.mrf.mxu1  ;;  %vm1243_vm5 = vcmp.eq.s32.totalorder %v4645_v37, %v4312_v7  ;;  %v3515_v35 = vsel %vm1244_vm14, 1.0, %v5937_v26  ;;  %v3463_v43 = vsel %vm840_vm3, 1.0, %v5937_v26 }
 0x1b5   : > { %v1428_v31 = vpack.c.bf16 %v4720_v32, %v4724_v27  ;;  %v4731_v34 = vadd.f32 %v1852_v28, %v1575_v25  ;;  %v3514_v37 = vsel %vm1243_vm5, 1.0, %v5937_v26  ;;  %vm832_vm5 = vcmp.eq.s32.totalorder %v4678_v41, %v4312_v7 }
 0x1b6   : > { %vm831_vm3 = vcmp.eq.s32.totalorder %v4682_v12, %v4312_v7 }
 0x1b7   : > { %766 = vperm.xlu1 %3927, %v535_v29   ;;  %v2010_v42 = vpack.c.bf16 %v4731_v34, %v4727_v30  ;;  %v602_v29 = vld [vmem:[%s4232_s21 + $0x1a8] sm:$0xff] }
 0x1b8   : > { %769 = vperm.xlu2 %3928, %v536_v39   ;;  %1179 = vperm.xlu0 %3926, %v598_v40   ;;  %v538_v39 = vld [vmem:[%s4227_s18 + $0x1a8] sm:$0xff] }
 0x1b9   : > { %2114 = vmatmul.bf16.vlgmr.msra.gmra.mxu2 %v2010_v42  ;;  %v1117_v44 = vpop.permute.xlu1 %1116 }
 0x1ba   : > { %vm1251_vm2 = vcmp.eq.s32.totalorder %v1117_v44, %v4312_v7  ;;  %v4759_v46 = vpop.permute.xlu2 %718  ;;  %v704_v51 = vpop.permute.xlu0 %703 }
 0x1bb   : > { %v4766_v60 = vsel %vm1251_vm2, 1.0, %v5937_v26  ;;  %vm836_vm10 = vcmp.eq.s32.totalorder %v704_v51, %v4312_v7  ;;  %v1578_v61 = vpop.f32.mrf.mxu0 }
 0x1bc   : > { %v1429_v2 = vpack.c.bf16 %v4763_v59, %v4766_v60  ;;  %v4780_v38 = vsel %vm836_vm10, 1.0, %v5937_v26  ;;  %v1855_v4 = vpop.f32.mrf.mxu1  ;;  %vm3875_vm2 = vmpackc.low %vm836_vm10, %vm835_vm9  ;;  %vm5934_vm10 = vcmp.eq.s32.totalorder %v4643_v36, %v4312_v7 }
 0x1bd   : > { %v1013_v56 = vpack.c.bf16 %v4780_v38, %v4773_v1  ;;  %v4800_v21 = vadd.f32 %v1855_v4, %v1578_v61  ;;  %v1425_v61 = vpack.c.bf16 %v3515_v35, %v3514_v37  ;;  %v541_v35 = vld [vmem:[%s4227_s18 + $0x1c0] sm:$0xff]  ;;  %v3730_v1 = vld [vmem:[%s5927_s6 + $0x38] sm:$0xff] }
 0x1be   : > { %3575 = vmatmul.msk.bf16.gmra.mxu0 %vm1467_vm8, %v1424_v63  ;;  %2755 = vmatpush.bf16.msra.mxu3 %v3730_v1  ;;  %v3728_v1 = vld [vmem:[%s5927_s6 + $0x28] sm:$0xff] }
 0x1bf   : > { %3615 = vmatmul.msk.bf16.gmra.mxu1 %vm1467_vm8, %v1008_v6  ;;  %1185 = vperm.xlu1 %3927, %v600_v5   ;;  %v540_v6 = vld [vmem:[%s4227_s18 + $0x1b8] sm:$0xff] }
 0x1c0   : > { %772 = vperm.xlu2 %3928, %v537_v33   ;;  %1182 = vperm.xlu0 %3926, %v599_v14   ;;  %v1009_v33 = vpack.c.bf16 %v3451_v52, %v3450_v24  ;;  %v542_v24 = vld [vmem:[%s4227_s18 + $0x1c8] sm:$0xff] }
 0x1c1   : > { %v710_v48 = vpop.permute.xlu1 %709 }
 0x1c2   : > { %vm838_vm11 = vcmp.eq.s32.totalorder %v710_v48, %v4312_v7  ;;  %v4790_v55 = vpop.permute.xlu2 %1137  ;;  %v707_v13 = vpop.permute.xlu0 %706  ;;  %v539_v48 = vld [vmem:[%s4227_s18 + $0x1b0] sm:$0xff] }
 0x1c3   : > { %v4793_v49 = vsel %vm838_vm11, 1.0, %v5937_v26  ;;  %vm837_vm12 = vcmp.eq.s32.totalorder %v707_v13, %v4312_v7  ;;  %v1580_v17 = vpop.f32.mrf.mxu0 }
 0x1c4   : > { %v4797_v18 = vsel %vm837_vm12, 1.0, %v5937_v26  ;;  %v1857_v19 = vpop.f32.mrf.mxu1  ;;  %vm3873_vm4 = vmpackc.low %vm838_vm11, %vm837_vm12  ;;  %vm5935_vm11 = vcmp.eq.s32.totalorder %v4696_v8, %v4312_v7  ;;  %vm1253_vm12 = vcmp.eq.s32.totalorder %v4702_v10, %v4312_v7  ;;  %v603_v10 = vld [vmem:[%s4232_s21 + $0x1b0] sm:$0xff] }
 0x1c5   : > { %v1014_v25 = vpack.c.bf16 %v4793_v49, %v4797_v18  ;;  %v4804_v28 = vadd.f32 %v1857_v19, %v1580_v17  ;;  %3874 = vmatpush.lsf.msk.bf16.msk.msrb.mxu1 %vm3873_vm4, %v4146_v47  ;;  %vm3877_vm14 = vmpackc.low %vm5934_vm10, %vm5935_vm11  ;;  %v4862_v0 = vsel %vm1253_vm12, 1.0, %v5937_v26  ;;  %vm830_vm12 = vcmp.eq.s32.totalorder %v4667_v53, %v4312_v7 }
 0x1c6   : > { %vm3883_vm10 = vmpackc.low %vm828_vm7, %vm827_vm15  ;;  %vm841_vm11 = vcmp.eq.s32.totalorder %v4759_v46, %v4312_v7  ;;  %v3453_v20 = vsel %vm830_vm12, 1.0, %v5937_v26 }
 0x1c7   : > { %1188 = vperm.xlu1 %3927, %v601_v9   ;;  %v2011_v40 = vpack.c.bf16 %v4804_v28, %v4800_v21 }
 0x1c8   : > { %1191 = vperm.xlu2 %3928, %v602_v29   ;;  %775 = vperm.xlu0 %3926, %v538_v39  }
 0x1c9   : > { %2119 = vmatmul.bf16.gmra.mxu2 %v2011_v40  ;;  %3876 = vmatpush.lsf.msk.bf16.msk.msrb.mxu1 %vm3875_vm2, %v4146_v47  ;;  %v713_v42 = vpop.permute.xlu1 %712  ;;  %vm3879_vm2 = vmpackc.low %vm832_vm5, %vm831_vm3 }
 0x1ca   : > { %vm839_vm9 = vcmp.eq.s32.totalorder %v713_v42, %v4312_v7  ;;  %v4842_v44 = vpop.permute.xlu2 %1140  ;;  %v1126_v45 = vpop.permute.xlu0 %1125 }
 0x1cb   : > { %v3462_v51 = vsel %vm839_vm9, 1.0, %v5937_v26  ;;  %vm1254_vm4 = vcmp.eq.s32.totalorder %v1126_v45, %v4312_v7  ;;  %v1583_v54 = vpop.f32.mrf.mxu0  ;;  %v604_v45 = vld [vmem:[%s4232_s21 + $0x1b8] sm:$0xff] }
 0x1cc   : > { %v4864_v63 = vpack.c.bf16 %v3463_v43, %v3462_v51  ;;  %v4867_v4 = vsel %vm1254_vm4, 1.0, %v5937_v26  ;;  %v1860_v5 = vpop.f32.mrf.mxu1  ;;  %vm829_vm4 = vcmp.eq.s32.totalorder %v4555_v62, %v4312_v7 }
 0x1cd   : > { %v1430_v14 = vpack.c.bf16 %v4867_v4, %v4862_v0  ;;  %3878 = vmatpush.lsf.msk.bf16.msk.msrb.mxu1 %vm3877_vm14, %v4146_v47  ;;  %v4909_v37 = vadd.f32 %v1860_v5, %v1583_v54  ;;  %v3452_v58 = vsel %vm829_vm4, 1.0, %v5937_v26 }
 0x1ce   : > { %3576 = vmatmul.msk.bf16.gmra.mxu0 %vm1467_vm8, %v1425_v61 }
 0x1cf   : > { %3616 = vmatmul.msk.bf16.gmra.mxu1 %vm1467_vm8, %v1009_v33  ;;  %781 = vperm.xlu1 %3927, %v540_v6   ;;  %v3464_v6 = vsel %vm841_vm11, 1.0, %v5937_v26 }
 0x1d0   : > { %1194 = vperm.xlu2 %3928, %v603_v10   ;;  %778 = vperm.xlu0 %3926, %v539_v48  }
 0x1d1   : > { %3880 = vmatpush.lsf.msk.bf16.msk.msrb.mxu1 %vm3879_vm2, %v4146_v47  ;;  %v1132_v13 = vpop.permute.xlu1 %1131  ;;  %vm3881_vm2 = vmpackc.low %vm830_vm12, %vm829_vm4  ;;  %vm1259_vm4 = vcmp.eq.s32.totalorder %v4842_v44, %v4312_v7 }
 0x1d2   : > { %vm1256_vm9 = vcmp.eq.s32.totalorder %v1132_v13, %v4312_v7  ;;  %v4891_v17 = vpop.permute.xlu2 %733  ;;  %v1129_v19 = vpop.permute.xlu0 %1128  ;;  %v606_v13 = vld [vmem:[%s4232_s21 + $0x1c8] sm:$0xff]  ;;  %v5025_v12 = vsel %vm1259_vm4, 1.0, %v5937_v26 }
 0x1d3   : > { %v4896_v9 = vsel %vm1256_vm9, 1.0, %v5937_v26  ;;  %vm1255_vm14 = vcmp.eq.s32.totalorder %v1129_v19, %v4312_v7  ;;  %v1585_v29 = vpop.f32.mrf.mxu0  ;;  %vm1245_vm9 = vcmp.eq.s32.totalorder %v4659_v50, %v4312_v7  ;;  %v1010_v19 = vpack.c.bf16 %v3453_v20, %v3452_v58  ;;  %v608_v58 = vld [vmem:[%s4232_s21 + $0x1d8] sm:$0xff] }
 0x1d4   : > { %v4906_v39 = vsel %vm1255_vm14, 1.0, %v5937_v26  ;;  %v1862_v40 = vpop.f32.mrf.mxu1  ;;  %vm1246_vm14 = vcmp.eq.s32.totalorder %v4591_v15, %v4312_v7  ;;  %v3516_v50 = vsel %vm1245_vm9, 1.0, %v5937_v26  ;;  %v544_v20 = vld [vmem:[%s4227_s18 + $0x1d8] sm:$0xff]  ;;  %vm846_vm12 = vcmp.eq.s32.totalorder %v4891_v17, %v4312_v7 }
 0x1d5   : > { %v1431_v42 = vpack.c.bf16 %v4896_v9, %v4906_v39  ;;  %v4913_v52 = vadd.f32 %v1862_v40, %v1585_v29  ;;  %3882 = vmatpush.lsf.msk.bf16.msk.msrb.mxu1 %vm3881_vm2, %v4146_v47  ;;  %vm1258_vm2 = vcmp.eq.s32.totalorder %v4790_v55, %v4312_v7  ;;  %v3517_v54 = vsel %vm1246_vm14, 1.0, %v5937_v26 }
 0x1d6   : > { %v4949_v61 = vsel %vm1258_vm2, 1.0, %v5937_v26  ;;  %v1426_v5 = vpack.c.bf16 %v3517_v54, %v3516_v50 }
 0x1d7   : > { %784 = vperm.xlu1 %3927, %v541_v35   ;;  %v2012_v43 = vpack.c.bf16 %v4913_v52, %v4909_v37 }
 0x1d8   : > { %787 = vperm.xlu2 %3928, %v542_v24   ;;  %1197 = vperm.xlu0 %3926, %v604_v45  }
 0x1d9   : > { %2124 = vmatmul.bf16.gmra.mxu2 %v2012_v43  ;;  %3884 = vmatpush.lsf.msk.bf16.msk.msrb.mxu1 %vm3883_vm10, %v4146_v47  ;;  %v1135_v15 = vpop.permute.xlu1 %1134  ;;  %vm3885_vm10 = vmpackc.low %vm826_vm1, %vm825_vm13  ;;  %v607_v43 = vld [vmem:[%s4232_s21 + $0x1d0] sm:$0xff] }
 0x1da   : > { %vm1257_vm7 = vcmp.eq.s32.totalorder %v1135_v15, %v4312_v7  ;;  %v4945_v55 = vpop.permute.xlu2 %736  ;;  %v722_v51 = vpop.permute.xlu0 %721  ;;  %vm3887_vm1 = vmpackc.low %vm824_vm0, %vm823_vm6  ;;  %vm1248_vm0 = vcmp.eq.s32.totalorder %v4704_v11, %v4312_v7  ;;  %vm1247_vm6 = vcmp.eq.s32.totalorder %v4625_v23, %v4312_v7  ;;  %v3455_v11 = vsel %vm832_vm5, 1.0, %v5937_v26 }
 0x1db   : > { %v4952_v62 = vsel %vm1257_vm7, 1.0, %v5937_v26  ;;  %vm842_vm15 = vcmp.eq.s32.totalorder %v722_v51, %v4312_v7  ;;  %v1588_v53 = vpop.f32.mrf.mxu0  ;;  %v3519_v54 = vsel %vm1248_vm0, 1.0, %v5937_v26  ;;  %v3454_v23 = vsel %vm831_vm3, 1.0, %v5937_v26 }
 0x1dc   : > { %v1432_v33 = vpack.c.bf16 %v4949_v61, %v4952_v62  ;;  %v3465_v10 = vsel %vm842_vm15, 1.0, %v5937_v26  ;;  %v1865_v48 = vpop.f32.mrf.mxu1  ;;  %vm847_vm7 = vcmp.eq.s32.totalorder %v4945_v55, %v4312_v7  ;;  %vm5958_vm15 = vcmp.eq.s32.totalorder %v4696_v8, %v4312_v7 }
 0x1dd   : > { %v4969_v29 = vpack.c.bf16 %v3465_v10, %v3464_v6  ;;  %3886 = vmatpush.lsf.msk.bf16.msk.msrb.mxu1 %vm3885_vm10, %v4146_v47  ;;  %v4990_v50 = vadd.f32 %v1865_v48, %v1588_v53  ;;  %v3469_v6 = vsel %vm846_vm12, 1.0, %v5937_v26 }
 0x1de   : > { %3577 = vmatmul.msk.bf16.gmra.mxu0 %vm1467_vm8, %v1426_v5  ;;  %v3518_v5 = vsel %vm1247_vm6, 1.0, %v5937_v26 }
 0x1df   : > { %3617 = vmatmul.msk.bf16.gmra.mxu1 %vm1467_vm8, %v1010_v19  ;;  %1203 = vperm.xlu1 %3927, %v606_v13   ;;  %v1427_v48 = vpack.c.bf16 %v3519_v54, %v3518_v5  ;;  %v548_v5 = vld [vmem:[%s4227_s18 + $0x1f8] sm:$0xff] }
 0x1e0   : > { %790 = vperm.xlu2 %3928, %v543_v57   ;;  %1200 = vperm.xlu0 %3926, %v605_v16   ;;  %v546_v16 = vld [vmem:[%s4227_s18 + $0x1e8] sm:$0xff] }
 0x1e1   : > { %3888 = vmatpush.lsf.msk.bf16.msk.msrb.mxu1 %vm3887_vm1, %v4146_v47  ;;  %v728_v46 = vpop.permute.xlu1 %727 }
 0x1e2   : > { %vm844_vm13 = vcmp.eq.s32.totalorder %v728_v46, %v4312_v7  ;;  %v4984_v40 = vpop.permute.xlu2 %1155  ;;  %v725_v35 = vpop.permute.xlu0 %724  ;;  %v1011_v46 = vpack.c.bf16 %v3455_v11, %v3454_v23 }
 0x1e3   : > { %v3467_v24 = vsel %vm844_vm13, 1.0, %v5937_v26  ;;  %vm843_vm11 = vcmp.eq.s32.totalorder %v725_v35, %v4312_v7  ;;  %v1590_v22 = vpop.f32.mrf.mxu0  ;;  %vm1264_vm2 = vcmp.eq.s32.totalorder %v4984_v40, %v4312_v7  ;;  %vm5959_vm13 = vcmp.eq.s32.totalorder %v4643_v36, %v4312_v7 }
 0x1e4   : > { %v3466_v3 = vsel %vm843_vm11, 1.0, %v5937_v26  ;;  %v1867_v45 = vpop.f32.mrf.mxu1  ;;  %v3457_v8 = vsel %vm5959_vm13, 1.0, %v5937_v26 }
 0x1e5   : > { %v4992_v47 = vpack.c.bf16 %v3467_v24, %v3466_v3  ;;  %v4994_v15 = vadd.f32 %v1867_v45, %v1590_v22  ;;  %v609_v24 = vld [vmem:[%s4232_s21 + $0x1e0] sm:$0xff] }
 0x1e6   : > { %v545_v22 = vld [vmem:[%s4227_s18 + $0x1e0] sm:$0xff] }
 0x1e7   : > { %1206 = vperm.xlu1 %3927, %v607_v43   ;;  %v2013_v51 = vpack.c.bf16 %v4994_v15, %v4990_v50 }
 0x1e8   : > { %1209 = vperm.xlu2 %3928, %v608_v58   ;;  %793 = vperm.xlu0 %3926, %v544_v20  }
 0x1e9   : > { %2129 = vmatmul.bf16.gmra.mxu2 %v2013_v51  ;;  %v731_v53 = vpop.permute.xlu1 %730 }
 0x1ea   : > { %vm845_vm9 = vcmp.eq.s32.totalorder %v731_v53, %v4312_v7  ;;  %v5018_v17 = vpop.permute.xlu2 %1158  ;;  %v1144_v44 = vpop.permute.xlu0 %1143  ;;  %v547_v53 = vld [vmem:[%s4227_s18 + $0x1f0] sm:$0xff] }
 0x1eb   : > { %v3468_v41 = vsel %vm845_vm9, 1.0, %v5937_v26  ;;  %vm1260_vm5 = vcmp.eq.s32.totalorder %v1144_v44, %v4312_v7  ;;  %v1593_v10 = vpop.f32.mrf.mxu0  ;;  %vm1265_vm12 = vcmp.eq.s32.totalorder %v5018_v17, %v4312_v7 }
 0x1ec   : > { %v5027_v13 = vpack.c.bf16 %v3469_v6, %v3468_v41  ;;  %v5030_v19 = vsel %vm1260_vm5, 1.0, %v5937_v26  ;;  %v1870_v57 = vpop.f32.mrf.mxu1  ;;  %v610_v6 = vld [vmem:[%s4232_s21 + $0x1e8] sm:$0xff] }
 0x1ed   : > { %v5048_v11 = vadd.f32 %v1870_v57, %v1593_v10 }
 0x1ee   : > { %3852 = vllmr.4.mxu1  ;;  %3578 = vmatmul.msk.bf16.gmra.mxu0 %vm1467_vm8, %v1427_v48  ;;  %v3456_v48 = vsel %vm5958_vm15, 1.0, %v5937_v26 }
 0x1ef   : > { %3618 = vmatmul.msk.bf16.gmra.mxu1 %vm1467_vm8, %v1011_v46  ;;  %799 = vperm.xlu1 %3927, %v546_v16   ;;  %v5068_v16 = vsel %vm1264_vm2, 1.0, %v5937_v26 }
 0x1f0   : > { %1212 = vperm.xlu2 %3928, %v609_v24   ;;  %796 = vperm.xlu0 %3926, %v545_v22   ;;  %v3470_v24 = vsel %vm847_vm7, 1.0, %v5937_v26 }
 0x1f1   : > { %v1150_v3 = vpop.permute.xlu1 %1149 }
 0x1f2   : > { %vm1262_vm3 = vcmp.eq.s32.totalorder %v1150_v3, %v4312_v7  ;;  %v752_v45 = vpop.permute.xlu2 %751  ;;  %v1147_v43 = vpop.permute.xlu0 %1146 }
 0x1f3   : > { %v5041_v58 = vsel %vm1262_vm3, 1.0, %v5937_v26  ;;  %vm1261_vm14 = vcmp.eq.s32.totalorder %v1147_v43, %v4312_v7  ;;  %v1595_v20 = vpop.f32.mrf.mxu0  ;;  %vm852_vm6 = vcmp.eq.s32.totalorder %v752_v45, %v4312_v7 }
 0x1f4   : > { %v5045_v51 = vsel %vm1261_vm14, 1.0, %v5937_v26  ;;  %v1872_v54 = vpop.f32.mrf.mxu1 }
 0x1f5   : > { %v5052_v44 = vadd.f32 %v1872_v54, %v1595_v20  ;;  %v612_v20 = vld [vmem:[%s4232_s21 + $0x1f8] sm:$0xff]  ;;  %v1012_v54 = vpack.c.bf16 %v3457_v8, %v3456_v48 }
 0x1f7   : > { %802 = vperm.xlu1 %3927, %v547_v53   ;;  %v2014_v41 = vpack.c.bf16 %v5052_v44, %v5048_v11 }
 0x1f8   : > { %805 = vperm.xlu2 %3928, %v548_v5   ;;  %1215 = vperm.xlu0 %3926, %v610_v6   ;;  %v611_v5 = vld [vmem:[%s4232_s21 + $0x1f0] sm:$0xff] }
 0x1f9   : > { %2134 = vmatmul.bf16.gmra.mxu2 %v2014_v41  ;;  %v1153_v10 = vpop.permute.xlu1 %1152 }
 0x1fa   : > { %vm1263_vm10 = vcmp.eq.s32.totalorder %v1153_v10, %v4312_v7  ;;  %v740_v57 = vpop.permute.xlu0 %739  ;;  %v5073_v46 = vpop.permute.xlu2 %754 }
 0x1fb   : > { %v5071_v40 = vsel %vm1263_vm10, 1.0, %v5937_v26  ;;  %vm848_vm1 = vcmp.eq.s32.totalorder %v740_v57, %v4312_v7  ;;  %v1598_v55 = vpop.f32.mrf.mxu0  ;;  %vm853_vm2 = vcmp.eq.s32.totalorder %v5073_v46, %v4312_v7 }
 0x1fc   : > { %v3471_v3 = vsel %vm848_vm1, 1.0, %v5937_v26  ;;  %v1875_v43 = vpop.f32.mrf.mxu1 }
 0x1fd   : > { %v5085_v53 = vpack.c.bf16 %v3471_v3, %v3470_v24  ;;  %v5097_v8 = vadd.f32 %v1875_v43, %v1598_v55  ;;  %v3475_v55 = vsel %vm852_vm6, 1.0, %v5937_v26 }
 0x1fe   : > { %3579 = vmatmul.msk.bf16.gmra.mxu0 %vm1467_vm8, %v1428_v31 }
 0x1ff   : > { %3619 = vmatmul.msk.bf16.gmra.mxu1 %vm1467_vm8, %v1012_v54  ;;  %1221 = vperm.xlu1 %3927, %v612_v20  }
 0x200   : > { %1218 = vperm.xlu0 %3926, %v611_v5   ;;  %v5113_v5 = vsel %vm1265_vm12, 1.0, %v5937_v26 }
 0x201   : > { %v746_v36 = vpop.permute.xlu1 %745 }
 0x202   : > { %vm850_vm11 = vcmp.eq.s32.totalorder %v746_v36, %v4312_v7  ;;  %v743_v6 = vpop.permute.xlu0 %742  ;;  %v1174_v32 = vpop.permute.xlu2 %1173 }
 0x203   : > { %v3473_v41 = vsel %vm850_vm11, 1.0, %v5937_v26  ;;  %vm849_vm0 = vcmp.eq.s32.totalorder %v743_v6, %v4312_v7  ;;  %v1600_v10 = vpop.f32.mrf.mxu0  ;;  %vm1270_vm14 = vcmp.eq.s32.totalorder %v1174_v32, %v4312_v7 }
 0x204   : > { %v3472_v48 = vsel %vm849_vm0, 1.0, %v5937_v26  ;;  %v1877_v57 = vpop.f32.mrf.mxu1 }
 0x205   : > { %v5099_v27 = vpack.c.bf16 %v3473_v41, %v3472_v48  ;;  %v5101_v31 = vadd.f32 %v1877_v57, %v1600_v10 }
 0x207   : > { %v2015_v24 = vpack.c.bf16 %v5101_v31, %v5097_v8 }
 0x209   : > { %2139 = vmatmul.bf16.gmra.mxu2 %v2015_v24  ;;  %v749_v3 = vpop.permute.xlu1 %748 }
 0x20a   : > { %vm851_vm4 = vcmp.eq.s32.totalorder %v749_v3, %v4312_v7  ;;  %v1162_v20 = vpop.permute.xlu0 %1161  ;;  %v5126_v41 = vpop.permute.xlu2 %1176 }
 0x20b   : > { %v3474_v43 = vsel %vm851_vm4, 1.0, %v5937_v26  ;;  %vm1266_vm9 = vcmp.eq.s32.totalorder %v1162_v20, %v4312_v7  ;;  %v1603_v54 = vpop.f32.mrf.mxu0  ;;  %v3729_v20 = vld [vmem:[%s5927_s6 + $0x30] sm:$0xff]  ;;  %vm1271_vm13 = vcmp.eq.s32.totalorder %v5126_v41, %v4312_v7 }
 0x20c   : > { %v5115_v36 = vpack.c.bf16 %v3475_v55, %v3474_v43  ;;  %v5118_v45 = vsel %vm1266_vm9, 1.0, %v5937_v26  ;;  %v1880_v17 = vpop.f32.mrf.mxu1  ;;  %2756 = vmatpush.bf16.msra.mxu3 %v3729_v20  ;;  %v3727_v20 = vld [vmem:[%s5927_s6 + $0x20] sm:$0xff] }
 0x20e   : > { %3580 = vmatmul.msk.bf16.gmra.mxu0 %vm1467_vm8, %v1429_v2  ;;  %v5143_v2 = vadd.f32 %v1880_v17, %v1603_v54  ;;  %v5161_v17 = vsel %vm1270_vm14, 1.0, %v5937_v26 }
 0x20f   : > { %3620 = vmatmul.msk.bf16.gmra.mxu1 %vm1467_vm8, %v1013_v56 }
 0x210   : > { %2757 = vmatpush.bf16.msra.mxu3 %v3728_v1 }
 0x211   : > { %v1168_v10 = vpop.permute.xlu1 %1167 }
 0x212   : > { %vm1268_vm5 = vcmp.eq.s32.totalorder %v1168_v10, %v4312_v7  ;;  %v1165_v48 = vpop.permute.xlu0 %1164  ;;  %v5157_v55 = vpop.permute.xlu2 %769 }
 0x213   : > { %v5134_v57 = vsel %vm1268_vm5, 1.0, %v5937_v26  ;;  %vm1267_vm3 = vcmp.eq.s32.totalorder %v1165_v48, %v4312_v7  ;;  %v1605_v24 = vpop.f32.mrf.mxu0  ;;  %v3476_v48 = vsel %vm853_vm2, 1.0, %v5937_v26  ;;  %vm858_vm6 = vcmp.eq.s32.totalorder %v5157_v55, %v4312_v7 }
 0x214   : > { %v5138_v59 = vsel %vm1267_vm3, 1.0, %v5937_v26  ;;  %v1882_v60 = vpop.f32.mrf.mxu1  ;;  %2758 = vmatpush.bf16.msra.mxu3 %v3727_v20 }
 0x215   : > { %v5147_v56 = vadd.f32 %v1882_v60, %v1605_v24 }
 0x217   : > { %5960 = vst [vmem:[#allocation7_spill] sm:$0xff] %v5147_v56  ;;  %v2016_v3 = vpack.c.bf16 %v5147_v56, %v5143_v2 }
 0x219   : > { %2144 = vmatmul.bf16.gmra.mxu2 %v2016_v3  ;;  %v1171_v43 = vpop.permute.xlu1 %1170 }
 0x21a   : > { %vm1269_vm7 = vcmp.eq.s32.totalorder %v1171_v43, %v4312_v7  ;;  %v758_v54 = vpop.permute.xlu0 %757 }
 0x21b   : > { %v5164_v32 = vsel %vm1269_vm7, 1.0, %v5937_v26  ;;  %vm854_vm15 = vcmp.eq.s32.totalorder %v758_v54, %v4312_v7  ;;  %v1608_v10 = vpop.f32.mrf.mxu0 }
 0x21c   : > { %v3477_v24 = vsel %vm854_vm15, 1.0, %v5937_v26  ;;  %v1885_v60 = vpop.f32.mrf.mxu1 }
 0x21d   : > { %v5174_v3 = vpack.c.bf16 %v3477_v24, %v3476_v48  ;;  %v5188_v48 = vpop.permute.xlu2 %772 }
 0x21e   : > { %3581 = vmatmul.msk.bf16.gmra.mxu0 %vm1467_vm8, %v1430_v14  ;;  %v5196_v14 = vadd.f32 %v1885_v60, %v1608_v10  ;;  %vm859_vm2 = vcmp.eq.s32.totalorder %v5188_v48, %v4312_v7 }
 0x21f   : > { %3621 = vmatmul.msk.bf16.gmra.mxu1 %vm1467_vm8, %v1014_v25  ;;  %v3726_v25 = vld [vmem:[%s5927_s6 + $0x18] sm:$0xff] }
 0x220   : > { %5961 = vst [vmem:[#allocation8_spill] sm:$0xff] %v5196_v14  ;;  %2759 = vmatpush.bf16.msra.mxu3 %v3726_v25 }
 0x221   : > { %v764_v43 = vpop.permute.xlu1 %763 }
 0x222   : > { %vm856_vm10 = vcmp.eq.s32.totalorder %v764_v43, %v4312_v7  ;;  %v761_v54 = vpop.permute.xlu0 %760  ;;  %v3725_v43 = vld [vmem:[%s5927_s6 + $0x10] sm:$0xff] }
 0x223   : > { %v3479_v0 = vsel %vm856_vm10, 1.0, %v5937_v26  ;;  %vm855_vm1 = vcmp.eq.s32.totalorder %v761_v54, %v4312_v7  ;;  %v1610_v4 = vpop.f32.mrf.mxu0 }
 0x224   : > { %v3478_v49 = vsel %vm855_vm1, 1.0, %v5937_v26  ;;  %v1887_v18 = vpop.f32.mrf.mxu1  ;;  %2760 = vmatpush.bf16.msra.mxu3 %v3725_v43 }
 0x225   : > { %v5198_v24 = vpack.c.bf16 %v3479_v0, %v3478_v49  ;;  %v5200_v1 = vadd.f32 %v1887_v18, %v1610_v4  ;;  %v5213_v0 = vsel %vm1271_vm13, 1.0, %v5937_v26  ;;  %v3724_v18 = vld [vmem:[%s5927_s6 + $0x8] sm:$0xff]  ;;  %v1192_v25 = vpop.permute.xlu2 %1191 }
 0x226   : > { %vm1276_vm9 = vcmp.eq.s32.totalorder %v1192_v25, %v4312_v7 }
 0x227   : > { %5962 = vst [vmem:[#allocation9_spill] sm:$0xff] %v5200_v1  ;;  %3929 = vxpose.binary.xlu2.c.b16.start [1/16] (narrow) %v5198_v24, %v4864_v63, 32  ;;  %v2017_v20 = vpack.c.bf16 %v5200_v1, %v5196_v14 }
 0x228   : > { %2761 = vmatpush.bf16.msra.mxu3 %v3724_v18 }
 0x229   : > { %2149 = vmatmul.bf16.gmra.mxu2 %v2017_v20  ;;  %v767_v10 = vpop.permute.xlu1 %766  ;;  %v3723_v20 = vld [vmem:[%s5927_s6] sm:$0xff] }
 0x22a   : > { %v1180_v60 = vpop.permute.xlu0 %1179  ;;  %vm857_vm0 = vcmp.eq.s32.totalorder %v767_v10, %v4312_v7 }
 0x22b   : > { %vm1272_vm11 = vcmp.eq.s32.totalorder %v1180_v60, %v4312_v7  ;;  %v1613_v54 = vpop.f32.mrf.mxu0  ;;  %v3480_v60 = vsel %vm857_vm0, 1.0, %v5937_v26 }
 0x22c   : > { %v5216_v4 = vsel %vm1272_vm11, 1.0, %v5937_v26  ;;  %v1890_v49 = vpop.f32.mrf.mxu1  ;;  %2762 = vmatpush.bf16.msra.mxu3 %v3723_v20 }
 0x22d   : > { %v5247_v41 = vadd.f32 %v1890_v49, %v1613_v54  ;;  %v1195_v46 = vpop.permute.xlu2 %1194  ;;  %v5260_v49 = vsel %vm1276_vm9, 1.0, %v5937_v26 }
 0x22e   : > { %3582 = vmatmul.msk.bf16.gmra.mxu0 %vm1467_vm8, %v1431_v42  ;;  %v3481_v42 = vsel %vm858_vm6, 1.0, %v5937_v26  ;;  %vm1277_vm15 = vcmp.eq.s32.totalorder %v1195_v46, %v4312_v7 }
 0x22f   : > { %3622 = vmatmul.msk.bf16.gmra.mxu1 %vm1467_vm8, %v4864_v63  ;;  %v5245_v55 = vpack.c.bf16 %v3481_v42, %v3480_v60  ;;  %5963 = vst [vmem:[#allocation10_spill] sm:$0xff] %v5247_v41 }
 0x231   : > { %v1186_v43 = vpop.permute.xlu1 %1185 }
 0x232   : > { %vm1274_vm12 = vcmp.eq.s32.totalorder %v1186_v43, %v4312_v7  ;;  %v1183_v9 = vpop.permute.xlu0 %1182 }
 0x233   : > { %v5238_v39 = vsel %vm1274_vm12, 1.0, %v5937_v26  ;;  %vm1273_vm4 = vcmp.eq.s32.totalorder %v1183_v9, %v4312_v7  ;;  %v1615_v63 = vpop.f32.mrf.mxu0 }
 0x234   : > { %v5243_v10 = vsel %vm1273_vm4, 1.0, %v5937_v26  ;;  %v1892_v18 = vpop.f32.mrf.mxu1 }
 0x235   : > { %v5251_v20 = vadd.f32 %v1892_v18, %v1615_v63  ;;  %v5276_v25 = vpop.permute.xlu2 %787 }
 0x237   : > { %5964 = vst [vmem:[#allocation11_spill] sm:$0xff] %v5251_v20  ;;  %3930 = vxpose.binary.xlu2.c.b16.cont [2/16] (narrow) %v5245_v55, %v4969_v29, 32  ;;  %v2018_v9 = vpack.c.bf16 %v5251_v20, %v5247_v41 }
 0x239   : > { %2154 = vmatmul.bf16.gmra.mxu2 %v2018_v9  ;;  %v1189_v38 = vpop.permute.xlu1 %1188 }
 0x23a   : > { %vm1275_vm5 = vcmp.eq.s32.totalorder %v1189_v38, %v4312_v7  ;;  %v776_v54 = vpop.permute.xlu0 %775 }
 0x23b   : > { %v5263_v60 = vsel %vm1275_vm5, 1.0, %v5937_v26  ;;  %v1618_v63 = vpop.f32.mrf.mxu0  ;;  %vm860_vm14 = vcmp.eq.s32.totalorder %v776_v54, %v4312_v7  ;;  %v3482_v54 = vsel %vm859_vm2, 1.0, %v5937_v26 }
 0x23c   : > { %v1895_v18 = vpop.f32.mrf.mxu1  ;;  %v2115_v43 = vpop.f32.mrf.mxu2  ;;  %v3483_v9 = vsel %vm860_vm14, 1.0, %v5937_v26  ;;  %vm864_vm14 = vcmp.eq.s32.totalorder %v5276_v25, %v4312_v7 }
 0x23d   : > { %vm2275_vm3 = vcmp.gt.f32.partialorder %v2115_v43, 0.0  ;;  %v2339_v6 = vmul.f32 0.2, %v2115_v43  ;;  %v5280_v61 = vpack.c.bf16 %v3483_v9, %v3482_v54  ;;  %v5282_v20 = vadd.f32 %v1895_v18, %v1618_v63 }
 0x23e   : > { %3583 = vmatmul.msk.bf16.gmra.mxu0 %vm1467_vm8, %v1432_v33  ;;  %v5967_v54 = vmov 0.0  }
 0x23f   : > { %3623 = vmatmul.msk.bf16.gmra.mxu1 %vm1467_vm8, %v4969_v29  ;;  %v2403_v38 = vsel %vm2275_vm3, %v2115_v43, %v2339_v6  ;;  %5965 = vst [vmem:[#allocation12_spill] sm:$0xff] %v5282_v20 }
 0x240   : > { %v2467_v23 = vsub.f32 0.0, %v2403_v38 }
 0x241   : > { %v782_v42 = vpop.permute.xlu1 %781 }
 0x242   : > { %v779_v22 = vpop.permute.xlu0 %778  ;;  %v2531_v48 = vmul.f32 1.442695, %v2467_v23  ;;  %vm862_vm13 = vcmp.eq.s32.totalorder %v782_v42, %v4312_v7 }
 0x243   : > { %v1620_v35 = vpop.f32.mrf.mxu0  ;;  %vm861_vm11 = vcmp.eq.s32.totalorder %v779_v22, %v4312_v7 }
 0x244   : > { %v1897_v62 = vpop.f32.mrf.mxu1  ;;  %v2117_v33 = vpop.f32.mrf.mxu2  ;;  %3942 = vpow2.f32 %v2531_v48  ;;  %v5968_v48 = vpack.c.bf16 %v5030_v19, %v5025_v12 }
 0x245   : > { %v5284_v29 = vadd.f32 %v1897_v62, %v1620_v35  ;;  %vm2276_vm7 = vcmp.gt.f32.partialorder %v2117_v33, 0.0  ;;  %v2340_v6 = vmul.f32 0.2, %v2117_v33  ;;  %v5293_v35 = vpop.permute.xlu2 %790  ;;  %v5297_v62 = vsel %vm1277_vm15, 1.0, %v5967_v54 }
 0x247   : > { %5966 = vst [vmem:[#allocation13_spill] sm:$0xff] %v5284_v29  ;;  %v2404_v43 = vsel %vm2276_vm7, %v2117_v33, %v2340_v6  ;;  %3931 = vxpose.binary.xlu2.c.b16.cont [3/16] (narrow) %v5280_v61, %v4992_v47, 32  ;;  %v2019_v26 = vpack.c.bf16 %v5284_v29, %v5282_v20 }
 0x248   : > { %v2468_v38 = vsub.f32 0.0, %v2404_v43 }
 0x249   : > { %2159 = vmatmul.bf16.gmra.mxu2 %v2019_v26  ;;  %v5291_v9 = vpop.permute.xlu1 %784  ;;  %v3484_v26 = vsel %vm861_vm11, 1.0, %v5967_v54 }
 0x24a   : > { %v2533_v63 = vmul.f32 1.442695, %v2468_v38  ;;  %v1198_v18 = vpop.permute.xlu0 %1197  ;;  %vm863_vm3 = vcmp.eq.s32.totalorder %v5291_v9, %v4312_v7 }
 0x24b   : > { %vm1278_vm10 = vcmp.eq.s32.totalorder %v1198_v18, %v4312_v7  ;;  %v1623_v23 = vpop.f32.mrf.mxu0  ;;  %v3485_v18 = vsel %vm862_vm13, 1.0, %v5967_v54 }
 0x24c   : > { %3944 = vpow2.f32 %v2533_v63  ;;  %v5300_v33 = vsel %vm1278_vm10, 1.0, %v5967_v54  ;;  %v1900_v6 = vpop.f32.mrf.mxu1  ;;  %v2120_v46 = vpop.f32.mrf.mxu2  ;;  %vm865_vm10 = vcmp.eq.s32.totalorder %v5293_v35, %v4312_v7 }
 0x24d   : > { %vm2277_vm1 = vcmp.gt.f32.partialorder %v2120_v46, 0.0  ;;  %v2341_v43 = vmul.f32 0.2, %v2120_v46  ;;  %v3943_v63 = vpop.eup %3942  ;;  %v1210_v14 = vpop.permute.xlu2 %1209 }
 0x24e   : > { %3584 = vmatmul.msk.bf16.gmra.mxu0 %vm1467_vm8, %v5968_v48  ;;  %vm1282_vm4 = vcmp.eq.s32.totalorder %v1210_v14, %v4312_v7 }
 0x24f   : > { %3624 = vmatmul.msk.bf16.gmra.mxu1 %vm1467_vm8, %v4992_v47  ;;  %v2405_v38 = vsel %vm2277_vm1, %v2120_v46, %v2341_v43  ;;  %v5319_v47 = vpack.c.bf16 %v3485_v18, %v3484_v26  ;;  %v5321_v46 = vadd.f32 %v1900_v6, %v1623_v23  ;;  %v5337_v18 = vsel %vm1282_vm4, 1.0, %v5967_v54 }
 0x250   : > { %v2469_v22 = vsub.f32 0.0, %v2405_v38 }
 0x251   : > { %v1204_v29 = vpop.permute.xlu1 %1203 }
 0x252   : > { %v3945_v20 = vpop.eup %3944  ;;  %vm1280_vm0 = vcmp.eq.s32.totalorder %v1204_v29, %v4312_v7  ;;  %v1201_v42 = vpop.permute.xlu0 %1200 }
 0x253   : > { %v5316_v41 = vsel %vm1280_vm0, 1.0, %v5967_v54  ;;  %vm1279_vm6 = vcmp.eq.s32.totalorder %v1201_v42, %v4312_v7  ;;  %v1625_v12 = vpop.f32.mrf.mxu0  ;;  %v2659_v19 = vpack.c.bf16 %v3945_v20, %v3943_v63  ;;  %v2535_v42 = vmul.f32 1.442695, %v2469_v22 }
 0x254   : > { %v5324_v43 = vsel %vm1279_vm6, 1.0, %v5967_v54  ;;  %v1902_v48 = vpop.f32.mrf.mxu1  ;;  %v2122_v1 = vpop.f32.mrf.mxu2 }
 0x255   : > { %v5328_v38 = vadd.f32 %v1902_v48, %v1625_v12  ;;  %vm2278_vm12 = vcmp.gt.f32.partialorder %v2122_v1, 0.0  ;;  %v2342_v56 = vmul.f32 0.2, %v2122_v1  ;;  %2763 = vmatmul.bf16.vlgmr.msra.gmra.mxu3 %v2659_v19  ;;  %3946 = vpow2.f32 %v2535_v42 }
 0x256   : > { %v5969_v48 = vpack.c.bf16 %v5041_v58, %v5045_v51 }
 0x257   : > { %v2406_v20 = vsel %vm2278_vm12, %v2122_v1, %v2342_v56  ;;  %3932 = vxpose.binary.xlu2.c.b16.cont [4/16] (narrow) %v5319_v47, %v5027_v13, 32  ;;  %v2020_v23 = vpack.c.bf16 %v5328_v38, %v5321_v46 }
 0x258   : > { %v2470_v6 = vsub.f32 0.0, %v2406_v20 }
 0x259   : > { %2164 = vmatmul.bf16.gmra.mxu2 %v2020_v23  ;;  %v1207_v26 = vpop.permute.xlu1 %1206  ;;  %v3486_v23 = vsel %vm863_vm3, 1.0, %v5967_v54 }
 0x25a   : > { %v2537_v63 = vmul.f32 1.442695, %v2470_v6  ;;  %vm1281_vm9 = vcmp.eq.s32.totalorder %v1207_v26, %v4312_v7  ;;  %v3487_v26 = vsel %vm864_vm14, 1.0, %v5967_v54 }
 0x25b   : > { %v5340_v56 = vsel %vm1281_vm9, 1.0, %v5967_v54  ;;  %v1628_v1 = vpop.f32.mrf.mxu0  ;;  %v3947_v20 = vpop.eup %3946  ;;  %v5356_v29 = vpack.c.bf16 %v3487_v26, %v3486_v23 }
 0x25c   : > { %3948 = vpow2.f32 %v2537_v63  ;;  %v1905_v12 = vpop.f32.mrf.mxu1  ;;  %v2125_v14 = vpop.f32.mrf.mxu2 }
 0x25d   : > { %vm2279_vm5 = vcmp.gt.f32.partialorder %v2125_v14, 0.0  ;;  %v2343_v19 = vmul.f32 0.2, %v2125_v14 }
 0x25e   : > { %3585 = vmatmul.msk.bf16.gmra.mxu0 %vm1467_vm8, %v5969_v48  ;;  %v5358_v48 = vadd.f32 %v1905_v12, %v1628_v1 }
 0x25f   : > { %3625 = vmatmul.msk.bf16.gmra.mxu1 %vm1467_vm8, %v5027_v13  ;;  %v2407_v42 = vsel %vm2279_vm5, %v2125_v14, %v2343_v19 }
 0x260   : > { %v2471_v63 = vsub.f32 0.0, %v2407_v42 }
 0x262   : > { %v3949_v6 = vpop.eup %3948  ;;  %v2539_v14 = vmul.f32 1.442695, %v2471_v63 }
 0x263   : > { %v1630_v9 = vpop.f32.mrf.mxu0  ;;  %v2660_v22 = vpack.c.bf16 %v3949_v6, %v3947_v20  ;;  %v794_v6 = vpop.permute.xlu0 %793 }
 0x264   : > { %v1907_v58 = vpop.f32.mrf.mxu1  ;;  %v2127_v51 = vpop.f32.mrf.mxu2  ;;  %3950 = vpow2.f32 %v2539_v14  ;;  %vm866_vm15 = vcmp.eq.s32.totalorder %v794_v6, %v4312_v7  ;;  %v3488_v14 = vsel %vm865_vm10, 1.0, %v5967_v54 }
 0x265   : > { %v5360_v13 = vadd.f32 %v1907_v58, %v1630_v9  ;;  %vm2280_vm2 = vcmp.gt.f32.partialorder %v2127_v51, 0.0  ;;  %v2344_v25 = vmul.f32 0.2, %v2127_v51  ;;  %2768 = vmatmul.bf16.gmra.mxu3 %v2660_v22  ;;  %v5970_v22 = vpack.c.bf16 %v5068_v16, %v5071_v40 }
 0x267   : > { %v2408_v19 = vsel %vm2280_vm2, %v2127_v51, %v2344_v25  ;;  %3933 = vxpose.binary.xlu2.c.b16.cont [5/16] (narrow) %v5356_v29, %v5085_v53, 32  ;;  %v2021_v42 = vpack.c.bf16 %v5360_v13, %v5358_v48  ;;  %v3489_v51 = vsel %vm866_vm15, 1.0, %v5967_v54 }
 0x268   : > { %v2472_v20 = vsub.f32 0.0, %v2408_v19 }
 0x269   : > { %2169 = vmatmul.bf16.gmra.mxu2 %v2021_v42 }
 0x26a   : > { %v2541_v23 = vmul.f32 1.442695, %v2472_v20  ;;  %v3951_v58 = vpop.eup %3950 }
 0x26b   : > { %v1633_v1 = vpop.f32.mrf.mxu0 }
 0x26c   : > { %3952 = vpow2.f32 %v2541_v23  ;;  %v1910_v12 = vpop.f32.mrf.mxu1  ;;  %v2130_v26 = vpop.f32.mrf.mxu2  ;;  %v5377_v23 = vpack.c.bf16 %v3489_v51, %v3488_v14 }
 0x26d   : > { %vm2281_vm7 = vcmp.gt.f32.partialorder %v2130_v26, 0.0  ;;  %v2345_v9 = vmul.f32 0.2, %v2130_v26  ;;  %v5379_v6 = vadd.f32 %v1910_v12, %v1633_v1 }
 0x26e   : > { %3586 = vmatmul.msk.bf16.gmra.mxu0 %vm1467_vm8, %v5970_v22 }
 0x26f   : > { %3626 = vmatmul.msk.bf16.gmra.mxu1 %vm1467_vm8, %v5085_v53  ;;  %v2409_v63 = vsel %vm2281_vm7, %v2130_v26, %v2345_v9 }
 0x270   : > { %v2473_v19 = vsub.f32 0.0, %v2409_v63 }
 0x272   : > { %v3953_v25 = vpop.eup %3952  ;;  %v2543_v26 = vmul.f32 1.442695, %v2473_v19  ;;  %v5972_v19 = vpack.c.bf16 %v5118_v45, %v5113_v5 }
 0x273   : > { %v1635_v42 = vpop.f32.mrf.mxu0  ;;  %v2661_v20 = vpack.c.bf16 %v3953_v25, %v3951_v58  ;;  %v800_v58 = vpop.permute.xlu1 %799 }
 0x274   : > { %v1912_v16 = vpop.f32.mrf.mxu1  ;;  %v2132_v40 = vpop.f32.mrf.mxu2  ;;  %3954 = vpow2.f32 %v2543_v26  ;;  %vm868_vm11 = vcmp.eq.s32.totalorder %v800_v58, %v4312_v7 }
 0x275   : > { %v5381_v53 = vadd.f32 %v1912_v16, %v1635_v42  ;;  %vm2282_vm1 = vcmp.gt.f32.partialorder %v2132_v40, 0.0  ;;  %v2346_v35 = vmul.f32 0.2, %v2132_v40  ;;  %2773 = vmatmul.bf16.gmra.mxu3 %v2661_v20  ;;  %v797_v25 = vpop.permute.xlu0 %796 }
 0x276   : > { %vm867_vm0 = vcmp.eq.s32.totalorder %v797_v25, %v4312_v7 }
 0x277   : > { %5971 = vst [vmem:[#allocation14_spill] sm:$0xff] %v5381_v53  ;;  %v2022_v9 = vpack.c.bf16 %v5381_v53, %v5379_v6  ;;  %v2410_v22 = vsel %vm2282_vm1, %v2132_v40, %v2346_v35  ;;  %3934 = vxpose.binary.xlu2.c.b16.cont [6/16] (narrow) %v5377_v23, %v5099_v27, 32  ;;  %v3491_v40 = vsel %vm868_vm11, 1.0, %v5967_v54  ;;  %v3490_v35 = vsel %vm867_vm0, 1.0, %v5967_v54 }
 0x278   : > { %v2474_v63 = vsub.f32 0.0, %v2410_v22 }
 0x279   : > { %2174 = vmatmul.bf16.gmra.mxu2 %v2022_v9  ;;  %v5397_v9 = vpop.permute.xlu2 %1212 }
 0x27a   : > { %v2545_v51 = vmul.f32 1.442695, %v2474_v63  ;;  %v3955_v16 = vpop.eup %3954 }
 0x27b   : > { %v1638_v1 = vpop.f32.mrf.mxu0 }
 0x27c   : > { %3956 = vpow2.f32 %v2545_v51  ;;  %v1915_v12 = vpop.f32.mrf.mxu1  ;;  %v2135_v14 = vpop.f32.mrf.mxu2  ;;  %v5399_v51 = vpack.c.bf16 %v3491_v40, %v3490_v35 }
 0x27d   : > { %vm2283_vm13 = vcmp.gt.f32.partialorder %v2135_v14, 0.0  ;;  %v2347_v42 = vmul.f32 0.2, %v2135_v14  ;;  %v5401_v25 = vadd.f32 %v1915_v12, %v1638_v1  ;;  %v803_v40 = vpop.permute.xlu1 %802 }
 0x27e   : > { %3587 = vmatmul.msk.bf16.gmra.mxu0 %vm1467_vm8, %v5972_v19  ;;  %vm869_vm4 = vcmp.eq.s32.totalorder %v803_v40, %v4312_v7 }
 0x27f   : > { %3627 = vmatmul.msk.bf16.gmra.mxu1 %vm1467_vm8, %v5099_v27  ;;  %v2411_v20 = vsel %vm2283_vm13, %v2135_v14, %v2347_v42 }
 0x280   : > { %v2475_v22 = vsub.f32 0.0, %v2411_v20 }
 0x282   : > { %v3957_v26 = vpop.eup %3956  ;;  %v2547_v14 = vmul.f32 1.442695, %v2475_v22  ;;  %v5973_v22 = vpack.c.bf16 %v5134_v57, %v5138_v59 }
 0x283   : > { %v1640_v63 = vpop.f32.mrf.mxu0  ;;  %v2662_v58 = vpack.c.bf16 %v3957_v26, %v3955_v16  ;;  %v806_v26 = vpop.permute.xlu2 %805 }
 0x284   : > { %v1917_v5 = vpop.f32.mrf.mxu1  ;;  %v2137_v45 = vpop.f32.mrf.mxu2  ;;  %3958 = vpow2.f32 %v2547_v14  ;;  %vm870_vm9 = vcmp.eq.s32.totalorder %v806_v26, %v4312_v7 }
 0x285   : > { %v5403_v19 = vadd.f32 %v1917_v5, %v1640_v63  ;;  %vm2284_vm6 = vcmp.gt.f32.partialorder %v2137_v45, 0.0  ;;  %v2348_v27 = vmul.f32 0.2, %v2137_v45  ;;  %2778 = vmatmul.bf16.gmra.mxu3 %v2662_v58  ;;  %v3492_v5 = vsel %vm869_vm4, 1.0, %v5967_v54 }
 0x287   : > { %v2023_v42 = vpack.c.bf16 %v5403_v19, %v5401_v25  ;;  %v2412_v53 = vsel %vm2284_vm6, %v2137_v45, %v2348_v27  ;;  %3935 = vxpose.binary.xlu2.c.b16.cont [7/16] (narrow) %v5399_v51, %v5115_v36, 32  ;;  %v3493_v27 = vsel %vm870_vm9, 1.0, %v5967_v54 }
 0x288   : > { %v2476_v20 = vsub.f32 0.0, %v2412_v53 }
 0x289   : > { %2179 = vmatmul.bf16.gmra.mxu2 %v2023_v42 }
 0x28a   : > { %v2549_v16 = vmul.f32 1.442695, %v2476_v20  ;;  %v3959_v58 = vpop.eup %3958 }
 0x28b   : > { %v1643_v1 = vpop.f32.mrf.mxu0 }
 0x28c   : > { %3960 = vpow2.f32 %v2549_v16  ;;  %v1920_v12 = vpop.f32.mrf.mxu1  ;;  %v2140_v35 = vpop.f32.mrf.mxu2  ;;  %v5419_v16 = vpack.c.bf16 %v3493_v27, %v3492_v5  ;;  %v5974_v27 = vpack.c.bf16 %v5161_v17, %v5164_v32 }
 0x28d   : > { %vm2285_vm12 = vcmp.gt.f32.partialorder %v2140_v35, 0.0  ;;  %v2349_v63 = vmul.f32 0.2, %v2140_v35  ;;  %v5421_v40 = vadd.f32 %v1920_v12, %v1643_v1 }
 0x28e   : > { %3588 = vmatmul.msk.bf16.gmra.mxu0 %vm1467_vm8, %v5973_v22 }
 0x28f   : > { %3628 = vmatmul.msk.bf16.gmra.mxu1 %vm1467_vm8, %v5115_v36  ;;  %v2413_v53 = vsel %vm2285_vm12, %v2140_v35, %v2349_v63 }
 0x290   : > { %v2477_v14 = vsub.f32 0.0, %v2413_v53 }
 0x292   : > { %v3961_v45 = vpop.eup %3960  ;;  %v2551_v35 = vmul.f32 1.442695, %v2477_v14 }
 0x293   : > { %v1645_v42 = vpop.f32.mrf.mxu0  ;;  %v2663_v20 = vpack.c.bf16 %v3961_v45, %v3959_v58 }
 0x294   : > { %v1922_v57 = vpop.f32.mrf.mxu1  ;;  %v2142_v59 = vpop.f32.mrf.mxu2  ;;  %3962 = vpow2.f32 %v2551_v35 }
 0x295   : > { %v5423_v22 = vadd.f32 %v1922_v57, %v1645_v42  ;;  %vm2286_vm5 = vcmp.gt.f32.partialorder %v2142_v59, 0.0  ;;  %v2350_v36 = vmul.f32 0.2, %v2142_v59  ;;  %2783 = vmatmul.bf16.gmra.mxu3 %v2663_v20 }
 0x297   : > { %v2024_v26 = vpack.c.bf16 %v5423_v22, %v5421_v40  ;;  %v2414_v63 = vsel %vm2286_vm5, %v2142_v59, %v2350_v36  ;;  %3936 = vxpose.binary.xlu2.c.b16.end [8/16] (narrow) %v5419_v16, %v5174_v3, 32 }
 0x298   : > { %v2478_v53 = vsub.f32 0.0, %v2414_v63 }
 0x299   : > { %2184 = vmatmul.bf16.gmra.mxu2 %v2024_v26 }
 0x29a   : > { %v2553_v58 = vmul.f32 1.442695, %v2478_v53  ;;  %v3963_v42 = vpop.eup %3962 }
 0x29b   : > { %v1648_v5 = vpop.f32.mrf.mxu0 }
 0x29c   : > { %3964 = vpow2.f32 %v2553_v58  ;;  %v1925_v1 = vpop.f32.mrf.mxu1  ;;  %v2145_v12 = vpop.f32.mrf.mxu2 }
 0x29d   : > { %vm2287_vm3 = vcmp.gt.f32.partialorder %v2145_v12, 0.0  ;;  %v2351_v45 = vmul.f32 0.2, %v2145_v12  ;;  %v5435_v63 = vadd.f32 %v1925_v1, %v1648_v5  ;;  %v5975_v1 = vpack.c.bf16 %v5216_v4, %v5213_v0 }
 0x29e   : > { %3589 = vmatmul.msk.bf16.gmra.mxu0 %vm1467_vm8, %v5974_v27 }
 0x29f   : > { %3629 = vmatmul.msk.bf16.gmra.mxu1 %vm1467_vm8, %v5174_v3  ;;  %v2415_v14 = vsel %vm2287_vm3, %v2145_v12, %v2351_v45  ;;  %vm1283_vm3 = vcmp.eq.s32.totalorder %v5397_v9, %v4312_v7 }
 0x2a0   : > { %v2479_v57 = vsub.f32 0.0, %v2415_v14 }
 0x2a2   : > { %v3965_v20 = vpop.eup %3964  ;;  %v2555_v17 = vmul.f32 1.442695, %v2479_v57 }
 0x2a3   : > { %v1650_v59 = vpop.f32.mrf.mxu0  ;;  %v2664_v36 = vpack.c.bf16 %v3965_v20, %v3963_v42 }
 0x2a4   : > { %v1927_v35 = vpop.f32.mrf.mxu1  ;;  %v2147_v26 = vpop.f32.mrf.mxu2  ;;  %3966 = vpow2.f32 %v2555_v17 }
 0x2a5   : > { %v5437_v53 = vadd.f32 %v1927_v35, %v1650_v59  ;;  %vm2288_vm14 = vcmp.gt.f32.partialorder %v2147_v26, 0.0  ;;  %v2352_v58 = vmul.f32 0.2, %v2147_v26  ;;  %2788 = vmatmul.bf16.gmra.mxu3 %v2664_v36 }
 0x2a7   : > { %v2025_v32 = vpack.c.bf16 %v5437_v53, %v5435_v63  ;;  %v2416_v3 = vsel %vm2288_vm14, %v2147_v26, %v2352_v58 }
 0x2a8   : > { %v2480_v12 = vsub.f32 0.0, %v2416_v3 }
 0x2a9   : > { %2189 = vmatmul.bf16.gmra.mxu2 %v2025_v32 }
 0x2aa   : > { %v2557_v45 = vmul.f32 1.442695, %v2480_v12  ;;  %v3967_v57 = vpop.eup %3966 }
 0x2ab   : > { %v1653_v27 = vpop.f32.mrf.mxu0 }
 0x2ac   : > { %3968 = vpow2.f32 %v2557_v45  ;;  %v1930_v14 = vpop.f32.mrf.mxu1  ;;  %v2150_v42 = vpop.f32.mrf.mxu2 }
 0x2ad   : > { %vm2289_vm2 = vcmp.gt.f32.partialorder %v2150_v42, 0.0  ;;  %v2353_v5 = vmul.f32 0.2, %v2150_v42  ;;  %v5447_v32 = vadd.f32 %v1930_v14, %v1653_v27  ;;  %v5976_v14 = vpack.c.bf16 %v5238_v39, %v5243_v10 }
 0x2ae   : > { %3590 = vmatmul.msk.bf16.gmra.mxu0 %vm1467_vm8, %v5975_v1 }
 0x2af   : > { %3630 = vmatmul.msk.bf16.gmra.mxu1 %vm1467_vm8, %v5198_v24  ;;  %v2417_v20 = vsel %vm2289_vm2, %v2150_v42, %v2353_v5 }
 0x2b0   : > { %v2481_v36 = vsub.f32 0.0, %v2417_v20 }
 0x2b2   : > { %v3969_v59 = vpop.eup %3968  ;;  %v2559_v0 = vmul.f32 1.442695, %v2481_v36 }
 0x2b3   : > { %v1655_v35 = vpop.f32.mrf.mxu0  ;;  %v2665_v26 = vpack.c.bf16 %v3969_v59, %v3967_v57 }
 0x2b4   : > { %v1932_v58 = vpop.f32.mrf.mxu1  ;;  %v2152_v17 = vpop.f32.mrf.mxu2  ;;  %3970 = vpow2.f32 %v2559_v0 }
 0x2b5   : > { %v5449_v3 = vadd.f32 %v1932_v58, %v1655_v35  ;;  %vm2290_vm7 = vcmp.gt.f32.partialorder %v2152_v17, 0.0  ;;  %v2354_v12 = vmul.f32 0.2, %v2152_v17  ;;  %2793 = vmatmul.bf16.gmra.mxu3 %v2665_v26 }
 0x2b7   : > { %v2026_v4 = vpack.c.bf16 %v5449_v3, %v5447_v32  ;;  %v2418_v24 = vsel %vm2290_vm7, %v2152_v17, %v2354_v12 }
 0x2b8   : > { %v2482_v45 = vsub.f32 0.0, %v2418_v24 }
 0x2b9   : > { %2194 = vmatmul.bf16.gmra.mxu2 %v2026_v4 }
 0x2ba   : > { %v2561_v42 = vmul.f32 1.442695, %v2482_v45  ;;  %v3971_v59 = vpop.eup %3970 }
 0x2bb   : > { %v1658_v5 = vpop.f32.mrf.mxu0 }
 0x2bc   : > { %3972 = vpow2.f32 %v2561_v42  ;;  %v1935_v1 = vpop.f32.mrf.mxu1  ;;  %v2155_v20 = vpop.f32.mrf.mxu2 }
 0x2bd   : > { %vm2291_vm15 = vcmp.gt.f32.partialorder %v2155_v20, 0.0  ;;  %v2355_v27 = vmul.f32 0.2, %v2155_v20  ;;  %v5459_v0 = vadd.f32 %v1935_v1, %v1658_v5  ;;  %v5977_v1 = vpack.c.bf16 %v5260_v49, %v5263_v60 }
 0x2be   : > { %3591 = vmatmul.msk.bf16.gmra.mxu0 %vm1467_vm8, %v5976_v14 }
 0x2bf   : > { %3631 = vmatmul.msk.bf16.gmra.mxu1 %vm1467_vm8, %v5245_v55  ;;  %v2419_v57 = vsel %vm2291_vm15, %v2155_v20, %v2355_v27 }
 0x2c0   : > { %v2483_v35 = vsub.f32 0.0, %v2419_v57 }
 0x2c2   : > { %v3973_v36 = vpop.eup %3972  ;;  %v2563_v39 = vmul.f32 1.442695, %v2483_v35 }
 0x2c3   : > { %v1660_v26 = vpop.f32.mrf.mxu0  ;;  %v2666_v58 = vpack.c.bf16 %v3973_v36, %v3971_v59 }
 0x2c4   : > { %v1937_v17 = vpop.f32.mrf.mxu1  ;;  %v2157_v12 = vpop.f32.mrf.mxu2  ;;  %3974 = vpow2.f32 %v2563_v39 }
 0x2c5   : > { %v5461_v4 = vadd.f32 %v1937_v17, %v1660_v26  ;;  %vm2292_vm10 = vcmp.gt.f32.partialorder %v2157_v12, 0.0  ;;  %v2356_v24 = vmul.f32 0.2, %v2157_v12  ;;  %2798 = vmatmul.bf16.gmra.mxu3 %v2666_v58  ;;  %v5474_v17 = vld [vmem:[%s5928_s7] ss:$0 sm:$0xff] }
 0x2c6   : > { %v2935_v9 = vadd.f32 %v5474_v17, %v4994_v15 }
 0x2c7   : > { %v2027_v10 = vpack.c.bf16 %v5461_v4, %v5459_v0  ;;  %v2420_v55 = vsel %vm2292_vm10, %v2157_v12, %v2356_v24 }
 0x2c8   : > { %v2484_v45 = vsub.f32 0.0, %v2420_v55 }
 0x2c9   : > { %2199 = vmatmul.bf16.gmra.mxu2 %v2027_v10 }
 0x2ca   : > { %v2565_v42 = vmul.f32 1.442695, %v2484_v45  ;;  %v3975_v59 = vpop.eup %3974  ;;  %v2928_v45 = vadd.f32 %v5474_v17, %v4727_v30  ;;  %v2929_v30 = vadd.f32 %v5474_v17, %v4731_v34 }
 0x2cb   : > { %v1663_v20 = vpop.f32.mrf.mxu0 }
 0x2cc   : > { %3976 = vpow2.f32 %v2565_v42  ;;  %v1940_v27 = vpop.f32.mrf.mxu1  ;;  %v2160_v14 = vpop.f32.mrf.mxu2 }
 0x2cd   : > { %vm2293_vm1 = vcmp.gt.f32.partialorder %v2160_v14, 0.0  ;;  %v2357_v5 = vmul.f32 0.2, %v2160_v14  ;;  %v5476_v39 = vadd.f32 %v1940_v27, %v1663_v20 }
 0x2ce   : > { %3592 = vmatmul.msk.bf16.gmra.mxu0 %vm1467_vm8, %v5977_v1 }
 0x2cf   : > { %3632 = vmatmul.msk.bf16.gmra.mxu1 %vm1467_vm8, %v5280_v61  ;;  %v2421_v57 = vsel %vm2293_vm1, %v2160_v14, %v2357_v5 }
 0x2d0   : > { %v2485_v35 = vsub.f32 0.0, %v2421_v57 }
 0x2d2   : > { %v3977_v36 = vpop.eup %3976  ;;  %v2567_v61 = vmul.f32 1.442695, %v2485_v35 }
 0x2d3   : > { %v1665_v26 = vpop.f32.mrf.mxu0  ;;  %v2667_v58 = vpack.c.bf16 %v3977_v36, %v3975_v59  ;;  %v5978_v36 = vpack.c.bf16 %v5300_v33, %v5297_v62 }
 0x2d4   : > { %v1942_v12 = vpop.f32.mrf.mxu1  ;;  %v2162_v24 = vpop.f32.mrf.mxu2  ;;  %3978 = vpow2.f32 %v2567_v61 }
 0x2d5   : > { %v5478_v49 = vadd.f32 %v1942_v12, %v1665_v26  ;;  %vm2294_vm13 = vcmp.gt.f32.partialorder %v2162_v24, 0.0  ;;  %v2358_v60 = vmul.f32 0.2, %v2162_v24  ;;  %2803 = vmatmul.bf16.gmra.mxu3 %v2667_v58 }
 0x2d7   : > { %v2028_v10 = vpack.c.bf16 %v5478_v49, %v5476_v39  ;;  %v2422_v55 = vsel %vm2294_vm13, %v2162_v24, %v2358_v60 }
 0x2d8   : > { %v2486_v42 = vsub.f32 0.0, %v2422_v55  ;;  %v2764_v14 = vpop.f32.mrf.mxu3 }
 0x2d9   : > { %v5484_v5 = vmul.f32 %v2928_v45, %v2764_v14  ;;  %2204 = vmatmul.bf16.gmra.mxu2 %v2028_v10 }
 0x2da   : > { %v2569_v20 = vmul.f32 1.442695, %v2486_v42  ;;  %v3979_v58 = vpop.eup %3978 }
 0x2db   : > { %v1668_v27 = vpop.f32.mrf.mxu0 }
 0x2dc   : > { %3980 = vpow2.f32 %v2569_v20  ;;  %v1945_v1 = vpop.f32.mrf.mxu1  ;;  %v2165_v57 = vpop.f32.mrf.mxu2 }
 0x2dd   : > { %vm2295_vm11 = vcmp.gt.f32.partialorder %v2165_v57, 0.0  ;;  %v2359_v59 = vmul.f32 0.2, %v2165_v57  ;;  %v5498_v45 = vadd.f32 %v1945_v1, %v1668_v27 }
 0x2de   : > { %3593 = vmatmul.msk.bf16.gmra.mxu0 %vm1467_vm8, %v5978_v36 }
 0x2df   : > { %3633 = vmatmul.msk.bf16.gmra.mxu1 %vm1467_vm8, %v5319_v47  ;;  %v2423_v35 = vsel %vm2295_vm11, %v2165_v57, %v2359_v59  ;;  %v2930_v57 = vadd.f32 %v5474_v17, %v4800_v21  ;;  %v2931_v21 = vadd.f32 %v5474_v17, %v4804_v28 }
 0x2e0   : > { %v2766_v26 = vpop.f32.mrf.mxu3  ;;  %v2487_v60 = vsub.f32 0.0, %v2423_v35 }
 0x2e1   : > { %v5494_v12 = vmul.f32 %v2929_v30, %v2766_v26 }
 0x2e2   : > { %v3981_v24 = vpop.eup %3980  ;;  %v2571_v42 = vmul.f32 1.442695, %v2487_v60 }
 0x2e3   : > { %v1670_v10 = vpop.f32.mrf.mxu0  ;;  %v2668_v62 = vpack.c.bf16 %v3981_v24, %v3979_v58  ;;  %v5979_v24 = vpack.c.bf16 %v5316_v41, %v5324_v43 }
 0x2e4   : > { %v1947_v33 = vpop.f32.mrf.mxu1  ;;  %v2167_v55 = vpop.f32.mrf.mxu2  ;;  %3982 = vpow2.f32 %v2571_v42 }
 0x2e5   : > { %v5500_v47 = vadd.f32 %v1947_v33, %v1670_v10  ;;  %vm2296_vm0 = vcmp.gt.f32.partialorder %v2167_v55, 0.0  ;;  %v2360_v34 = vmul.f32 0.2, %v2167_v55  ;;  %2808 = vmatmul.bf16.gmra.mxu3 %v2668_v62 }
 0x2e7   : > { %v2029_v14 = vpack.c.bf16 %v5500_v47, %v5498_v45  ;;  %v2424_v20 = vsel %vm2296_vm0, %v2167_v55, %v2360_v34 }
 0x2e8   : > { %v2488_v59 = vsub.f32 0.0, %v2424_v20  ;;  %v2769_v36 = vpop.f32.mrf.mxu3 }
 0x2e9   : > { %v5506_v30 = vmul.f32 %v2930_v57, %v2769_v36  ;;  %2209 = vmatmul.bf16.gmra.mxu2 %v2029_v14 }
 0x2ea   : > { %v2573_v27 = vmul.f32 1.442695, %v2488_v59  ;;  %v3983_v62 = vpop.eup %3982 }
 0x2eb   : > { %v1673_v1 = vpop.f32.mrf.mxu0 }
 0x2ec   : > { %3984 = vpow2.f32 %v2573_v27  ;;  %v1950_v35 = vpop.f32.mrf.mxu1  ;;  %v2170_v26 = vpop.f32.mrf.mxu2 }
 0x2ed   : > { %vm2297_vm6 = vcmp.gt.f32.partialorder %v2170_v26, 0.0  ;;  %v2361_v58 = vmul.f32 0.2, %v2170_v26  ;;  %v5520_v57 = vadd.f32 %v1950_v35, %v1673_v1 }
 0x2ee   : > { %3594 = vmatmul.msk.bf16.gmra.mxu0 %vm1467_vm8, %v5979_v24 }
 0x2ef   : > { %3634 = vmatmul.msk.bf16.gmra.mxu1 %vm1467_vm8, %v5356_v29  ;;  %v2425_v60 = vsel %vm2297_vm6, %v2170_v26, %v2361_v58  ;;  %v2932_v26 = vadd.f32 %v5474_v17, %v4909_v37  ;;  %v2933_v37 = vadd.f32 %v5474_v17, %v4913_v52 }
 0x2f0   : > { %v2771_v10 = vpop.f32.mrf.mxu3  ;;  %v2489_v34 = vsub.f32 0.0, %v2425_v60 }
 0x2f1   : > { %v5516_v33 = vmul.f32 %v2931_v21, %v2771_v10 }
 0x2f2   : > { %v3985_v55 = vpop.eup %3984  ;;  %v2575_v59 = vmul.f32 1.442695, %v2489_v34 }
 0x2f3   : > { %v1675_v14 = vpop.f32.mrf.mxu0  ;;  %v2669_v41 = vpack.c.bf16 %v3985_v55, %v3983_v62  ;;  %v5980_v55 = vpack.c.bf16 %v5337_v18, %v5340_v56 }
 0x2f4   : > { %v1952_v43 = vpop.f32.mrf.mxu1  ;;  %v2172_v20 = vpop.f32.mrf.mxu2  ;;  %3986 = vpow2.f32 %v2575_v59 }
 0x2f5   : > { %v5522_v29 = vadd.f32 %v1952_v43, %v1675_v14  ;;  %vm2298_vm12 = vcmp.gt.f32.partialorder %v2172_v20, 0.0  ;;  %v2362_v28 = vmul.f32 0.2, %v2172_v20  ;;  %2813 = vmatmul.bf16.gmra.mxu3 %v2669_v41 }
 0x2f7   : > { %v2030_v36 = vpack.c.bf16 %v5522_v29, %v5520_v57  ;;  %v2426_v27 = vsel %vm2298_vm12, %v2172_v20, %v2362_v28  ;;  %v1216_v28 = vpop.permute.xlu0 %1215 }
 0x2f8   : > { %v2490_v58 = vsub.f32 0.0, %v2426_v27  ;;  %v2774_v24 = vpop.f32.mrf.mxu3  ;;  %vm1284_vm5 = vcmp.eq.s32.totalorder %v1216_v28, %v4312_v7 }
 0x2f9   : > { %v5528_v21 = vmul.f32 %v2932_v26, %v2774_v24  ;;  %2214 = vmatmul.bf16.gmra.mxu2 %v2030_v36 }
 0x2fa   : > { %v2577_v1 = vmul.f32 1.442695, %v2490_v58  ;;  %v3987_v41 = vpop.eup %3986 }
 0x2fb   : > { %v1678_v35 = vpop.f32.mrf.mxu0 }
 0x2fc   : > { %3988 = vpow2.f32 %v2577_v1  ;;  %v1955_v60 = vpop.f32.mrf.mxu1  ;;  %v2175_v10 = vpop.f32.mrf.mxu2 }
 0x2fd   : > { %vm2299_vm4 = vcmp.gt.f32.partialorder %v2175_v10, 0.0  ;;  %v2363_v62 = vmul.f32 0.2, %v2175_v10  ;;  %v5542_v58 = vadd.f32 %v1955_v60, %v1678_v35 }
 0x2fe   : > { %3595 = vmatmul.msk.bf16.gmra.mxu0 %vm1467_vm8, %v5980_v55  ;;  %v3555_v55 = vsel %vm1284_vm5, 1.0, %v5967_v54 }
 0x2ff   : > { %3635 = vmatmul.msk.bf16.gmra.mxu1 %vm1467_vm8, %v5377_v23  ;;  %v2427_v34 = vsel %vm2299_vm4, %v2175_v10, %v2363_v62  ;;  %v2934_v62 = vadd.f32 %v5474_v17, %v4990_v50 }
 0x300   : > { %v2776_v14 = vpop.f32.mrf.mxu3  ;;  %v2491_v59 = vsub.f32 0.0, %v2427_v34 }
 0x301   : > { %v5538_v43 = vmul.f32 %v2933_v37, %v2776_v14  ;;  %v3554_v14 = vsel %vm1283_vm3, 1.0, %v5967_v54 }
 0x302   : > { %v3989_v20 = vpop.eup %3988  ;;  %v2579_v24 = vmul.f32 1.442695, %v2491_v59 }
 0x303   : > { %v1680_v18 = vpop.f32.mrf.mxu0  ;;  %v2670_v56 = vpack.c.bf16 %v3989_v20, %v3987_v41  ;;  %v1445_v20 = vpack.c.bf16 %v3555_v55, %v3554_v14 }
 0x304   : > { %v1957_v27 = vpop.f32.mrf.mxu1  ;;  %v2177_v26 = vpop.f32.mrf.mxu2  ;;  %3990 = vpow2.f32 %v2579_v24 }
 0x305   : > { %v5544_v23 = vadd.f32 %v1957_v27, %v1680_v18  ;;  %vm2300_vm9 = vcmp.gt.f32.partialorder %v2177_v26, 0.0  ;;  %v2364_v52 = vmul.f32 0.2, %v2177_v26  ;;  %2818 = vmatmul.bf16.gmra.mxu3 %v2670_v56  ;;  %v1222_v24 = vpop.permute.xlu1 %1221 }
 0x306   : > { %vm1286_vm7 = vcmp.eq.s32.totalorder %v1222_v24, %v4312_v7 }
 0x307   : > { %v2031_v1 = vpack.c.bf16 %v5544_v23, %v5542_v58  ;;  %v2428_v10 = vsel %vm2300_vm9, %v2177_v26, %v2364_v52 }
 0x308   : > { %v2492_v35 = vsub.f32 0.0, %v2428_v10  ;;  %v2779_v60 = vpop.f32.mrf.mxu3 }
 0x309   : > { %v5554_v37 = vmul.f32 %v2934_v62, %v2779_v60  ;;  %2219 = vmatmul.bf16.gmra.mxu2 %v2031_v1  ;;  %v1219_v1 = vpop.permute.xlu0 %1218 }
 0x30a   : > { %v2581_v34 = vmul.f32 1.442695, %v2492_v35  ;;  %v3991_v27 = vpop.eup %3990  ;;  %vm1285_vm15 = vcmp.eq.s32.totalorder %v1219_v1, %v4312_v7 }
 0x30b   : > { %v1683_v41 = vpop.f32.mrf.mxu0 }
 0x30c   : > { %3992 = vpow2.f32 %v2581_v34  ;;  %v1960_v28 = vpop.f32.mrf.mxu1  ;;  %v2180_v59 = vpop.f32.mrf.mxu2 }
 0x30d   : > { %vm2301_vm14 = vcmp.gt.f32.partialorder %v2180_v59, 0.0  ;;  %v2365_v50 = vmul.f32 0.2, %v2180_v59 }
 0x30e   : > { %3596 = vmatmul.msk.bf16.gmra.mxu0 %vm1467_vm8, %v1445_v20 }
 0x30f   : > { %3636 = vmatmul.msk.bf16.gmra.mxu1 %vm1467_vm8, %v5399_v51  ;;  %v2429_v18 = vsel %vm2301_vm14, %v2180_v59, %v2365_v50  ;;  %v5566_v51 = vadd.f32 %v1960_v28, %v1683_v41  ;;  %v3557_v28 = vsel %vm1286_vm7, 1.0, %v5967_v54 }
 0x310   : > { %v2781_v56 = vpop.f32.mrf.mxu3  ;;  %v2493_v10 = vsub.f32 0.0, %v2429_v18 }
 0x311   : > { %v5562_v26 = vmul.f32 %v2935_v9, %v2781_v56  ;;  %v2936_v9 = vadd.f32 %v5474_v17, %v5048_v11  ;;  %v3556_v56 = vsel %vm1285_vm15, 1.0, %v5967_v54  ;;  %v2937_v11 = vadd.f32 %v5474_v17, %v5052_v44 }
 0x312   : > { %v3993_v52 = vpop.eup %3992  ;;  %v2583_v20 = vmul.f32 1.442695, %v2493_v10  ;;  %v1446_v24 = vpack.c.bf16 %v3557_v28, %v3556_v56 }
 0x313   : > { %v1685_v35 = vpop.f32.mrf.mxu0  ;;  %v2671_v60 = vpack.c.bf16 %v3993_v52, %v3991_v27 }
 0x314   : > { %v1962_v55 = vpop.f32.mrf.mxu1  ;;  %v2182_v34 = vpop.f32.mrf.mxu2  ;;  %3994 = vpow2.f32 %v2583_v20 }
 0x315   : > { %v5568_v14 = vadd.f32 %v1962_v55, %v1685_v35  ;;  %vm2302_vm2 = vcmp.gt.f32.partialorder %v2182_v34, 0.0  ;;  %v2366_v15 = vmul.f32 0.2, %v2182_v34  ;;  %2823 = vmatmul.bf16.gmra.mxu3 %v2671_v60 }
 0x317   : > { %v2032_v59 = vpack.c.bf16 %v5568_v14, %v5566_v51  ;;  %v2430_v50 = vsel %vm2302_vm2, %v2182_v34, %v2366_v15 }
 0x318   : > { %v2494_v18 = vsub.f32 0.0, %v2430_v50  ;;  %v2784_v41 = vpop.f32.mrf.mxu3 }
 0x319   : > { %v5578_v27 = vmul.f32 %v2936_v9, %v2784_v41  ;;  %2224 = vmatmul.bf16.gmra.mxu2 %v2032_v59 }
 0x31a   : > { %v2585_v52 = vmul.f32 1.442695, %v2494_v18  ;;  %v3995_v55 = vpop.eup %3994 }
 0x31b   : > { %v1688_v7 = vpop.f32.mrf.mxu0 }
 0x31c   : > { %3996 = vpow2.f32 %v2585_v52  ;;  %v1965_v1 = vpop.f32.mrf.mxu1  ;;  %v2185_v10 = vpop.f32.mrf.mxu2 }
 0x31d   : > { %vm2303_vm10 = vcmp.gt.f32.partialorder %v2185_v10, 0.0  ;;  %v2367_v35 = vmul.f32 0.2, %v2185_v10  ;;  %v5589_v28 = vadd.f32 %v1965_v1, %v1688_v7 }
 0x31e   : > { %3597 = vmatmul.msk.bf16.gmra.mxu0 %vm1467_vm8, %v1446_v24 }
 0x31f   : > { %3637 = vmatmul.msk.bf16.gmra.mxu1 %vm1467_vm8, %v5419_v16  ;;  %v2431_v54 = vsel %vm2303_vm10, %v2185_v10, %v2367_v35 }
 0x320   : > { %v2786_v60 = vpop.f32.mrf.mxu3  ;;  %v2495_v20 = vsub.f32 0.0, %v2431_v54 }
 0x321   : > { %v5585_v34 = vmul.f32 %v2937_v11, %v2786_v60 }
 0x322   : > { %v3997_v15 = vpop.eup %3996  ;;  %v2587_v56 = vmul.f32 1.442695, %v2495_v20 }
 0x323   : > { %v1690_v50 = vpop.f32.mrf.mxu0  ;;  %v2672_v9 = vpack.c.bf16 %v3997_v15, %v3995_v55  ;;  %v2938_v55 = vadd.f32 %v5474_v17, %v5097_v8  ;;  %v2939_v15 = vadd.f32 %v5474_v17, %v5101_v31 }
 0x324   : > { %v1967_v18 = vpop.f32.mrf.mxu1  ;;  %v2187_v41 = vpop.f32.mrf.mxu2  ;;  %3998 = vpow2.f32 %v2587_v56 }
 0x325   : > { %v5591_v16 = vadd.f32 %v1967_v18, %v1690_v50  ;;  %vm2304_vm8 = vcmp.gt.f32.partialorder %v2187_v41, 0.0  ;;  %v2368_v44 = vmul.f32 0.2, %v2187_v41  ;;  %2828 = vmatmul.bf16.gmra.mxu3 %v2672_v9 }
 0x327   : > { %v2033_v52 = vpack.c.bf16 %v5591_v16, %v5589_v28  ;;  %v2432_v24 = vsel %vm2304_vm8, %v2187_v41, %v2368_v44 }
 0x328   : > { %v2496_v10 = vsub.f32 0.0, %v2432_v24  ;;  %v2789_v35 = vpop.f32.mrf.mxu3 }
 0x329   : > { %2229 = vmatmul.bf16.gmra.mxu2 %v2033_v52  ;;  %v5599_v18 = vmul.f32 %v2938_v55, %v2789_v35 }
 0x32a   : > { %v2589_v11 = vmul.f32 1.442695, %v2496_v10  ;;  %v3999_v9 = vpop.eup %3998 }
 0x32b   : > { %v1693_v54 = vpop.f32.mrf.mxu0 }
 0x32c   : > { %4000 = vpow2.f32 %v2589_v11  ;;  %v1970_v60 = vpop.f32.mrf.mxu1  ;;  %v2190_v7 = vpop.f32.mrf.mxu2 }
 0x32d   : > { %vm2305_vm1 = vcmp.gt.f32.partialorder %v2190_v7, 0.0  ;;  %v2369_v1 = vmul.f32 0.2, %v2190_v7  ;;  %v5605_v8 = vadd.f32 %v1970_v60, %v1693_v54 }
 0x32f   : > { %v2433_v20 = vsel %vm2305_vm1, %v2190_v7, %v2369_v1  ;;  %5981 = vst [vmem:[#allocation15_spill] sm:$0xff] %v5605_v8 }
 0x330   : > { %v2791_v50 = vpop.f32.mrf.mxu3  ;;  %v2497_v56 = vsub.f32 0.0, %v2433_v20 }
 0x331   : > { %v5601_v41 = vmul.f32 %v2939_v15, %v2791_v50 }
 0x332   : > { %v4001_v44 = vpop.eup %4000  ;;  %v2591_v35 = vmul.f32 1.442695, %v2497_v56 }
 0x333   : > { %v1695_v24 = vpop.f32.mrf.mxu0  ;;  %v2673_v10 = vpack.c.bf16 %v4001_v44, %v3999_v9  ;;  %v2940_v44 = vadd.f32 %v5474_v17, %v5143_v2 }
 0x334   : > { %v1972_v11 = vpop.f32.mrf.mxu1  ;;  %v2192_v61 = vpop.f32.mrf.mxu2  ;;  %4002 = vpow2.f32 %v2591_v35 }
 0x335   : > { %v5607_v42 = vadd.f32 %v1972_v11, %v1695_v24  ;;  %vm2306_vm13 = vcmp.gt.f32.partialorder %v2192_v61, 0.0  ;;  %v2370_v31 = vmul.f32 0.2, %v2192_v61  ;;  %2833 = vmatmul.bf16.gmra.mxu3 %v2673_v10  ;;  %v5983_v24 = vld [vmem:[#allocation7_spill] sm:$0xff] }
 0x336   : > { %v2941_v56 = vadd.f32 %v5474_v17, %v5983_v24 }
 0x337   : > { %5982 = vst [vmem:[#allocation16_spill] sm:$0xff] %v5607_v42  ;;  %v2034_v7 = vpack.c.bf16 %v5607_v42, %v5605_v8  ;;  %v2434_v1 = vsel %vm2306_vm13, %v2192_v61, %v2370_v31 }
 0x338   : > { %v2498_v55 = vsub.f32 0.0, %v2434_v1  ;;  %v2794_v15 = vpop.f32.mrf.mxu3 }
 0x339   : > { %2234 = vmatmul.bf16.gmra.mxu2 %v2034_v7  ;;  %v3004_v31 = vmul.f32 %v2940_v44, %v2794_v15 }
 0x33a   : > { %v2593_v20 = vmul.f32 1.442695, %v2498_v55  ;;  %v4003_v61 = vpop.eup %4002 }
 0x33b   : > { %v1698_v50 = vpop.f32.mrf.mxu0 }
 0x33c   : > { %4004 = vpow2.f32 %v2593_v20  ;;  %v1975_v9 = vpop.f32.mrf.mxu1  ;;  %v2195_v54 = vpop.f32.mrf.mxu2 }
 0x33d   : > { %vm2307_vm11 = vcmp.gt.f32.partialorder %v2195_v54, 0.0  ;;  %v2371_v60 = vmul.f32 0.2, %v2195_v54  ;;  %v5615_v52 = vadd.f32 %v1975_v9, %v1698_v50 }
 0x33f   : > { %v2435_v10 = vsel %vm2307_vm11, %v2195_v54, %v2371_v60  ;;  %5984 = vst [vmem:[#allocation7_spill] sm:$0xff] %v5615_v52 }
 0x340   : > { %v2796_v11 = vpop.f32.mrf.mxu3  ;;  %v2499_v55 = vsub.f32 0.0, %v2435_v10 }
 0x341   : > { %v3005_v1 = vmul.f32 %v2941_v56, %v2796_v11 }
 0x342   : > { %v4005_v7 = vpop.eup %4004  ;;  %v2595_v24 = vmul.f32 1.442695, %v2499_v55 }
 0x343   : > { %v3062_v35 = vpack.c.bf16 %v3005_v1, %v3004_v31  ;;  %v1700_v36 = vpop.f32.mrf.mxu0  ;;  %v2674_v20 = vpack.c.bf16 %v4005_v7, %v4003_v61  ;;  %v5987_v61 = vld [vmem:[#allocation9_spill] sm:$0xff] }
 0x344   : > { %v1977_v62 = vpop.f32.mrf.mxu1  ;;  %v2197_v59 = vpop.f32.mrf.mxu2  ;;  %4006 = vpow2.f32 %v2595_v24  ;;  %v2943_v31 = vadd.f32 %v5474_v17, %v5987_v61 }
 0x345   : > { %v5617_v42 = vadd.f32 %v1977_v62, %v1700_v36  ;;  %vm2308_vm0 = vcmp.gt.f32.partialorder %v2197_v59, 0.0  ;;  %v2372_v2 = vmul.f32 0.2, %v2197_v59  ;;  %2838 = vmatmul.bf16.gmra.mxu3 %v2674_v20  ;;  %v5986_v62 = vld [vmem:[#allocation8_spill] sm:$0xff] }
 0x346   : > { %v2942_v9 = vadd.f32 %v5474_v17, %v5986_v62 }
 0x347   : > { %5985 = vst [vmem:[#allocation17_spill] sm:$0xff] %v5617_v42  ;;  %v2035_v54 = vpack.c.bf16 %v5617_v42, %v5615_v52  ;;  %v2436_v15 = vsel %vm2308_vm0, %v2197_v59, %v2372_v2 }
 0x348   : > { %v2500_v60 = vsub.f32 0.0, %v2436_v15  ;;  %v2799_v44 = vpop.f32.mrf.mxu3 }
 0x349   : > { %2239 = vmatmul.bf16.gmra.mxu2 %v2035_v54  ;;  %v3006_v55 = vmul.f32 %v2942_v9, %v2799_v44  ;;  %v5988_v9 = vld [vmem:[#allocation10_spill] sm:$0xff] }
 0x34a   : > { %v2597_v56 = vmul.f32 1.442695, %v2500_v60  ;;  %v4007_v59 = vpop.eup %4006  ;;  %v2944_v61 = vadd.f32 %v5474_v17, %v5988_v9 }
 0x34b   : > { %v1703_v10 = vpop.f32.mrf.mxu0 }
 0x34c   : > { %4008 = vpow2.f32 %v2597_v56  ;;  %v1980_v11 = vpop.f32.mrf.mxu1  ;;  %v2200_v50 = vpop.f32.mrf.mxu2 }
 0x34d   : > { %vm2309_vm6 = vcmp.gt.f32.partialorder %v2200_v50, 0.0  ;;  %v2373_v36 = vmul.f32 0.2, %v2200_v50  ;;  %v5625_v52 = vadd.f32 %v1980_v11, %v1703_v10 }
 0x34f   : > { %v2437_v1 = vsel %vm2309_vm6, %v2200_v50, %v2373_v36 }
 0x350   : > { %v2801_v7 = vpop.f32.mrf.mxu3  ;;  %v2501_v54 = vsub.f32 0.0, %v2437_v1 }
 0x351   : > { %v3007_v20 = vmul.f32 %v2943_v31, %v2801_v7 }
 0x352   : > { %v4009_v2 = vpop.eup %4008  ;;  %v2599_v50 = vmul.f32 1.442695, %v2501_v54 }
 0x353   : > { %v3063_v24 = vpack.c.bf16 %v3007_v20, %v3006_v55  ;;  %v1705_v15 = vpop.f32.mrf.mxu0  ;;  %v2675_v60 = vpack.c.bf16 %v4009_v2, %v4007_v59  ;;  %v5990_v2 = vld [vmem:[#allocation11_spill] sm:$0xff] }
 0x354   : > { %v1982_v56 = vpop.f32.mrf.mxu1  ;;  %v2202_v42 = vpop.f32.mrf.mxu2  ;;  %4010 = vpow2.f32 %v2599_v50  ;;  %v2945_v54 = vadd.f32 %v5474_v17, %v5990_v2 }
 0x355   : > { %v5627_v8 = vadd.f32 %v1982_v56, %v1705_v15  ;;  %vm2310_vm12 = vcmp.gt.f32.partialorder %v2202_v42, 0.0  ;;  %v2374_v62 = vmul.f32 0.2, %v2202_v42  ;;  %2843 = vmatmul.bf16.gmra.mxu3 %v2675_v60  ;;  %3156 = vmatpush.bf16.msra.mxu0 %v3063_v24 }
 0x357   : > { %v2036_v44 = vpack.c.bf16 %v5627_v8, %v5625_v52  ;;  %v2438_v36 = vsel %vm2310_vm12, %v2202_v42, %v2374_v62  ;;  %v5989_v42 = vpack.c.bf16 %v5601_v41, %v5599_v18 }
 0x358   : > { %v2502_v31 = vsub.f32 0.0, %v2438_v36  ;;  %v2804_v1 = vpop.f32.mrf.mxu3 }
 0x359   : > { %v5633_v7 = vmul.f32 %v2944_v61, %v2804_v1  ;;  %2244 = vmatmul.bf16.gmra.mxu2 %v2036_v44  ;;  %3157 = vmatpush.bf16.msra.mxu0 %v3062_v35  ;;  %v5991_v35 = vpack.c.bf16 %v5585_v34, %v5578_v27  ;;  %v5992_v27 = vpack.c.bf16 %v5562_v26, %v5554_v37 }
 0x35a   : > { %v2601_v10 = vmul.f32 1.442695, %v2502_v31  ;;  %v4011_v60 = vpop.eup %4010 }
 0x35b   : > { %v1708_v11 = vpop.f32.mrf.mxu0 }
 0x35c   : > { %4012 = vpow2.f32 %v2601_v10  ;;  %v1985_v59 = vpop.f32.mrf.mxu1  ;;  %v2205_v55 = vpop.f32.mrf.mxu2 }
 0x35d   : > { %vm2311_vm4 = vcmp.gt.f32.partialorder %v2205_v55, 0.0  ;;  %v2375_v20 = vmul.f32 0.2, %v2205_v55  ;;  %3158 = vmatpush.bf16.msra.mxu0 %v5989_v42  ;;  %v5647_v61 = vadd.f32 %v1985_v59, %v1708_v11 }
 0x35f   : > { %v2439_v24 = vsel %vm2311_vm4, %v2205_v55, %v2375_v20  ;;  %v5993_v20 = vld [vmem:[#allocation12_spill] sm:$0xff] }
 0x360   : > { %v2806_v15 = vpop.f32.mrf.mxu3  ;;  %v2503_v50 = vsub.f32 0.0, %v2439_v24  ;;  %v2946_v42 = vadd.f32 %v5474_v17, %v5993_v20 }
 0x361   : > { %v5640_v56 = vmul.f32 %v2945_v54, %v2806_v15  ;;  %3159 = vmatpush.bf16.msra.mxu0 %v5991_v35  ;;  %v5994_v54 = vpack.c.bf16 %v5538_v43, %v5528_v21  ;;  %v5995_v35 = vpack.c.bf16 %v5516_v33, %v5506_v30  ;;  %v5997_v43 = vpack.c.bf16 %v5494_v12, %v5484_v5 }
 0x362   : > { %v4013_v62 = vpop.eup %4012  ;;  %v2603_v34 = vmul.f32 1.442695, %v2503_v50 }
 0x363   : > { %v1710_v36 = vpop.f32.mrf.mxu0  ;;  %v2676_v18 = vpack.c.bf16 %v4013_v62, %v4011_v60  ;;  %v5996_v62 = vld [vmem:[#allocation13_spill] sm:$0xff] }
 0x364   : > { %v1987_v41 = vpop.f32.mrf.mxu1  ;;  %v2207_v9 = vpop.f32.mrf.mxu2  ;;  %4014 = vpow2.f32 %v2603_v34  ;;  %v2947_v50 = vadd.f32 %v5474_v17, %v5996_v62 }
 0x365   : > { %v5649_v31 = vadd.f32 %v1987_v41, %v1710_v36  ;;  %vm2312_vm9 = vcmp.gt.f32.partialorder %v2207_v9, 0.0  ;;  %v2376_v1 = vmul.f32 0.2, %v2207_v9  ;;  %2848 = vmatmul.bf16.gmra.mxu3 %v2676_v18  ;;  %3160 = vmatpush.bf16.msra.mxu0 %v5992_v27 }
 0x367   : > { %v2037_v10 = vpack.c.bf16 %v5649_v31, %v5647_v61  ;;  %v2440_v55 = vsel %vm2312_vm9, %v2207_v9, %v2376_v1 }
 0x368   : > { %v2504_v2 = vsub.f32 0.0, %v2440_v55  ;;  %v2809_v11 = vpop.f32.mrf.mxu3 }
 0x369   : > { %v5658_v59 = vmul.f32 %v2946_v42, %v2809_v11  ;;  %2249 = vmatmul.bf16.gmra.mxu2 %v2037_v10  ;;  %3161 = vmatpush.bf16.msra.mxu0 %v5994_v54  ;;  %v2948_v11 = vadd.f32 %v5474_v17, %v5321_v46 }
 0x36a   : > { %v2605_v24 = vmul.f32 1.442695, %v2504_v2  ;;  %v4015_v41 = vpop.eup %4014 }
 0x36b   : > { %v1713_v37 = vpop.f32.mrf.mxu0 }
 0x36c   : > { %4016 = vpow2.f32 %v2605_v24  ;;  %v1990_v26 = vpop.f32.mrf.mxu1  ;;  %v2210_v15 = vpop.f32.mrf.mxu2 }
 0x36d   : > { %vm2313_vm5 = vcmp.gt.f32.partialorder %v2210_v15, 0.0  ;;  %v2377_v60 = vmul.f32 0.2, %v2210_v15  ;;  %3162 = vmatpush.bf16.msra.mxu0 %v5995_v35  ;;  %v5675_v55 = vadd.f32 %v1990_v26, %v1713_v37 }
 0x36f   : > { %v2441_v36 = vsel %vm2313_vm5, %v2210_v15, %v2377_v60 }
 0x370   : > { %v2811_v18 = vpop.f32.mrf.mxu3  ;;  %v2505_v1 = vsub.f32 0.0, %v2441_v36 }
 0x371   : > { %v5668_v21 = vmul.f32 %v2947_v50, %v2811_v18  ;;  %3163 = vmatpush.bf16.msra.mxu0 %v5997_v43  ;;  %v2949_v50 = vadd.f32 %v5474_v17, %v5328_v38 }
 0x372   : > { %v4017_v9 = vpop.eup %4016  ;;  %v2607_v2 = vmul.f32 1.442695, %v2505_v1 }
 0x373   : > { %v1715_v34 = vpop.f32.mrf.mxu0  ;;  %v2677_v30 = vpack.c.bf16 %v4017_v9, %v4015_v41 }
 0x374   : > { %v1992_v33 = vpop.f32.mrf.mxu1  ;;  %v2212_v10 = vpop.f32.mrf.mxu2  ;;  %3837 = vmatmul.lmr.bf16.vlgmr.msra.gmra.4.mxu0  ;;  %4018 = vpow2.f32 %v2607_v2 }
 0x375   : > { %v5677_v20 = vadd.f32 %v1992_v33, %v1715_v34  ;;  %vm2314_vm3 = vcmp.gt.f32.partialorder %v2212_v10, 0.0  ;;  %v2378_v42 = vmul.f32 0.2, %v2212_v10  ;;  %2853 = vmatmul.bf16.gmra.mxu3 %v2677_v30 }
 0x377   : > { %v2038_v5 = vpack.c.bf16 %v5677_v20, %v5675_v55  ;;  %v2442_v12 = vsel %vm2314_vm3, %v2212_v10, %v2378_v42 }
 0x378   : > { %v2506_v54 = vsub.f32 0.0, %v2442_v12  ;;  %v2814_v24 = vpop.f32.mrf.mxu3 }
 0x379   : > { %v5683_v15 = vmul.f32 %v2948_v11, %v2814_v24  ;;  %2254 = vmatmul.bf16.gmra.mxu2 %v2038_v5 }
 0x37a   : > { %v2609_v37 = vmul.f32 1.442695, %v2506_v54  ;;  %v4019_v46 = vpop.eup %4018  ;;  %v2950_v54 = vadd.f32 %v5474_v17, %v5358_v48 }
 0x37b   : > { %v1718_v26 = vpop.f32.mrf.mxu0 }
 0x37c   : > { %4020 = vpow2.f32 %v2609_v37  ;;  %v1995_v60 = vpop.f32.mrf.mxu1  ;;  %v2215_v35 = vpop.f32.mrf.mxu2  ;;  %3838 = vmatmul.lmr.bf16.gmra.4.mxu0 }
 0x37d   : > { %vm2315_vm14 = vcmp.gt.f32.partialorder %v2215_v35, 0.0  ;;  %v2379_v62 = vmul.f32 0.2, %v2215_v35  ;;  %v5691_v42 = vadd.f32 %v1995_v60, %v1718_v26 }
 0x37f   : > { %v2443_v36 = vsel %vm2315_vm14, %v2215_v35, %v2379_v62 }
 0x380   : > { %v2816_v18 = vpop.f32.mrf.mxu3  ;;  %v2507_v9 = vsub.f32 0.0, %v2443_v36 }
 0x381   : > { %v5687_v41 = vmul.f32 %v2949_v50, %v2816_v18  ;;  %v2951_v18 = vadd.f32 %v5474_v17, %v5360_v13 }
 0x382   : > { %v4021_v43 = vpop.eup %4020  ;;  %v2611_v5 = vmul.f32 1.442695, %v2507_v9 }
 0x383   : > { %v1720_v34 = vpop.f32.mrf.mxu0  ;;  %v2678_v30 = vpack.c.bf16 %v4021_v43, %v4019_v46 }
 0x384   : > { %v1997_v33 = vpop.f32.mrf.mxu1  ;;  %v2217_v10 = vpop.f32.mrf.mxu2  ;;  %3839 = vmatmul.lmr.bf16.gmra.4.mxu0  ;;  %4022 = vpow2.f32 %v2611_v5 }
 0x385   : > { %v5693_v2 = vadd.f32 %v1997_v33, %v1720_v34  ;;  %vm2316_vm2 = vcmp.gt.f32.partialorder %v2217_v10, 0.0  ;;  %v2380_v38 = vmul.f32 0.2, %v2217_v10  ;;  %2858 = vmatmul.bf16.gmra.mxu3 %v2678_v30 }
 0x387   : > { %v2039_v12 = vpack.c.bf16 %v5693_v2, %v5691_v42  ;;  %v2444_v11 = vsel %vm2316_vm2, %v2217_v10, %v2380_v38 }
 0x388   : > { %v2508_v24 = vsub.f32 0.0, %v2444_v11  ;;  %v2819_v37 = vpop.f32.mrf.mxu3 }
 0x389   : > { %v5699_v35 = vmul.f32 %v2950_v54, %v2819_v37  ;;  %2259 = vmatmul.bf16.gmra.mxu2 %v2039_v12 }
 0x38a   : > { %v2613_v26 = vmul.f32 1.442695, %v2508_v24  ;;  %v4023_v48 = vpop.eup %4022 }
 0x38b   : > { %v1723_v60 = vpop.f32.mrf.mxu0 }
 0x38c   : > { %4024 = vpow2.f32 %v2613_v26  ;;  %v2000_v62 = vpop.f32.mrf.mxu1  ;;  %v2220_v50 = vpop.f32.mrf.mxu2  ;;  %3840 = vmatmul.lmr.bf16.gmra.4.mxu0 }
 0x38d   : > { %vm2317_vm7 = vcmp.gt.f32.partialorder %v2220_v50, 0.0  ;;  %v2381_v36 = vmul.f32 0.2, %v2220_v50  ;;  %v5707_v11 = vadd.f32 %v2000_v62, %v1723_v60 }
 0x38f   : > { %v2445_v46 = vsel %vm2317_vm7, %v2220_v50, %v2381_v36  ;;  %v2952_v50 = vadd.f32 %v5474_v17, %v5379_v6 }
 0x390   : > { %v2821_v43 = vpop.f32.mrf.mxu3  ;;  %v2509_v30 = vsub.f32 0.0, %v2445_v46 }
 0x391   : > { %v5703_v9 = vmul.f32 %v2951_v18, %v2821_v43 }
 0x392   : > { %v4025_v34 = vpop.eup %4024  ;;  %v2615_v24 = vmul.f32 1.442695, %v2509_v30  ;;  %v5998_v30 = vld [vmem:[#allocation14_spill] sm:$0xff] }
 0x393   : > { %v1725_v10 = vpop.f32.mrf.mxu0  ;;  %v2679_v38 = vpack.c.bf16 %v4025_v34, %v4023_v48 }
 0x394   : > { %v2002_v5 = vpop.f32.mrf.mxu1  ;;  %v2222_v12 = vpop.f32.mrf.mxu2  ;;  %4026 = vpow2.f32 %v2615_v24 }
 0x395   : > { %v5709_v54 = vadd.f32 %v2002_v5, %v1725_v10  ;;  %vm2318_vm15 = vcmp.gt.f32.partialorder %v2222_v12, 0.0  ;;  %v2382_v13 = vmul.f32 0.2, %v2222_v12  ;;  %2863 = vmatmul.bf16.gmra.mxu3 %v2679_v38  ;;  %v2953_v10 = vadd.f32 %v5474_v17, %v5998_v30 }
 0x397   : > { %v2040_v37 = vpack.c.bf16 %v5709_v54, %v5707_v11  ;;  %v2446_v26 = vsel %vm2318_vm15, %v2222_v12, %v2382_v13 }
 0x398   : > { %v2510_v36 = vsub.f32 0.0, %v2446_v26  ;;  %v2824_v18 = vpop.f32.mrf.mxu3 }
 0x399   : > { %v5715_v46 = vmul.f32 %v2952_v50, %v2824_v18  ;;  %2264 = vmatmul.bf16.gmra.mxu2 %v2040_v37 }
 0x39a   : > { %v2617_v60 = vmul.f32 1.442695, %v2510_v36  ;;  %v4027_v12 = vpop.eup %4026 }
 0x39b   : > { %v1728_v62 = vpop.f32.mrf.mxu0 }
 0x39c   : > { %4028 = vpow2.f32 %v2617_v60  ;;  %v2005_v43 = vpop.f32.mrf.mxu1  ;;  %v2225_v48 = vpop.f32.mrf.mxu2 }
 0x39d   : > { %vm2319_vm10 = vcmp.gt.f32.partialorder %v2225_v48, 0.0  ;;  %v2383_v34 = vmul.f32 0.2, %v2225_v48  ;;  %v5723_v60 = vadd.f32 %v2005_v43, %v1728_v62  ;;  %v2954_v43 = vadd.f32 %v5474_v17, %v5401_v25 }
 0x39f   : > { %v2447_v38 = vsel %vm2319_vm10, %v2225_v48, %v2383_v34 }
 0x3a0   : > { %v2826_v5 = vpop.f32.mrf.mxu3  ;;  %v2511_v26 = vsub.f32 0.0, %v2447_v38 }
 0x3a1   : > { %v5719_v6 = vmul.f32 %v2953_v10, %v2826_v5 }
 0x3a2   : > { %v4029_v13 = vpop.eup %4028  ;;  %v2619_v48 = vmul.f32 1.442695, %v2511_v26 }
 0x3a3   : > { %v1730_v24 = vpop.f32.mrf.mxu0  ;;  %v2680_v50 = vpack.c.bf16 %v4029_v13, %v4027_v12  ;;  %v2955_v13 = vadd.f32 %v5474_v17, %v5403_v19 }
 0x3a4   : > { %v2007_v36 = vpop.f32.mrf.mxu1  ;;  %v2227_v18 = vpop.f32.mrf.mxu2  ;;  %4030 = vpow2.f32 %v2619_v48 }
 0x3a5   : > { %v5725_v44 = vadd.f32 %v2007_v36, %v1730_v24  ;;  %vm2320_vm8 = vcmp.gt.f32.partialorder %v2227_v18, 0.0  ;;  %v2384_v30 = vmul.f32 0.2, %v2227_v18  ;;  %2868 = vmatmul.bf16.gmra.mxu3 %v2680_v50 }
 0x3a7   : > { %5999 = vst [vmem:[#allocation8_spill] sm:$0xff] %v5725_v44  ;;  %v2041_v34 = vpack.c.bf16 %v5725_v44, %v5723_v60  ;;  %v2448_v10 = vsel %vm2320_vm8, %v2227_v18, %v2384_v30 }
 0x3a8   : > { %v2512_v38 = vsub.f32 0.0, %v2448_v10  ;;  %v2829_v5 = vpop.f32.mrf.mxu3 }
 0x3a9   : > { %2269 = vmatmul.bf16.gmra.mxu2 %v2041_v34  ;;  %v5733_v36 = vmul.f32 %v2954_v43, %v2829_v5 }
 0x3aa   : > { %v2621_v27 = vmul.f32 1.442695, %v2512_v38  ;;  %v4031_v50 = vpop.eup %4030 }
 0x3ac   : > { %4032 = vpow2.f32 %v2621_v27  ;;  %v2230_v12 = vpop.f32.mrf.mxu2 }
 0x3ad   : > { %vm2321_vm1 = vcmp.gt.f32.partialorder %v2230_v12, 0.0  ;;  %v2385_v62 = vmul.f32 0.2, %v2230_v12 }
 0x3af   : > { %v2449_v26 = vsel %vm2321_vm1, %v2230_v12, %v2385_v62 }
 0x3b0   : > { %v2831_v24 = vpop.f32.mrf.mxu3  ;;  %v2513_v34 = vsub.f32 0.0, %v2449_v26  ;;  %v2957_v26 = vadd.f32 %v5474_v17, %v5423_v22 }
 0x3b1   : > { %v5735_v18 = vmul.f32 %v2955_v13, %v2831_v24  ;;  %v2956_v13 = vadd.f32 %v5474_v17, %v5421_v40 }
 0x3b2   : > { %v4033_v30 = vpop.eup %4032  ;;  %v2623_v25 = vmul.f32 1.442695, %v2513_v34 }
 0x3b3   : > { %v2681_v48 = vpack.c.bf16 %v4033_v30, %v4031_v50 }
 0x3b4   : > { %v2232_v10 = vpop.f32.mrf.mxu2  ;;  %4034 = vpow2.f32 %v2623_v25 }
 0x3b5   : > { %vm2322_vm13 = vcmp.gt.f32.partialorder %v2232_v10, 0.0  ;;  %v2386_v38 = vmul.f32 0.2, %v2232_v10  ;;  %2873 = vmatmul.bf16.gmra.mxu3 %v2681_v48 }
 0x3b7   : > { %v2450_v1 = vsel %vm2322_vm13, %v2232_v10, %v2386_v38 }
 0x3b8   : > { %v2514_v19 = vsub.f32 0.0, %v2450_v1  ;;  %v2834_v12 = vpop.f32.mrf.mxu3 }
 0x3b9   : > { %v3020_v48 = vmul.f32 %v2956_v13, %v2834_v12  ;;  %v5746_v12 = vld [vmem:[%s5928_s7] ss:$0 sm:$0xff] }
 0x3ba   : > { %v2625_v62 = vmul.f32 1.442695, %v2514_v19  ;;  %v4035_v30 = vpop.eup %4034 }
 0x3bc   : > { %4036 = vpow2.f32 %v2625_v62  ;;  %v2235_v5 = vpop.f32.mrf.mxu2 }
 0x3bd   : > { %vm2323_vm11 = vcmp.gt.f32.partialorder %v2235_v5, 0.0  ;;  %v2387_v43 = vmul.f32 0.2, %v2235_v5 }
 0x3bf   : > { %v2451_v24 = vsel %vm2323_vm11, %v2235_v5, %v2387_v43  ;;  %v2958_v5 = vadd.f32 %v5746_v12, %v5435_v63  ;;  %v2959_v43 = vadd.f32 %v5746_v12, %v5437_v53  ;;  %v2960_v63 = vadd.f32 %v5746_v12, %v5447_v32 }
 0x3c0   : > { %v2836_v50 = vpop.f32.mrf.mxu3  ;;  %v2515_v1 = vsub.f32 0.0, %v2451_v24 }
 0x3c1   : > { %v3021_v34 = vmul.f32 %v2957_v26, %v2836_v50 }
 0x3c2   : > { %v4037_v10 = vpop.eup %4036  ;;  %v2627_v33 = vmul.f32 1.442695, %v2515_v1 }
 0x3c3   : > { %v3070_v38 = vpack.c.bf16 %v3021_v34, %v3020_v48  ;;  %v2682_v19 = vpack.c.bf16 %v4037_v10, %v4035_v30 }
 0x3c4   : > { %v2237_v25 = vpop.f32.mrf.mxu2  ;;  %4038 = vpow2.f32 %v2627_v33 }
 0x3c5   : > { %vm2324_vm0 = vcmp.gt.f32.partialorder %v2237_v25, 0.0  ;;  %v2388_v62 = vmul.f32 0.2, %v2237_v25  ;;  %2878 = vmatmul.bf16.gmra.mxu3 %v2682_v19 }
 0x3c7   : > { %v2452_v37 = vsel %vm2324_vm0, %v2237_v25, %v2388_v62 }
 0x3c8   : > { %v2516_v27 = vsub.f32 0.0, %v2452_v37  ;;  %v2839_v40 = vpop.f32.mrf.mxu3 }
 0x3ca   : > { %v2629_v44 = vmul.f32 1.442695, %v2516_v27  ;;  %v4039_v26 = vpop.eup %4038  ;;  %v3022_v27 = vmul.f32 %v2958_v5, %v2839_v40  ;;  %v2961_v5 = vadd.f32 %v5746_v12, %v5449_v3  ;;  %v6002_v3 = vpack.c.bf16 %v5703_v9, %v5699_v35 }
 0x3cb   : > { %v6004_v35 = vpack.c.bf16 %v5668_v21, %v5658_v59 }
 0x3cc   : > { %4040 = vpow2.f32 %v2629_v44  ;;  %v2240_v22 = vpop.f32.mrf.mxu2 }
 0x3cd   : > { %vm2325_vm6 = vcmp.gt.f32.partialorder %v2240_v22, 0.0  ;;  %v2389_v17 = vmul.f32 0.2, %v2240_v22 }
 0x3cf   : > { %v2453_v13 = vsel %vm2325_vm6, %v2240_v22, %v2389_v17  ;;  %v6000_v17 = vpack.c.bf16 %v5735_v18, %v5733_v36 }
 0x3d0   : > { %v2841_v37 = vpop.f32.mrf.mxu3  ;;  %v2517_v24 = vsub.f32 0.0, %v2453_v13 }
 0x3d1   : > { %v3023_v33 = vmul.f32 %v2959_v43, %v2841_v37 }
 0x3d2   : > { %v4041_v44 = vpop.eup %4040  ;;  %v2631_v10 = vmul.f32 1.442695, %v2517_v24 }
 0x3d3   : > { %v3071_v50 = vpack.c.bf16 %v3023_v33, %v3022_v27  ;;  %v2683_v30 = vpack.c.bf16 %v4041_v44, %v4039_v26 }
 0x3d4   : > { %v2242_v48 = vpop.f32.mrf.mxu2  ;;  %4042 = vpow2.f32 %v2631_v10 }
 0x3d5   : > { %vm2326_vm12 = vcmp.gt.f32.partialorder %v2242_v48, 0.0  ;;  %v2390_v34 = vmul.f32 0.2, %v2242_v48  ;;  %2883 = vmatmul.bf16.gmra.mxu3 %v2683_v30  ;;  %3175 = vmatpush.bf16.msra.mxu1 %v3071_v50  ;;  %v2962_v30 = vadd.f32 %v5746_v12, %v5459_v0  ;;  %v2963_v0 = vadd.f32 %v5746_v12, %v5461_v4 }
 0x3d7   : > { %v2454_v1 = vsel %vm2326_vm12, %v2242_v48, %v2390_v34  ;;  %v6003_v34 = vpack.c.bf16 %v5687_v41, %v5683_v15  ;;  %v6005_v15 = vpack.c.bf16 %v5640_v56, %v5633_v7 }
 0x3d8   : > { %v2518_v53 = vsub.f32 0.0, %v2454_v1  ;;  %v2844_v19 = vpop.f32.mrf.mxu3 }
 0x3d9   : > { %v3024_v25 = vmul.f32 %v2960_v63, %v2844_v19  ;;  %3176 = vmatpush.bf16.msra.mxu1 %v3070_v38  ;;  %v6001_v38 = vpack.c.bf16 %v5719_v6, %v5715_v46 }
 0x3da   : > { %v2633_v62 = vmul.f32 1.442695, %v2518_v53  ;;  %v4043_v32 = vpop.eup %4042 }
 0x3dc   : > { %4044 = vpow2.f32 %v2633_v62  ;;  %v2245_v40 = vpop.f32.mrf.mxu2 }
 0x3dd   : > { %vm2327_vm4 = vcmp.gt.f32.partialorder %v2245_v40, 0.0  ;;  %v2391_v22 = vmul.f32 0.2, %v2245_v40  ;;  %3177 = vmatpush.bf16.msra.mxu1 %v6000_v17 }
 0x3df   : > { %v2455_v43 = vsel %vm2327_vm4, %v2245_v40, %v2391_v22 }
 0x3e0   : > { %v2846_v13 = vpop.f32.mrf.mxu3  ;;  %v2519_v27 = vsub.f32 0.0, %v2455_v43 }
 0x3e1   : > { %v3025_v37 = vmul.f32 %v2961_v5, %v2846_v13  ;;  %3178 = vmatpush.bf16.msra.mxu1 %v6001_v38  ;;  %v2964_v5 = vadd.f32 %v5746_v12, %v5476_v39  ;;  %v2965_v38 = vadd.f32 %v5746_v12, %v5478_v49 }
 0x3e2   : > { %v4045_v26 = vpop.eup %4044  ;;  %v2635_v18 = vmul.f32 1.442695, %v2519_v27 }
 0x3e3   : > { %v5762_v33 = vpack.c.bf16 %v3025_v37, %v3024_v25  ;;  %v2684_v44 = vpack.c.bf16 %v4045_v26, %v4043_v32 }
 0x3e4   : > { %v2247_v24 = vpop.f32.mrf.mxu2  ;;  %4046 = vpow2.f32 %v2635_v18 }
 0x3e5   : > { %vm2328_vm9 = vcmp.gt.f32.partialorder %v2247_v24, 0.0  ;;  %v2392_v36 = vmul.f32 0.2, %v2247_v24  ;;  %2888 = vmatmul.bf16.gmra.mxu3 %v2684_v44  ;;  %3179 = vmatpush.bf16.msra.mxu1 %v6002_v3 }
 0x3e7   : > { %v2456_v50 = vsel %vm2328_vm9, %v2247_v24, %v2392_v36 }
 0x3e8   : > { %v2520_v46 = vsub.f32 0.0, %v2456_v50  ;;  %v2849_v6 = vpop.f32.mrf.mxu3 }
 0x3e9   : > { %v3026_v48 = vmul.f32 %v2962_v30, %v2849_v6  ;;  %3180 = vmatpush.bf16.msra.mxu1 %v6003_v34 }
 0x3ea   : > { %v2637_v10 = vmul.f32 1.442695, %v2520_v46  ;;  %v4047_v19 = vpop.eup %4046 }
 0x3ec   : > { %4048 = vpow2.f32 %v2637_v10  ;;  %v2250_v1 = vpop.f32.mrf.mxu2 }
 0x3ed   : > { %vm2329_vm5 = vcmp.gt.f32.partialorder %v2250_v1, 0.0  ;;  %v2393_v63 = vmul.f32 0.2, %v2250_v1  ;;  %3181 = vmatpush.bf16.msra.mxu1 %v6004_v35 }
 0x3ef   : > { %v2457_v9 = vsel %vm2329_vm5, %v2250_v1, %v2393_v63 }
 0x3f0   : > { %v2851_v53 = vpop.f32.mrf.mxu3  ;;  %v2521_v62 = vsub.f32 0.0, %v2457_v9 }
 0x3f1   : > { %v3027_v25 = vmul.f32 %v2963_v0, %v2851_v53  ;;  %3182 = vmatpush.bf16.msra.mxu1 %v6005_v15  ;;  %v2967_v0 = vadd.f32 %v5746_v12, %v5500_v47 }
 0x3f2   : > { %v4049_v41 = vpop.eup %4048  ;;  %v2639_v21 = vmul.f32 1.442695, %v2521_v62 }
 0x3f3   : > { %v5780_v40 = vpack.c.bf16 %v3027_v25, %v3026_v48  ;;  %v2685_v22 = vpack.c.bf16 %v4049_v41, %v4047_v19  ;;  %v2966_v48 = vadd.f32 %v5746_v12, %v5498_v45 }
 0x3f4   : > { %v2252_v17 = vpop.f32.mrf.mxu2  ;;  %3853 = vmatmul.lmr.bf16.vlgmr.msra.gmra.4.mxu1  ;;  %4050 = vpow2.f32 %v2639_v21 }
 0x3f5   : > { %vm2330_vm3 = vcmp.gt.f32.partialorder %v2252_v17, 0.0  ;;  %v2394_v59 = vmul.f32 0.2, %v2252_v17  ;;  %2893 = vmatmul.bf16.gmra.mxu3 %v2685_v22 }
 0x3f7   : > { %v2458_v4 = vsel %vm2330_vm3, %v2252_v17, %v2394_v59 }
 0x3f8   : > { %v2522_v43 = vsub.f32 0.0, %v2458_v4  ;;  %v2854_v13 = vpop.f32.mrf.mxu3  ;;  %v2968_v4 = vadd.f32 %v5746_v12, %v5520_v57 }
 0x3f9   : > { %v3028_v32 = vmul.f32 %v2964_v5, %v2854_v13 }
 0x3fa   : > { %v2641_v7 = vmul.f32 1.442695, %v2522_v43  ;;  %v4051_v44 = vpop.eup %4050 }
 0x3fc   : > { %4052 = vpow2.f32 %v2641_v7  ;;  %v2255_v56 = vpop.f32.mrf.mxu2  ;;  %3854 = vmatmul.lmr.bf16.gmra.4.mxu1 }
 0x3fd   : > { %vm2331_vm14 = vcmp.gt.f32.partialorder %v2255_v56, 0.0  ;;  %v2395_v37 = vmul.f32 0.2, %v2255_v56 }
 0x3ff   : > { %v2459_v26 = vsel %vm2331_vm14, %v2255_v56, %v2395_v37  ;;  %v2969_v56 = vadd.f32 %v5746_v12, %v5522_v29 }
 0x400   : > { %v2856_v27 = vpop.f32.mrf.mxu3  ;;  %v2523_v3 = vsub.f32 0.0, %v2459_v26 }
 0x401   : > { %v3029_v24 = vmul.f32 %v2965_v38, %v2856_v27 }
 0x402   : > { %v4053_v36 = vpop.eup %4052  ;;  %v2643_v46 = vmul.f32 1.442695, %v2523_v3 }
 0x403   : > { %v5786_v39 = vpack.c.bf16 %v3029_v24, %v3028_v32  ;;  %v2686_v18 = vpack.c.bf16 %v4053_v36, %v4051_v44 }
 0x404   : > { %v2257_v50 = vpop.f32.mrf.mxu2  ;;  %3855 = vmatmul.lmr.bf16.gmra.4.mxu1  ;;  %4054 = vpow2.f32 %v2643_v46 }
 0x405   : > { %vm2332_vm2 = vcmp.gt.f32.partialorder %v2257_v50, 0.0  ;;  %v2396_v30 = vmul.f32 0.2, %v2257_v50  ;;  %2898 = vmatmul.bf16.gmra.mxu3 %v2686_v18 }
 0x407   : > { %v2460_v6 = vsel %vm2332_vm2, %v2257_v50, %v2396_v30 }
 0x408   : > { %v2524_v49 = vsub.f32 0.0, %v2460_v6  ;;  %v2859_v34 = vpop.f32.mrf.mxu3 }
 0x409   : > { %v3030_v10 = vmul.f32 %v2966_v48, %v2859_v34  ;;  %v2970_v34 = vadd.f32 %v5746_v12, %v5542_v58 }
 0x40a   : > { %v2645_v1 = vmul.f32 1.442695, %v2524_v49  ;;  %v4055_v19 = vpop.eup %4054 }
 0x40c   : > { %4056 = vpow2.f32 %v2645_v1  ;;  %v2260_v63 = vpop.f32.mrf.mxu2  ;;  %3856 = vmatmul.lmr.bf16.gmra.4.mxu1 }
 0x40d   : > { %vm2333_vm7 = vcmp.gt.f32.partialorder %v2260_v63, 0.0  ;;  %v2397_v35 = vmul.f32 0.2, %v2260_v63 }
 0x40f   : > { %v2461_v9 = vsel %vm2333_vm7, %v2260_v63, %v2397_v35 }
 0x410   : > { %v2861_v53 = vpop.f32.mrf.mxu3  ;;  %v2525_v41 = vsub.f32 0.0, %v2461_v9 }
 0x411   : > { %v3031_v25 = vmul.f32 %v2967_v0, %v2861_v53 }
 0x412   : > { %v4057_v15 = vpop.eup %4056  ;;  %v2647_v59 = vmul.f32 1.442695, %v2525_v41 }
 0x413   : > { %v5792_v45 = vpack.c.bf16 %v3031_v25, %v3030_v10  ;;  %v2687_v62 = vpack.c.bf16 %v4057_v15, %v4055_v19  ;;  %v2971_v10 = vadd.f32 %v5746_v12, %v5544_v23  ;;  %v2972_v23 = vadd.f32 %v5746_v12, %v5566_v51 }
 0x414   : > { %v2262_v22 = vpop.f32.mrf.mxu2  ;;  %4058 = vpow2.f32 %v2647_v59 }
 0x415   : > { %vm2334_vm15 = vcmp.gt.f32.partialorder %v2262_v22, 0.0  ;;  %v2398_v17 = vmul.f32 0.2, %v2262_v22  ;;  %2903 = vmatmul.bf16.gmra.mxu3 %v2687_v62 }
 0x417   : > { %v2462_v21 = vsel %vm2334_vm15, %v2262_v22, %v2398_v17 }
 0x418   : > { %v2526_v5 = vsub.f32 0.0, %v2462_v21  ;;  %v2864_v47 = vpop.f32.mrf.mxu3 }
 0x419   : > { %v3032_v43 = vmul.f32 %v2968_v4, %v2864_v47  ;;  %v2973_v4 = vadd.f32 %v5746_v12, %v5568_v14  ;;  %v6006_v14 = vld [vmem:[#allocation15_spill] sm:$0xff] }
 0x41a   : > { %v2649_v13 = vmul.f32 1.442695, %v2526_v5  ;;  %v4059_v26 = vpop.eup %4058 }
 0x41c   : > { %4060 = vpow2.f32 %v2649_v13  ;;  %v2265_v32 = vpop.f32.mrf.mxu2 }
 0x41d   : > { %vm2335_vm10 = vcmp.gt.f32.partialorder %v2265_v32, 0.0  ;;  %v2399_v7 = vmul.f32 0.2, %v2265_v32 }
 0x41f   : > { %v2463_v37 = vsel %vm2335_vm10, %v2265_v32, %v2399_v7 }
 0x420   : > { %v2866_v38 = vpop.f32.mrf.mxu3  ;;  %v2527_v24 = vsub.f32 0.0, %v2463_v37 }
 0x421   : > { %v3033_v27 = vmul.f32 %v2969_v56, %v2866_v38  ;;  %v2974_v38 = vadd.f32 %v5746_v12, %v5589_v28 }
 0x422   : > { %v4061_v44 = vpop.eup %4060  ;;  %v2651_v50 = vmul.f32 1.442695, %v2527_v24 }
 0x423   : > { %v5798_v36 = vpack.c.bf16 %v3033_v27, %v3032_v43  ;;  %v2688_v57 = vpack.c.bf16 %v4061_v44, %v4059_v26  ;;  %v2975_v26 = vadd.f32 %v5746_v12, %v5591_v16 }
 0x424   : > { %v2267_v3 = vpop.f32.mrf.mxu2  ;;  %4062 = vpow2.f32 %v2651_v50  ;;  %v6007_v50 = vld [vmem:[#allocation16_spill] sm:$0xff] }
 0x425   : > { %vm2336_vm8 = vcmp.gt.f32.partialorder %v2267_v3, 0.0  ;;  %v2400_v18 = vmul.f32 0.2, %v2267_v3  ;;  %2908 = vmatmul.bf16.gmra.mxu3 %v2688_v57  ;;  %v2976_v57 = vadd.f32 %v5746_v12, %v6006_v14  ;;  %v2977_v28 = vadd.f32 %v5746_v12, %v6007_v50 }
 0x427   : > { %v2464_v30 = vsel %vm2336_vm8, %v2267_v3, %v2400_v18 }
 0x428   : > { %v2528_v46 = vsub.f32 0.0, %v2464_v30  ;;  %v2869_v6 = vpop.f32.mrf.mxu3 }
 0x429   : > { %v3034_v0 = vmul.f32 %v2970_v34, %v2869_v6  ;;  %v6008_v6 = vld [vmem:[#allocation7_spill] sm:$0xff] }
 0x42a   : > { %v2653_v48 = vmul.f32 1.442695, %v2528_v46  ;;  %v4063_v35 = vpop.eup %4062 }
 0x42c   : > { %4064 = vpow2.f32 %v2653_v48  ;;  %v2270_v29 = vpop.f32.mrf.mxu2  ;;  %v2978_v48 = vadd.f32 %v5746_v12, %v6008_v6 }
 0x42d   : > { %vm2337_vm1 = vcmp.gt.f32.partialorder %v2270_v29, 0.0  ;;  %v2401_v49 = vmul.f32 0.2, %v2270_v29 }
 0x42f   : > { %v2465_v1 = vsel %vm2337_vm1, %v2270_v29, %v2401_v49 }
 0x430   : > { %v2871_v63 = vpop.f32.mrf.mxu3  ;;  %v2529_v19 = vsub.f32 0.0, %v2465_v1 }
 0x431   : > { %v3035_v9 = vmul.f32 %v2971_v10, %v2871_v63  ;;  %v2980_v63 = vadd.f32 %v5746_v12, %v5625_v52  ;;  %v2984_v52 = vadd.f32 %v5746_v12, %v5675_v55  ;;  %v3937_v55 = vpop.trf.xlu2 }
 0x432   : > { %v4065_v53 = vpop.eup %4064  ;;  %v2655_v22 = vmul.f32 1.442695, %v2529_v19  ;;  %v2982_v19 = vadd.f32 %v5746_v12, %v5647_v61 }
 0x433   : > { %v3077_v25 = vpack.c.bf16 %v3035_v9, %v3034_v0  ;;  %v2689_v15 = vpack.c.bf16 %v4065_v53, %v4063_v35 }
 0x434   : > { %v2272_v41 = vpop.f32.mrf.mxu2  ;;  %4066 = vpow2.f32 %v2655_v22 }
 0x435   : > { %vm2338_vm13 = vcmp.gt.f32.partialorder %v2272_v41, 0.0  ;;  %v2402_v62 = vmul.f32 0.2, %v2272_v41  ;;  %2913 = vmatmul.bf16.gmra.mxu3 %v2689_v15 }
 0x437   : > { %v2466_v17 = vsel %vm2338_vm13, %v2272_v41, %v2402_v62 }
 0x438   : > { %v2530_v59 = vsub.f32 0.0, %v2466_v17  ;;  %v2874_v58 = vpop.f32.mrf.mxu3 }
 0x439   : > { %v3036_v43 = vmul.f32 %v2972_v23, %v2874_v58 }
 0x43a   : > { %v2657_v21 = vmul.f32 1.442695, %v2530_v59  ;;  %v4067_v47 = vpop.eup %4066 }
 0x43c   : > { %4068 = vpow2.f32 %v2657_v21 }
 0x440   : > { %v2876_v5 = vpop.f32.mrf.mxu3 }
 0x441   : > { %v3037_v13 = vmul.f32 %v2973_v4, %v2876_v5  ;;  %v2986_v4 = vadd.f32 %v5746_v12, %v5691_v42 }
 0x442   : > { %v4069_v32 = vpop.eup %4068 }
 0x443   : > { %v3078_v7 = vpack.c.bf16 %v3037_v13, %v3036_v43  ;;  %v2690_v56 = vpack.c.bf16 %v4069_v32, %v4067_v47 }
 0x445   : > { %2918 = vmatmul.bf16.gmra.mxu3 %v2690_v56  ;;  %v2989_v56 = vadd.f32 %v5746_v12, %v5709_v54 }
 0x448   : > { %v2879_v37 = vpop.f32.mrf.mxu3 }
 0x449   : > { %v3038_v51 = vmul.f32 %v2974_v38, %v2879_v37 }
 0x450   : > { %v2881_v27 = vpop.f32.mrf.mxu3 }
 0x451   : > { %v3039_v44 = vmul.f32 %v2975_v26, %v2881_v27 }
 0x453   : > { %v3079_v24 = vpack.c.bf16 %v3039_v44, %v3038_v51  ;;  %v2990_v51 = vadd.f32 %v5746_v12, %v5723_v60  ;;  %v6010_v44 = vld [vmem:[#allocation8_spill] sm:$0xff]  ;;  %v3165_v60 = vpop.f32.mrf.mxu0 }
 0x455   : > { %3194 = vmatpush.bf16.msra.mxu0 %v3079_v24  ;;  %3761 = vmatpush.bf16.msrb.mxu2 %v3079_v24  ;;  %v2991_v24 = vadd.f32 %v5746_v12, %v6010_v44 }
 0x458   : > { %v2884_v3 = vpop.f32.mrf.mxu3 }
 0x459   : > { %v3040_v18 = vmul.f32 %v2976_v57, %v2884_v3  ;;  %3195 = vmatpush.bf16.msra.mxu0 %v3078_v7  ;;  %3762 = vmatpush.bf16.msrb.mxu2 %v3078_v7  ;;  %v3938_v7 = vpop.trf.xlu2 }
 0x45d   : > { %3196 = vmatpush.bf16.msra.mxu0 %v3077_v25  ;;  %3763 = vmatpush.bf16.msrb.mxu2 %v3077_v25 }
 0x460   : > { %v2886_v30 = vpop.f32.mrf.mxu3 }
 0x461   : > { %v3041_v16 = vmul.f32 %v2977_v28, %v2886_v30  ;;  %3197 = vmatpush.bf16.msra.mxu0 %v5798_v36  ;;  %3764 = vmatpush.bf16.msrb.mxu2 %v5798_v36  ;;  %v6009_v36 = vld [vmem:[#allocation17_spill] sm:$0xff]  ;;  %v3939_v27 = vpop.trf.xlu2 }
 0x462   : > { %v2979_v34 = vadd.f32 %v5746_v12, %v6009_v36  ;;  %v3088_v36 = vld [vmem:[#allocation4] sm:$0xff] }
 0x463   : > { %v5818_v46 = vpack.c.bf16 %v3041_v16, %v3040_v18  ;;  %v3167_v18 = vpop.f32.mrf.mxu0 }
 0x465   : > { %3198 = vmatpush.bf16.msra.mxu0 %v5792_v45  ;;  %3765 = vmatpush.bf16.msrb.mxu2 %v5792_v45 }
 0x468   : > { %v2889_v29 = vpop.f32.mrf.mxu3 }
 0x469   : > { %v3042_v49 = vmul.f32 %v2978_v48, %v2889_v29  ;;  %3199 = vmatpush.bf16.msra.mxu0 %v5786_v39  ;;  %3766 = vmatpush.bf16.msrb.mxu2 %v5786_v39  ;;  %v2981_v39 = vadd.f32 %v5746_v12, %v5627_v8  ;;  %v2985_v8 = vadd.f32 %v5746_v12, %v5677_v20  ;;  %v3940_v54 = vpop.trf.xlu2 }
 0x46a   : > { %v2988_v20 = vadd.f32 %v5746_v12, %v5707_v11 }
 0x46b   : > { %v3170_v28 = vpop.f32.mrf.mxu0 }
 0x46d   : > { %3200 = vmatpush.bf16.msra.mxu0 %v5780_v40  ;;  %3767 = vmatpush.bf16.msrb.mxu2 %v5780_v40 }
 0x470   : > { %v2891_v10 = vpop.f32.mrf.mxu3 }
 0x471   : > { %v3043_v1 = vmul.f32 %v2979_v34, %v2891_v10  ;;  %3201 = vmatpush.bf16.msra.mxu0 %v5762_v33  ;;  %3768 = vmatpush.bf16.msrb.mxu2 %v5762_v33  ;;  %v2983_v33 = vadd.f32 %v5746_v12, %v5649_v31  ;;  %v2987_v31 = vadd.f32 %v5746_v12, %v5693_v2  ;;  %v3184_v12 = vpop.f32.mrf.mxu1 }
 0x472   : > { %v3185_v29 = vadd.f32 %v3184_v12, %v3165_v60 }
 0x473   : > { %v3081_v45 = vpack.c.bf16 %v3043_v1, %v3042_v49  ;;  %v3172_v16 = vpop.f32.mrf.mxu0 }
 0x474   : > { %3202 = vmatmul.bf16.vlgmr.msra.gmra.mxu0 %v3937_v55  ;;  %3207 = vmatmul.bf16.vlgmr.msrb.gmra.mxu2 %v3939_v27 }
 0x478   : > { %v2894_v35 = vpop.f32.mrf.mxu3 }
 0x479   : > { %v3044_v0 = vmul.f32 %v2980_v63, %v2894_v35  ;;  %v3186_v50 = vpop.f32.mrf.mxu1 }
 0x480   : > { %v2896_v9 = vpop.f32.mrf.mxu3 }
 0x481   : > { %v3045_v40 = vmul.f32 %v2981_v39, %v2896_v9  ;;  %v3189_v30 = vpop.f32.mrf.mxu1  ;;  %v3090_v39 = vld [vmem:[#allocation4 + $0x10] sm:$0xff] }
 0x482   : > { %v3190_v1 = vadd.f32 %v3189_v30, %v3170_v28 }
 0x483   : > { %v3082_v53 = vpack.c.bf16 %v3045_v40, %v3044_v0 }
 0x488   : > { %v2899_v25 = vpop.f32.mrf.mxu3 }
 0x489   : > { %v3046_v15 = vmul.f32 %v2982_v19, %v2899_v25  ;;  %v3191_v6 = vpop.f32.mrf.mxu1  ;;  %v3089_v19 = vld [vmem:[#allocation4 + $0x8] sm:$0xff] }
 0x490   : > { %v2901_v41 = vpop.f32.mrf.mxu3 }
 0x491   : > { %v3047_v62 = vmul.f32 %v2983_v33, %v2901_v41 }
 0x493   : > { %v3083_v22 = vpack.c.bf16 %v3047_v62, %v3046_v15  ;;  %v3192_v15 = vadd.f32 %v3191_v6, %v3172_v16 }
 0x498   : > { %v2904_v17 = vpop.f32.mrf.mxu3 }
 0x499   : > { %v3048_v59 = vmul.f32 %v2984_v52, %v2904_v17  ;;  %v3091_v17 = vld [vmem:[#allocation4 + $0x18] sm:$0xff] }
 0x4a0   : > { %v2906_v58 = vpop.f32.mrf.mxu3 }
 0x4a1   : > { %v3049_v21 = vmul.f32 %v2985_v8, %v2906_v58 }
 0x4a3   : > { %v3084_v23 = vpack.c.bf16 %v3049_v21, %v3048_v59 }
 0x4a8   : > { %v2909_v61 = vpop.f32.mrf.mxu3 }
 0x4a9   : > { %v3050_v47 = vmul.f32 %v2986_v4, %v2909_v61 }
 0x4b0   : > { %v2911_v5 = vpop.f32.mrf.mxu3 }
 0x4b1   : > { %v3051_v43 = vmul.f32 %v2987_v31, %v2911_v5 }
 0x4b3   : > { %v3085_v13 = vpack.c.bf16 %v3051_v43, %v3050_v47 }
 0x4b8   : > { %v2914_v32 = vpop.f32.mrf.mxu3 }
 0x4b9   : > { %v3052_v38 = vmul.f32 %v2988_v20, %v2914_v32 }
 0x4c0   : > { %v2916_v37 = vpop.f32.mrf.mxu3 }
 0x4c1   : > { %v3053_v42 = vmul.f32 %v2989_v56, %v2916_v37 }
 0x4c3   : > { %v3086_v26 = vpack.c.bf16 %v3053_v42, %v3052_v38 }
 0x4c8   : > { %v2919_v2 = vpop.f32.mrf.mxu3 }
 0x4c9   : > { %v3054_v57 = vmul.f32 %v2990_v51, %v2919_v2 }
 0x4d0   : > { %v2921_v14 = vpop.f32.mrf.mxu3 }
 0x4d1   : > { %v3055_v3 = vmul.f32 %v2991_v24, %v2921_v14 }
 0x4d3   : > { %v3087_v11 = vpack.c.bf16 %v3055_v3, %v3054_v57 }
 0x4d5   : > { %3213 = vmatpush.bf16.msra.mxu1 %v3087_v11  ;;  %3769 = vmatpush.bf16.msrb.mxu3 %v3087_v11 }
 0x4d9   : > { %3214 = vmatpush.bf16.msra.mxu1 %v3086_v26  ;;  %3770 = vmatpush.bf16.msrb.mxu3 %v3086_v26 }
 0x4dd   : > { %3215 = vmatpush.bf16.msra.mxu1 %v3085_v13  ;;  %3771 = vmatpush.bf16.msrb.mxu3 %v3085_v13 }
 0x4e1   : > { %3216 = vmatpush.bf16.msra.mxu1 %v3084_v23  ;;  %3772 = vmatpush.bf16.msrb.mxu3 %v3084_v23 }
 0x4e5   : > { %3217 = vmatpush.bf16.msra.mxu1 %v3083_v22  ;;  %3773 = vmatpush.bf16.msrb.mxu3 %v3083_v22 }
 0x4e9   : > { %3218 = vmatpush.bf16.msra.mxu1 %v3082_v53  ;;  %3774 = vmatpush.bf16.msrb.mxu3 %v3082_v53 }
 0x4ed   : > { %3219 = vmatpush.bf16.msra.mxu1 %v3081_v45  ;;  %3775 = vmatpush.bf16.msrb.mxu3 %v3081_v45 }
 0x4f1   : > { %3220 = vmatpush.bf16.msra.mxu1 %v5818_v46  ;;  %3776 = vmatpush.bf16.msrb.mxu3 %v5818_v46  ;;  %v3203_v48 = vpop.f32.mrf.mxu0  ;;  %v3187_v46 = vadd.f32 %v3186_v50, %v3167_v18 }
 0x4f2   : > { %v3204_v49 = vadd.f32 %v3203_v48, %v3185_v29 }
 0x4f4   : > { %3221 = vmatmul.bf16.vlgmr.msra.gmra.mxu1 %v3938_v7  ;;  %3226 = vmatmul.bf16.vlgmr.msrb.gmra.mxu3 %v3940_v54 }
 0x4f7   : > { %v3208_v10 = vpop.f32.mrf.mxu2 }
 0x4f8   : > { %v3209_v0 = vadd.f32 %v3208_v10, %v3190_v1 }
 0x4f9   : > { %v3205_v35 = vpop.f32.mrf.mxu0 }
 0x4fa   : > { %v3206_v40 = vadd.f32 %v3205_v35, %v3187_v46 }
 0x4ff   : > { %v3210_v62 = vpop.f32.mrf.mxu2 }
 0x500   : > { %v3211_v52 = vadd.f32 %v3210_v62, %v3192_v15 }
 0x571   : > { %v3222_v34 = vpop.f32.mrf.mxu1 }
 0x572   : > { %v3223_v45 = vadd.f32 %v3222_v34, %v3204_v49 }
 0x574   : > { %v3232_v63 = vadd.f32 %v3223_v45, %v3088_v36 }
 0x576   : > { %3236 = vst [vmem:[#allocation4] sm:$0xff] %v3232_v63 }
 0x577   : > { %v3227_v9 = vpop.f32.mrf.mxu3 }
 0x578   : > { %v3228_v53 = vadd.f32 %v3227_v9, %v3209_v0 }
 0x579   : > { %v3224_v25 = vpop.f32.mrf.mxu1 }
 0x57a   : > { %v3225_v33 = vadd.f32 %v3224_v25, %v3206_v40  ;;  %v3234_v41 = vadd.f32 %v3228_v53, %v3090_v39 }
 0x57c   : > { %v3233_v22 = vadd.f32 %v3225_v33, %v3089_v19  ;;  %3238 = vst [vmem:[#allocation4 + $0x10] sm:$0xff] %v3234_v41 }
 0x57e   : > { %3237 = vst [vmem:[#allocation4 + $0x8] sm:$0xff] %v3233_v22 }
 0x57f   : > { %v3229_v59 = vpop.f32.mrf.mxu3 }
 0x580   : > { %v3230_v8 = vadd.f32 %v3229_v59, %v3211_v52  ;;  %3243 = sbr.rel (%p3702_p6) target bundleno = 1606 (0x646), region = 64 }
 0x582   : > { %v3235_v58 = vadd.f32 %v3230_v8, %v3091_v17 }
 0x584   : > { %3239 = vst [vmem:[#allocation4 + $0x18] sm:$0xff] %v3235_v58 }
 0x585   : > { %v3263_v21 = vld [vmem:[%s5929_s8 + $0x78] sm:$0xff]  ;;  %v3262_v23 = vld [vmem:[%s5929_s8 + $0x70] sm:$0xff]  ;;  %v3261_v61 = vld [vmem:[%s5929_s8 + $0x68] sm:$0xff] }
 0x586   : > { %3264 = vmatpush.msra.mxu0 %v3263_v21  ;;  %3777 = vmatpush.msra.mxu1 %v3263_v21  ;;  %v3260_v4 = vld [vmem:[%s5929_s8 + $0x60] sm:$0xff]  ;;  %v3259_v31 = vld [vmem:[%s5929_s8 + $0x58] sm:$0xff]  ;;  %v3258_v5 = vld [vmem:[%s5929_s8 + $0x50] sm:$0xff] }
 0x587   : > { %3778 = vmatpush.msra.mxu2 %v3263_v21  ;;  %3779 = vmatpush.msra.mxu3 %v3263_v21  ;;  %v3257_v47 = vld [vmem:[%s5929_s8 + $0x48] sm:$0xff]  ;;  %v3256_v43 = vld [vmem:[%s5929_s8 + $0x40] sm:$0xff]  ;;  %v3255_v13 = vld [vmem:[%s5929_s8 + $0x38] sm:$0xff] }
 0x588   : > { %3265 = vmatpush.msra.mxu0 %v3262_v23  ;;  %3780 = vmatpush.msra.mxu1 %v3262_v23  ;;  %v3254_v55 = vld [vmem:[%s5929_s8 + $0x30] sm:$0xff]  ;;  %v3253_v32 = vld [vmem:[%s5929_s8 + $0x28] sm:$0xff]  ;;  %v3252_v7 = vld [vmem:[%s5929_s8 + $0x20] sm:$0xff] }
 0x589   : > { %3781 = vmatpush.msra.mxu2 %v3262_v23  ;;  %3782 = vmatpush.msra.mxu3 %v3262_v23  ;;  %v3251_v20 = vld [vmem:[%s5929_s8 + $0x18] sm:$0xff]  ;;  %v3250_v56 = vld [vmem:[%s5929_s8 + $0x10] sm:$0xff]  ;;  %v3249_v37 = vld [vmem:[%s5929_s8 + $0x8] sm:$0xff] }
 0x58a   : > { %3266 = vmatpush.msra.mxu0 %v3261_v61  ;;  %3783 = vmatpush.msra.mxu1 %v3261_v61  ;;  %v3248_v38 = vld [vmem:[%s5929_s8] sm:$0xff]  ;;  %v3245_v26 = vld [vmem:[#allocation4 + $0x8] sm:$0xff]  ;;  %v3246_v27 = vld [vmem:[#allocation4 + $0x10] sm:$0xff] }
 0x58b   : > { %3784 = vmatpush.msra.mxu2 %v3261_v61  ;;  %3785 = vmatpush.msra.mxu3 %v3261_v61  ;;  %v3244_v42 = vld [vmem:[#allocation4] sm:$0xff]  ;;  %v3247_v2 = vld [vmem:[#allocation4 + $0x18] sm:$0xff] }
 0x58c   : > { %3267 = vmatpush.msra.mxu0 %v3260_v4  ;;  %3786 = vmatpush.msra.mxu1 %v3260_v4 }
 0x58d   : > { %3787 = vmatpush.msra.mxu2 %v3260_v4  ;;  %3788 = vmatpush.msra.mxu3 %v3260_v4 }
 0x58e   : > { %3268 = vmatpush.msra.mxu0 %v3259_v31  ;;  %3789 = vmatpush.msra.mxu1 %v3259_v31 }
 0x58f   : > { %3790 = vmatpush.msra.mxu2 %v3259_v31  ;;  %3791 = vmatpush.msra.mxu3 %v3259_v31 }
 0x590   : > { %3269 = vmatpush.msra.mxu0 %v3258_v5  ;;  %3792 = vmatpush.msra.mxu1 %v3258_v5 }
 0x591   : > { %3793 = vmatpush.msra.mxu2 %v3258_v5  ;;  %3794 = vmatpush.msra.mxu3 %v3258_v5 }
 0x592   : > { %3270 = vmatpush.msra.mxu0 %v3257_v47  ;;  %3795 = vmatpush.msra.mxu1 %v3257_v47 }
 0x593   : > { %3796 = vmatpush.msra.mxu2 %v3257_v47  ;;  %3797 = vmatpush.msra.mxu3 %v3257_v47 }
 0x594   : > { %3271 = vmatpush.msra.mxu0 %v3256_v43  ;;  %3798 = vmatpush.msra.mxu1 %v3256_v43 }
 0x595   : > { %3799 = vmatpush.msra.mxu2 %v3256_v43  ;;  %3800 = vmatpush.msra.mxu3 %v3256_v43 }
 0x596   : > { %3272 = vmatpush.msra.mxu0 %v3255_v13  ;;  %3801 = vmatpush.msra.mxu1 %v3255_v13 }
 0x597   : > { %3802 = vmatpush.msra.mxu2 %v3255_v13  ;;  %3803 = vmatpush.msra.mxu3 %v3255_v13 }
 0x598   : > { %3273 = vmatpush.msra.mxu0 %v3254_v55  ;;  %3804 = vmatpush.msra.mxu1 %v3254_v55 }
 0x599   : > { %3805 = vmatpush.msra.mxu2 %v3254_v55  ;;  %3806 = vmatpush.msra.mxu3 %v3254_v55 }
 0x59a   : > { %3274 = vmatpush.msra.mxu0 %v3253_v32  ;;  %3807 = vmatpush.msra.mxu1 %v3253_v32 }
 0x59b   : > { %3808 = vmatpush.msra.mxu2 %v3253_v32  ;;  %3809 = vmatpush.msra.mxu3 %v3253_v32 }
 0x59c   : > { %3275 = vmatpush.msra.mxu0 %v3252_v7  ;;  %3810 = vmatpush.msra.mxu1 %v3252_v7 }
 0x59d   : > { %3811 = vmatpush.msra.mxu2 %v3252_v7  ;;  %3812 = vmatpush.msra.mxu3 %v3252_v7 }
 0x59e   : > { %3276 = vmatpush.msra.mxu0 %v3251_v20  ;;  %3813 = vmatpush.msra.mxu1 %v3251_v20 }
 0x59f   : > { %3814 = vmatpush.msra.mxu2 %v3251_v20  ;;  %3815 = vmatpush.msra.mxu3 %v3251_v20 }
 0x5a0   : > { %3277 = vmatpush.msra.mxu0 %v3250_v56  ;;  %3816 = vmatpush.msra.mxu1 %v3250_v56 }
 0x5a1   : > { %3817 = vmatpush.msra.mxu2 %v3250_v56  ;;  %3818 = vmatpush.msra.mxu3 %v3250_v56 }
 0x5a2   : > { %3278 = vmatpush.msra.mxu0 %v3249_v37  ;;  %3819 = vmatpush.msra.mxu1 %v3249_v37 }
 0x5a3   : > { %3820 = vmatpush.msra.mxu2 %v3249_v37  ;;  %3821 = vmatpush.msra.mxu3 %v3249_v37 }
 0x5a4   : > { %3279 = vmatpush.msra.mxu0 %v3248_v38  ;;  %3822 = vmatpush.msra.mxu1 %v3248_v38 }
 0x5a5   : > { %3823 = vmatpush.msra.mxu2 %v3248_v38  ;;  %3824 = vmatpush.msra.mxu3 %v3248_v38 }
 0x5a6   : > { %3280 = vmatmul.f32.vlgmr.msra.gmra.mxu0 %v3244_v42  ;;  %3283 = vmatmul.f32.vlgmr.msra.gmra.mxu1 %v3245_v26 }
 0x5a7   : > { %3286 = vmatmul.f32.vlgmr.msra.gmra.mxu2 %v3246_v27  ;;  %3289 = vmatmul.f32.vlgmr.msra.gmra.mxu3 %v3247_v2 }
 0x623   : > { %v3281_v51 = vpop.f32.mrf.mxu0  ;;  %v3284_v44 = vpop.f32.mrf.mxu1 }
 0x624   : > { %vm3293_vm11 = vcmp.eq.f32.partialorder %v3281_v51, 0.0  ;;  %vm3294_vm0 = vcmp.eq.f32.partialorder %v3284_v44, 0.0 }
 0x625   : > { %v3297_v24 = vsel %vm3293_vm11, 1e-12, %v3281_v51  ;;  %v3298_v14 = vsel %vm3294_vm0, 1e-12, %v3284_v44 }
 0x626   : > { %4071 = vrcp.f32 %v3297_v24 }
 0x627   : > { %4073 = vrcp.f32 %v3298_v14 }
 0x62a   : > { %v3287_v57 = vpop.f32.mrf.mxu2  ;;  %v3290_v3 = vpop.f32.mrf.mxu3 }
 0x62b   : > { %vm3295_vm6 = vcmp.eq.f32.partialorder %v3287_v57, 0.0  ;;  %vm3296_vm12 = vcmp.eq.f32.partialorder %v3290_v3, 0.0 }
 0x62c   : > { %v4072_v11 = vpop.eup %4071  ;;  %v3299_v54 = vsel %vm3295_vm6, 1e-12, %v3287_v57  ;;  %v3300_v60 = vsel %vm3296_vm12, 1e-12, %v3290_v3 }
 0x62d   : > { %v4074_v12 = vpop.eup %4073  ;;  %v3305_v18 = vmul.f32 %v4072_v11, %v3244_v42  ;;  %4075 = vrcp.f32 %v3299_v54 }
 0x62e   : > { %v3306_v50 = vmul.f32 %v4074_v12, %v3245_v26  ;;  %4077 = vrcp.f32 %v3300_v60 }
 0x62f   : > { %v3313_v28 = vmin.f32 %v3305_v18, 0.0  ;;  %vm3309_vm4 = vcmp.gt.f32.partialorder %v3305_v18, 0.0 }
 0x630   : > { %v3314_v30 = vmin.f32 %v3306_v50, 0.0  ;;  %vm3310_vm9 = vcmp.gt.f32.partialorder %v3306_v50, 0.0 }
 0x631   : > { %v3317_v16 = vmul.f32 1.442695, %v3313_v28 }
 0x632   : > { %v3319_v6 = vmul.f32 1.442695, %v3314_v30 }
 0x633   : > { %v4076_v48 = vpop.eup %4075  ;;  %4079 = vpow2.f32 %v3317_v16 }
 0x634   : > { %v4078_v29 = vpop.eup %4077  ;;  %4081 = vpow2.f32 %v3319_v6  ;;  %v3307_v49 = vmul.f32 %v4076_v48, %v3246_v27 }
 0x635   : > { %v3308_v36 = vmul.f32 %v4078_v29, %v3247_v2 }
 0x636   : > { %v3315_v34 = vmin.f32 %v3307_v49, 0.0  ;;  %vm3311_vm5 = vcmp.gt.f32.partialorder %v3307_v49, 0.0 }
 0x637   : > { %v3316_v10 = vmin.f32 %v3308_v36, 0.0  ;;  %vm3312_vm3 = vcmp.gt.f32.partialorder %v3308_v36, 0.0 }
 0x638   : > { %v3321_v1 = vmul.f32 1.442695, %v3315_v34 }
 0x639   : > { %v4080_v45 = vpop.eup %4079  ;;  %v3323_v46 = vmul.f32 1.442695, %v3316_v10 }
 0x63a   : > { %v4082_v63 = vpop.eup %4081  ;;  %v3703_v35 = vadd.f32 -1.0, %v4080_v45  ;;  %4083 = vpow2.f32 %v3321_v1 }
 0x63b   : > { %v3704_v0 = vadd.f32 -1.0, %v4082_v63  ;;  %4085 = vpow2.f32 %v3323_v46 }
 0x63c   : > { %v3329_v39 = vsel %vm3309_vm4, %v3305_v18, %v3703_v35 }
 0x63d   : > { %3333 = vst [vmem:[#allocation4] sm:$0xff] %v3329_v39  ;;  %v3330_v9 = vsel %vm3310_vm9, %v3306_v50, %v3704_v0 }
 0x63e   : > { %3334 = vst [vmem:[#allocation4 + $0x8] sm:$0xff] %v3330_v9 }
 0x640   : > { %v4084_v40 = vpop.eup %4083 }
 0x641   : > { %v4086_v53 = vpop.eup %4085  ;;  %v3705_v19 = vadd.f32 -1.0, %v4084_v40 }
 0x642   : > { %v3706_v25 = vadd.f32 -1.0, %v4086_v53 }
 0x643   : > { %v3331_v15 = vsel %vm3311_vm5, %v3307_v49, %v3705_v19 }
 0x644   : > { %3335 = vst [vmem:[#allocation4 + $0x10] sm:$0xff] %v3331_v15  ;;  %v3332_v33 = vsel %vm3312_vm3, %v3308_v36, %v3706_v25 }
 0x645   : > { %3336 = vst [vmem:[#allocation4 + $0x18] sm:$0xff] %v3332_v33 }
 0x646 PF: > { %p3893_p7 = scmp.eq.s32.totalorder %s3413_s12, 1  ;;  %s3347_s22 = sshll.u32 %s5930_s9, 4  ;;  %s3348_s22 = int_to_ptr.hbm [resolvable:$true] %s3347_s22 }
 0x647   : > { %s4147_s23 = smov [#allocation4]   ;;  %s4148_s25 = smov 128  }
 0x648   : > { %s3345_s24 = sshll.u32 %s4147_s23, 4  ;;  %s4149_s26 = smov 8   ;;  %s3346_s24 = int_to_ptr.vmem [resolvable:$true] %s3345_s24 }
 0x649   : > { %3890 = dma.vmem_to_hbm [thread:$0]  (%p3893_p7), %s3346_s24, 512, %s3348_s22, [#allocation5], %s4148_s25, %s4148_s25, %s4149_s26  }
 0x64a   : > { %4128 = dma.done.wait (%p3893_p7), [#allocation5], 512  }
 0x64b   : > { %4130 = vsyncadd (%p3893_p7), [#allocation5], 4294966784 }
 0x64c PF: > { %s20_s11 = sadd.s32 1, %s4141_s11   ;;  %s6011_s30 = smov %s4137_s10 }
 0x64d   : > { %p17_p8 = scmp.ge.s32.totalorder %s20_s11, 4   ;;  %s6012_s10 = smov %s6014_s13 }
 0x64f   :  { %19 = sbr.rel (!%p17_p8) target bundleno = 2 (0x2), region = 95 }
 0x654   :  { %3364 = vsyncpa [#allocation5], 1 }
 0x655   :  { %3366 = vsyncpa [#allocation5 + $0x1], 1 }

</bundles_post_ra>
